<compile_context>
chip_gen: v5e
topology: v5e:2x2
jax: 0.10.0
libtpu: 0.0.40
codegen_flags: <defaults>
</compile_context>

<pallas_src>
import functools

import jax
import jax.numpy as jnp
from jax.experimental import pallas as pl
from jax.experimental.pallas import tpu as pltpu


# ----------------------------------------------------------------------------
# Pallas kernel: tiled matmul with f32 accumulator + fused bias/activation.
# ----------------------------------------------------------------------------
def _conv_mm_kernel(p_ref, w_ref, b_ref, o_ref, acc_ref, *, activation):
    k = pl.program_id(1)

    @pl.when(k == 0)
    def _():
        acc_ref[...] = jnp.zeros_like(acc_ref)

    acc_ref[...] += jnp.dot(
        p_ref[...], w_ref[...], preferred_element_type=jnp.float32
    )

    @pl.when(k == pl.num_programs(1) - 1)
    def _():
        y = acc_ref[...] + b_ref[...]          # (1, TN) broadcasts over rows
        if activation == "relu":
            y = jnp.maximum(y, 0.0)
        elif activation == "tanh_out":         # fused: tanh, then /2 + 0.5
            y = jnp.tanh(y) * 0.5 + 0.5
        o_ref[...] = y.astype(o_ref.dtype)


def _round_up(x, m):
    return (x + m - 1) // m * m


def conv_matmul(patches, w_mat, bias, *, activation="none", out_dtype=jnp.float32):
    """patches [M, K] x w_mat [K, Cout] + bias, fused activation, lane-dense out."""
    M, K = patches.shape
    Kw, Cout = w_mat.shape
    assert Kw == K and Cout <= 128, (Kw, K, Cout)

    # Lane-dense output: pad Cout to a full 128-lane tile.
    TN = 128
    Np = TN

    # Reduction tiling: single K step when it fits comfortably in VMEM.
    TK_MAX = 1024
    Kp = _round_up(K, 128)
    if Kp <= TK_MAX:
        TK = Kp
    else:
        TK = 512
        Kp = _round_up(K, TK)

    # M tiling: >=2 tiles for megacore when M is big enough, else a single tile.
    TM = 256 if M > 256 else _round_up(M, 8)
    Mp = _round_up(M, TM)

    p = patches
    if (Mp, Kp) != (M, K):
        p = jnp.pad(p, ((0, Mp - M), (0, Kp - K)))
    w = w_mat
    if (Kp, Np) != (K, Cout):
        w = jnp.pad(w, ((0, Kp - K), (0, Np - Cout)))
    b = jnp.pad(bias.reshape(1, -1).astype(jnp.float32), ((0, 0), (0, Np - Cout)))

    # bf16 MXU operands, f32 accumulation.
    p = p.astype(jnp.bfloat16)
    w = w.astype(jnp.bfloat16)

    grid = (Mp // TM, Kp // TK)
    kernel = functools.partial(_conv_mm_kernel, activation=activation)
    out = pl.pallas_call(
        kernel,
        out_shape=jax.ShapeDtypeStruct((Mp, Np), out_dtype),
        grid_spec=pltpu.PrefetchScalarGridSpec(
            num_scalar_prefetch=0,
            grid=grid,
            in_specs=[
                pl.BlockSpec((TM, TK), lambda i, k: (i, k)),
                pl.BlockSpec((TK, TN), lambda i, k: (k, 0)),
                pl.BlockSpec((1, TN), lambda i, k: (0, 0)),
            ],
            out_specs=pl.BlockSpec((TM, TN), lambda i, k: (i, 0)),
            scratch_shapes=[pltpu.VMEM((TM, TN), jnp.float32)],
        ),
        compiler_params=pltpu.CompilerParams(
            dimension_semantics=("parallel", "arbitrary"),
        ),
    )(p, w, b)
    return out[:M, :Cout]


# ----------------------------------------------------------------------------
# JAX glue: NHWC im2col (pure indexing) + conv / conv-transpose wrappers.
# ----------------------------------------------------------------------------
def im2col_nhwc(x, k, stride, pad):
    """x: [N,H,W,C] -> patches [N*Ho*Wo, k*k*C], feature order (kh, kw, C)."""
    N, H, W, C = x.shape
    xp = jnp.pad(x, ((0, 0), (pad, pad), (pad, pad), (0, 0)))
    Ho = (H + 2 * pad - k) // stride + 1
    Wo = (W + 2 * pad - k) // stride + 1
    cols = []
    for i in range(k):
        for j in range(k):
            cols.append(xp[:, i : i + stride * Ho : stride, j : j + stride * Wo : stride, :])
    p = jnp.concatenate(cols, axis=-1)              # [N, Ho, Wo, k*k*C]
    return p.reshape(N * Ho * Wo, k * k * C), (Ho, Wo)


def conv2d(x, w_oihw, b, *, k, stride, pad, act="none", out_dtype=jnp.bfloat16):
    """NHWC conv via im2col + Pallas tiled matmul."""
    N, H, W, Cin = x.shape
    Cout = w_oihw.shape[0]
    patches, (Ho, Wo) = im2col_nhwc(x, k, stride, pad)
    w_mat = jnp.transpose(w_oihw, (2, 3, 1, 0)).reshape(k * k * Cin, Cout)
    y = conv_matmul(patches, w_mat, b, activation=act, out_dtype=out_dtype)
    return y.reshape(N, Ho, Wo, Cout)


# ConvTranspose2d(k=4, s=2, p=1): out[2R+py, 2C+px] uses exactly these
# (input-row-offset dy, kernel-row kh) taps per output-row parity (same for cols).
_DECONV_TAPS = {0: ((0, 1), (-1, 3)), 1: ((1, 0), (0, 2))}


def conv_transpose_2x(x, w_iohw, b, *, act="none", out_dtype=jnp.bfloat16):
    """ConvTranspose2d(Cin,Cout,k=4,s=2,p=1) as a SINGLE matmul.

    3x3 stride-1 im2col of the input (covers the union of all parity taps) against
    a sparse [9*Cin, 4*Cout] weight: output lane block p = py*2+px holds the 2x2
    sub-conv for output-pixel parity (py, px).  4*Cout == 128 lanes -> lane-dense.
    """
    N, H, W, Cin = x.shape
    Cout = w_iohw.shape[1]
    patches, _ = im2col_nhwc(x, 3, 1, 1)            # [N*H*W, 9*Cin]

    blocks = []
    for dy in (-1, 0, 1):
        for dx in (-1, 0, 1):
            row = []
            for py in (0, 1):
                for px in (0, 1):
                    kh = next((h for (d, h) in _DECONV_TAPS[py] if d == dy), None)
                    kw = next((w for (d, w) in _DECONV_TAPS[px] if d == dx), None)
                    if kh is None or kw is None:
                        row.append(jnp.zeros((Cin, Cout), w_iohw.dtype))
                    else:
                        row.append(w_iohw[:, :, kh, kw])       # [Cin, Cout]
            blocks.append(jnp.concatenate(row, axis=1))        # [Cin, 4*Cout]
    w_dec = jnp.concatenate(blocks, axis=0)                    # [9*Cin, 4*Cout]
    b_dec = jnp.tile(b, 4)                                     # [4*Cout]

    y = conv_matmul(patches, w_dec, b_dec, activation=act, out_dtype=out_dtype)
    y = y.reshape(N, H, W, 2, 2, Cout)                         # (.., py, px, C)
    y = jnp.transpose(y, (0, 1, 3, 2, 4, 5))                   # [N, H, 2, W, 2, C]
    return y.reshape(N, 2 * H, 2 * W, Cout)


def fold_bn(w_oihw, b, bn, eps=1e-5):
    """Fold eval-mode BatchNorm (gamma, beta, running_mean, running_var) into conv."""
    gamma, beta, mean, var = bn
    scale = gamma / jnp.sqrt(var + eps)
    w = w_oihw * scale[:, None, None, None]
    bias = (b - mean) * scale + beta
    return w, bias


# ----------------------------------------------------------------------------
# DS_Hide forward.
# ----------------------------------------------------------------------------
def ds_hide_forward(secret, cover, params):
    """secret, cover: [N, 3, H, W] NCHW float32 in [0,1]. Returns [N, 3, H, W]."""
    N = secret.shape[0]
    # Batch secret+cover through `prepare` in one pass; NHWC internally.
    x = jnp.concatenate([secret, cover], axis=0)
    x = jnp.transpose(x, (0, 2, 3, 1))
    x = (x - 0.5) * 2.0

    x = conv2d(x, params["prep0_w"], params["prep0_b"], k=3, stride=1, pad=1, act="relu")
    x = conv2d(x, params["prep1_w"], params["prep1_b"], k=4, stride=2, pad=1, act="relu")
    sec_f, cov_f = x[:N], x[N:]
    h = jnp.concatenate([sec_f, cov_f], axis=-1)                # [N, H/2, W/2, 128]

    # hidding_1 (BN folded into conv weights/bias, eval mode)
    w, b = fold_bn(params["h1c0_w"], params["h1c0_b"], params["h1bn0"])
    h = conv2d(h, w, b, k=1, stride=1, pad=0, act="relu")
    w, b = fold_bn(params["h1c1_w"], params["h1c1_b"], params["h1bn1"])
    h = conv2d(h, w, b, k=3, stride=1, pad=1, act="relu")
    w, b = fold_bn(params["h1c2_w"], params["h1c2_b"], params["h1bn2"])
    h = conv2d(h, w, b, k=3, stride=1, pad=1, act="relu")

    # hidding_2
    h = conv_transpose_2x(h, params["h2dc_w"], params["h2dc_b"], act="relu")
    w, b = fold_bn(params["h2c1_w"], params["h2c1_b"], params["h2bn1"])
    h = conv2d(h, w, b, k=3, stride=1, pad=1, act="relu")
    # final conv: tanh and the trailing `/2 + 0.5` fused in the kernel epilogue
    out = conv2d(h, params["h2c2_w"], params["h2c2_b"], k=3, stride=1, pad=1,
                 act="tanh_out", out_dtype=jnp.float32)

    return jnp.transpose(out, (0, 3, 1, 2))


# ----------------------------------------------------------------------------
# Pure-JAX (XLA conv) reference for a correctness check.
# ----------------------------------------------------------------------------
def _conv_ref(x, w_oihw, b, stride, pad):
    w_hwio = jnp.transpose(w_oihw, (2, 3, 1, 0))
    y = jax.lax.conv_general_dilated(
        x, w_hwio, window_strides=(stride, stride),
        padding=((pad, pad), (pad, pad)),
        dimension_numbers=("NHWC", "HWIO", "NHWC"))
    return y + b.reshape(1, 1, 1, -1)


def _deconv_ref(x, w_iohw, b):
    w_eq = jnp.flip(w_iohw, axis=(2, 3))
    w_hwio = jnp.transpose(w_eq, (2, 3, 0, 1))
    y = jax.lax.conv_general_dilated(
        x, w_hwio, window_strides=(1, 1), padding=((2, 2), (2, 2)),
        lhs_dilation=(2, 2), dimension_numbers=("NHWC", "HWIO", "NHWC"))
    return y + b.reshape(1, 1, 1, -1)


def reference_forward(secret, cover, params):
    def bn(x, p):
        g, be, m, v = p
        return g * (x - m) / jnp.sqrt(v + 1e-5) + be

    def prep(x):
        x = (x - 0.5) * 2.0
        x = jnp.maximum(_conv_ref(x, params["prep0_w"], params["prep0_b"], 1, 1), 0.0)
        x = jnp.maximum(_conv_ref(x, params["prep1_w"], params["prep1_b"], 2, 1), 0.0)
        return x

    s = jnp.transpose(secret, (0, 2, 3, 1))
    c = jnp.transpose(cover, (0, 2, 3, 1))
    h = jnp.concatenate([prep(s), prep(c)], axis=-1)
    h = jnp.maximum(bn(_conv_ref(h, params["h1c0_w"], params["h1c0_b"], 1, 0), params["h1bn0"]), 0.0)
    h = jnp.maximum(bn(_conv_ref(h, params["h1c1_w"], params["h1c1_b"], 1, 1), params["h1bn1"]), 0.0)
    h = jnp.maximum(bn(_conv_ref(h, params["h1c2_w"], params["h1c2_b"], 1, 1), params["h1bn2"]), 0.0)
    h = jnp.maximum(_deconv_ref(h, params["h2dc_w"], params["h2dc_b"]), 0.0)
    h = jnp.maximum(bn(_conv_ref(h, params["h2c1_w"], params["h2c1_b"], 1, 1), params["h2bn1"]), 0.0)
    h = jnp.tanh(_conv_ref(h, params["h2c2_w"], params["h2c2_b"], 1, 1))
    h = h / 2.0 + 0.5
    return jnp.transpose(h, (0, 3, 1, 2))


if __name__ == "__main__":
    N, H, W = 2, 16, 16
    key = jax.random.PRNGKey(0)
    keys = list(jax.random.split(key, 40))
    kit = iter(keys)

    def conv_p(shape_w):
        w = 0.1 * jax.random.normal(next(kit), shape_w, jnp.float32)
        b = 0.05 * jax.random.normal(next(kit), (shape_w[0],), jnp.float32)
        return w, b

    def bn_p(c):
        return (1.0 + 0.1 * jax.random.normal(next(kit), (c,), jnp.float32),   # gamma
                0.05 * jax.random.normal(next(kit), (c,), jnp.float32),        # beta
                0.05 * jax.random.normal(next(kit), (c,), jnp.float32),        # running_mean
                0.5 + jax.random.uniform(next(kit), (c,), jnp.float32))        # running_var

    params = {}
    params["prep0_w"], params["prep0_b"] = conv_p((64, 3, 3, 3))
    params["prep1_w"], params["prep1_b"] = conv_p((64, 64, 4, 4))
    params["h1c0_w"], params["h1c0_b"] = conv_p((64, 128, 1, 1))
    params["h1c1_w"], params["h1c1_b"] = conv_p((64, 64, 3, 3))
    params["h1c2_w"], params["h1c2_b"] = conv_p((32, 64, 3, 3))
    params["h2dc_w"] = 0.1 * jax.random.normal(next(kit), (32, 32, 4, 4), jnp.float32)  # IOHW
    params["h2dc_b"] = 0.05 * jax.random.normal(next(kit), (32,), jnp.float32)
    params["h2c1_w"], params["h2c1_b"] = conv_p((16, 32, 3, 3))
    params["h2c2_w"], params["h2c2_b"] = conv_p((3, 16, 3, 3))
    params["h1bn0"] = bn_p(64)
    params["h1bn1"] = bn_p(64)
    params["h1bn2"] = bn_p(32)
    params["h2bn1"] = bn_p(16)

    secret = jax.random.uniform(next(kit), (N, 3, H, W), jnp.float32)
    cover = jax.random.uniform(next(kit), (N, 3, H, W), jnp.float32)

    fwd = jax.jit(ds_hide_forward)
    out = jax.block_until_ready(fwd(secret, cover, params))
    assert out.shape == (N, 3, H, W), out.shape
    assert bool(jnp.all(jnp.isfinite(out)))

    ref = jax.block_until_ready(reference_forward(secret, cover, params))
    err = float(jnp.max(jnp.abs(out - ref)))
    assert err < 5e-2, err   # bf16 MXU operands / bf16 inter-layer storage, f32 accumulation

    print("KERNEL_OK")
</pallas_src>

<mosaic_0001>
module attributes {stable_mosaic.version = 11 : i64} {
  func.func @_conv_mm_kernel(%arg0: i32, %arg1: i32, %arg2: memref<256x128xbf16, #tpu.memory_space<vmem>>, %arg3: memref<128x128xbf16, #tpu.memory_space<vmem>>, %arg4: memref<1x128xf32, #tpu.memory_space<vmem>>, %arg5: memref<256x128xbf16, #tpu.memory_space<vmem>>, %arg6: memref<256x128xf32, #tpu.memory_space<vmem>>) attributes {dimension_semantics = [#tpu.dimension_semantics<parallel>, #tpu.dimension_semantics<arbitrary>], iteration_bounds = array<i64: 4, 1>, scalar_prefetch = 0 : i64, scratch_operands = 1 : i64, tpu.core_type = #tpu.core_type<tc>, window_params = [{transform_indices = @transform_0, window_bounds = array<i64: 256, 128>}, {transform_indices = @transform_1, window_bounds = array<i64: 128, 128>}, {pipeline_mode = #tpu.pipeline_mode<synchronous>, transform_indices = @transform_2, window_bounds = array<i64: 1, 128>}, {transform_indices = @transform_3, window_bounds = array<i64: 256, 128>}]} {
    %c0_i32 = arith.constant 0 : i32
    %0 = arith.cmpi eq, %arg1, %c0_i32 : i32
    %1 = arith.extui %0 : i1 to i32
    %c0_i32_0 = arith.constant 0 : i32
    %2 = arith.cmpi ne, %1, %c0_i32_0 : i32
    scf.if %2 {
      %cst_10 = arith.constant 0.000000e+00 : f32
      %12 = vector.broadcast %cst_10 : f32 to vector<256x128xf32>
      %c0_11 = arith.constant 0 : index
      %c0_12 = arith.constant 0 : index
      %13 = vector.load %arg6[%c0_11, %c0_12] : memref<256x128xf32, #tpu.memory_space<vmem>>, vector<256x128xf32>
      tpu.vector_store %arg6[%c0_11, %c0_12], %12 {strides = array<i32>} : memref<256x128xf32, #tpu.memory_space<vmem>>, vector<256x128xf32>,
    } else {
    }
    %c0 = arith.constant 0 : index
    %c0_1 = arith.constant 0 : index
    %3 = vector.load %arg6[%c0, %c0_1] : memref<256x128xf32, #tpu.memory_space<vmem>>, vector<256x128xf32>
    %c0_2 = arith.constant 0 : index
    %c0_3 = arith.constant 0 : index
    %4 = vector.load %arg2[%c0_2, %c0_3] : memref<256x128xbf16, #tpu.memory_space<vmem>>, vector<256x128xbf16>
    %c0_4 = arith.constant 0 : index
    %c0_5 = arith.constant 0 : index
    %5 = vector.load %arg3[%c0_4, %c0_5] : memref<128x128xbf16, #tpu.memory_space<vmem>>, vector<128x128xbf16>
    %cst = arith.constant dense<0.000000e+00> : vector<256x128xf32>
    %6 = tpu.matmul %4, %5, %cst {dimension_numbers = #tpu.dot_dimension_numbers<[1], [0], [0], [1], [0, 0, 1, 1], [], []>} : vector<256x128xbf16>, vector<128x128xbf16>, vector<256x128xf32> -> vector<256x128xf32>
    %7 = arith.addf %3, %6 : vector<256x128xf32>
    %c0_6 = arith.constant 0 : index
    %c0_7 = arith.constant 0 : index
    %8 = vector.load %arg6[%c0_6, %c0_7] : memref<256x128xf32, #tpu.memory_space<vmem>>, vector<256x128xf32>
    tpu.vector_store %arg6[%c0_6, %c0_7], %7 {strides = array<i32>} : memref<256x128xf32, #tpu.memory_space<vmem>>, vector<256x128xf32>,
    %c0_i32_8 = arith.constant 0 : i32
    %9 = arith.cmpi eq, %arg1, %c0_i32_8 : i32
    %10 = arith.extui %9 : i1 to i32
    %c0_i32_9 = arith.constant 0 : i32
    %11 = arith.cmpi ne, %10, %c0_i32_9 : i32
    scf.if %11 {
      %c0_10 = arith.constant 0 : index
      %c0_11 = arith.constant 0 : index
      %12 = vector.load %arg6[%c0_10, %c0_11] : memref<256x128xf32, #tpu.memory_space<vmem>>, vector<256x128xf32>
      %c0_12 = arith.constant 0 : index
      %c0_13 = arith.constant 0 : index
      %13 = vector.load %arg4[%c0_12, %c0_13] : memref<1x128xf32, #tpu.memory_space<vmem>>, vector<1x128xf32>
      %14 = vector.broadcast %13 : vector<1x128xf32> to vector<256x128xf32>
      %15 = arith.addf %12, %14 : vector<256x128xf32>
      %cst_14 = arith.constant 0.000000e+00 : f32
      %16 = vector.broadcast %cst_14 : f32 to vector<256x128xf32>
      %17 = arith.maximumf %15, %16 : vector<256x128xf32>
      %18 = arith.truncf %17 : vector<256x128xf32> to vector<256x128xbf16>
      %c0_15 = arith.constant 0 : index
      %c0_16 = arith.constant 0 : index
      %19 = vector.load %arg5[%c0_15, %c0_16] : memref<256x128xbf16, #tpu.memory_space<vmem>>, vector<256x128xbf16>
      tpu.vector_store %arg5[%c0_15, %c0_16], %18 {strides = array<i32>} : memref<256x128xbf16, #tpu.memory_space<vmem>>, vector<256x128xbf16>,
    } else {
    }
    return
  }
  func.func @transform_0(%arg0: i32, %arg1: i32) -> (i32, i32) {
    %c0_i32 = arith.constant 0 : i32
    return %arg0, %arg1 : i32, i32
  }
  func.func @transform_1(%arg0: i32, %arg1: i32) -> (i32, i32) {
    %c0_i32 = arith.constant 0 : i32
    %c0_i32_0 = arith.constant 0 : i32
    return %arg1, %c0_i32 : i32, i32
  }
  func.func @transform_2(%arg0: i32, %arg1: i32) -> (i32, i32) {
    %c0_i32 = arith.constant 0 : i32
    %c0_i32_0 = arith.constant 0 : i32
    %c0_i32_1 = arith.constant 0 : i32
    return %c0_i32, %c0_i32_0 : i32, i32
  }
  func.func @transform_3(%arg0: i32, %arg1: i32) -> (i32, i32) {
    %c0_i32 = arith.constant 0 : i32
    %c0_i32_0 = arith.constant 0 : i32
    return %arg0, %c0_i32 : i32, i32
  }
}

module attributes {stable_mosaic.version = 11 : i64} {
  func.func @_conv_mm_kernel(%arg0: i32, %arg1: i32, %arg2: memref<256x1024xbf16, #tpu.memory_space<vmem>>, %arg3: memref<1024x128xbf16, #tpu.memory_space<vmem>>, %arg4: memref<1x128xf32, #tpu.memory_space<vmem>>, %arg5: memref<256x128xbf16, #tpu.memory_space<vmem>>, %arg6: memref<256x128xf32, #tpu.memory_space<vmem>>) attributes {dimension_semantics = [#tpu.dimension_semantics<parallel>, #tpu.dimension_semantics<arbitrary>], iteration_bounds = array<i64: 1, 1>, scalar_prefetch = 0 : i64, scratch_operands = 1 : i64, tpu.core_type = #tpu.core_type<tc>, window_params = [{transform_indices = @transform_0, window_bounds = array<i64: 256, 1024>}, {transform_indices = @transform_1, window_bounds = array<i64: 1024, 128>}, {pipeline_mode = #tpu.pipeline_mode<synchronous>, transform_indices = @transform_2, window_bounds = array<i64: 1, 128>}, {transform_indices = @transform_3, window_bounds = array<i64: 256, 128>}]} {
    %c0_i32 = arith.constant 0 : i32
    %0 = arith.cmpi eq, %arg1, %c0_i32 : i32
    %1 = arith.extui %0 : i1 to i32
    %c0_i32_0 = arith.constant 0 : i32
    %2 = arith.cmpi ne, %1, %c0_i32_0 : i32
    scf.if %2 {
      %cst_10 = arith.constant 0.000000e+00 : f32
      %12 = vector.broadcast %cst_10 : f32 to vector<256x128xf32>
      %c0_11 = arith.constant 0 : index
      %c0_12 = arith.constant 0 : index
      %13 = vector.load %arg6[%c0_11, %c0_12] : memref<256x128xf32, #tpu.memory_space<vmem>>, vector<256x128xf32>
      tpu.vector_store %arg6[%c0_11, %c0_12], %12 {strides = array<i32>} : memref<256x128xf32, #tpu.memory_space<vmem>>, vector<256x128xf32>,
    } else {
    }
    %c0 = arith.constant 0 : index
    %c0_1 = arith.constant 0 : index
    %3 = vector.load %arg6[%c0, %c0_1] : memref<256x128xf32, #tpu.memory_space<vmem>>, vector<256x128xf32>
    %c0_2 = arith.constant 0 : index
    %c0_3 = arith.constant 0 : index
    %4 = vector.load %arg2[%c0_2, %c0_3] : memref<256x1024xbf16, #tpu.memory_space<vmem>>, vector<256x1024xbf16>
    %c0_4 = arith.constant 0 : index
    %c0_5 = arith.constant 0 : index
    %5 = vector.load %arg3[%c0_4, %c0_5] : memref<1024x128xbf16, #tpu.memory_space<vmem>>, vector<1024x128xbf16>
    %cst = arith.constant dense<0.000000e+00> : vector<256x128xf32>
    %6 = tpu.matmul %4, %5, %cst {dimension_numbers = #tpu.dot_dimension_numbers<[1], [0], [0], [1], [0, 0, 1, 1], [], []>} : vector<256x1024xbf16>, vector<1024x128xbf16>, vector<256x128xf32> -> vector<256x128xf32>
    %7 = arith.addf %3, %6 : vector<256x128xf32>
    %c0_6 = arith.constant 0 : index
    %c0_7 = arith.constant 0 : index
    %8 = vector.load %arg6[%c0_6, %c0_7] : memref<256x128xf32, #tpu.memory_space<vmem>>, vector<256x128xf32>
    tpu.vector_store %arg6[%c0_6, %c0_7], %7 {strides = array<i32>} : memref<256x128xf32, #tpu.memory_space<vmem>>, vector<256x128xf32>,
    %c0_i32_8 = arith.constant 0 : i32
    %9 = arith.cmpi eq, %arg1, %c0_i32_8 : i32
    %10 = arith.extui %9 : i1 to i32
    %c0_i32_9 = arith.constant 0 : i32
    %11 = arith.cmpi ne, %10, %c0_i32_9 : i32
    scf.if %11 {
      %c0_10 = arith.constant 0 : index
      %c0_11 = arith.constant 0 : index
      %12 = vector.load %arg6[%c0_10, %c0_11] : memref<256x128xf32, #tpu.memory_space<vmem>>, vector<256x128xf32>
      %c0_12 = arith.constant 0 : index
      %c0_13 = arith.constant 0 : index
      %13 = vector.load %arg4[%c0_12, %c0_13] : memref<1x128xf32, #tpu.memory_space<vmem>>, vector<1x128xf32>
      %14 = vector.broadcast %13 : vector<1x128xf32> to vector<256x128xf32>
      %15 = arith.addf %12, %14 : vector<256x128xf32>
      %cst_14 = arith.constant 0.000000e+00 : f32
      %16 = vector.broadcast %cst_14 : f32 to vector<256x128xf32>
      %17 = arith.maximumf %15, %16 : vector<256x128xf32>
      %18 = arith.truncf %17 : vector<256x128xf32> to vector<256x128xbf16>
      %c0_15 = arith.constant 0 : index
      %c0_16 = arith.constant 0 : index
      %19 = vector.load %arg5[%c0_15, %c0_16] : memref<256x128xbf16, #tpu.memory_space<vmem>>, vector<256x128xbf16>
      tpu.vector_store %arg5[%c0_15, %c0_16], %18 {strides = array<i32>} : memref<256x128xbf16, #tpu.memory_space<vmem>>, vector<256x128xbf16>,
    } else {
    }
    return
  }
  func.func @transform_0(%arg0: i32, %arg1: i32) -> (i32, i32) {
    %c0_i32 = arith.constant 0 : i32
    return %arg0, %arg1 : i32, i32
  }
  func.func @transform_1(%arg0: i32, %arg1: i32) -> (i32, i32) {
    %c0_i32 = arith.constant 0 : i32
    %c0_i32_0 = arith.constant 0 : i32
    return %arg1, %c0_i32 : i32, i32
  }
  func.func @transform_2(%arg0: i32, %arg1: i32) -> (i32, i32) {
    %c0_i32 = arith.constant 0 : i32
    %c0_i32_0 = arith.constant 0 : i32
    %c0_i32_1 = arith.constant 0 : i32
    return %c0_i32, %c0_i32_0 : i32, i32
  }
  func.func @transform_3(%arg0: i32, %arg1: i32) -> (i32, i32) {
    %c0_i32 = arith.constant 0 : i32
    %c0_i32_0 = arith.constant 0 : i32
    return %arg0, %c0_i32 : i32, i32
  }
}

module attributes {stable_mosaic.version = 11 : i64} {
  func.func @_conv_mm_kernel(%arg0: i32, %arg1: i32, %arg2: memref<128x128xbf16, #tpu.memory_space<vmem>>, %arg3: memref<128x128xbf16, #tpu.memory_space<vmem>>, %arg4: memref<1x128xf32, #tpu.memory_space<vmem>>, %arg5: memref<128x128xbf16, #tpu.memory_space<vmem>>, %arg6: memref<128x128xf32, #tpu.memory_space<vmem>>) attributes {dimension_semantics = [#tpu.dimension_semantics<parallel>, #tpu.dimension_semantics<arbitrary>], iteration_bounds = array<i64: 1, 1>, scalar_prefetch = 0 : i64, scratch_operands = 1 : i64, tpu.core_type = #tpu.core_type<tc>, window_params = [{transform_indices = @transform_0, window_bounds = array<i64: 128, 128>}, {transform_indices = @transform_1, window_bounds = array<i64: 128, 128>}, {pipeline_mode = #tpu.pipeline_mode<synchronous>, transform_indices = @transform_2, window_bounds = array<i64: 1, 128>}, {transform_indices = @transform_3, window_bounds = array<i64: 128, 128>}]} {
    %c0_i32 = arith.constant 0 : i32
    %0 = arith.cmpi eq, %arg1, %c0_i32 : i32
    %1 = arith.extui %0 : i1 to i32
    %c0_i32_0 = arith.constant 0 : i32
    %2 = arith.cmpi ne, %1, %c0_i32_0 : i32
    scf.if %2 {
      %cst_10 = arith.constant 0.000000e+00 : f32
      %12 = vector.broadcast %cst_10 : f32 to vector<128x128xf32>
      %c0_11 = arith.constant 0 : index
      %c0_12 = arith.constant 0 : index
      %13 = vector.load %arg6[%c0_11, %c0_12] : memref<128x128xf32, #tpu.memory_space<vmem>>, vector<128x128xf32>
      tpu.vector_store %arg6[%c0_11, %c0_12], %12 {strides = array<i32>} : memref<128x128xf32, #tpu.memory_space<vmem>>, vector<128x128xf32>,
    } else {
    }
    %c0 = arith.constant 0 : index
    %c0_1 = arith.constant 0 : index
    %3 = vector.load %arg6[%c0, %c0_1] : memref<128x128xf32, #tpu.memory_space<vmem>>, vector<128x128xf32>
    %c0_2 = arith.constant 0 : index
    %c0_3 = arith.constant 0 : index
    %4 = vector.load %arg2[%c0_2, %c0_3] : memref<128x128xbf16, #tpu.memory_space<vmem>>, vector<128x128xbf16>
    %c0_4 = arith.constant 0 : index
    %c0_5 = arith.constant 0 : index
    %5 = vector.load %arg3[%c0_4, %c0_5] : memref<128x128xbf16, #tpu.memory_space<vmem>>, vector<128x128xbf16>
    %cst = arith.constant dense<0.000000e+00> : vector<128x128xf32>
    %6 = tpu.matmul %4, %5, %cst {dimension_numbers = #tpu.dot_dimension_numbers<[1], [0], [0], [1], [0, 0, 1, 1], [], []>} : vector<128x128xbf16>, vector<128x128xbf16>, vector<128x128xf32> -> vector<128x128xf32>
    %7 = arith.addf %3, %6 : vector<128x128xf32>
    %c0_6 = arith.constant 0 : index
    %c0_7 = arith.constant 0 : index
    %8 = vector.load %arg6[%c0_6, %c0_7] : memref<128x128xf32, #tpu.memory_space<vmem>>, vector<128x128xf32>
    tpu.vector_store %arg6[%c0_6, %c0_7], %7 {strides = array<i32>} : memref<128x128xf32, #tpu.memory_space<vmem>>, vector<128x128xf32>,
    %c0_i32_8 = arith.constant 0 : i32
    %9 = arith.cmpi eq, %arg1, %c0_i32_8 : i32
    %10 = arith.extui %9 : i1 to i32
    %c0_i32_9 = arith.constant 0 : i32
    %11 = arith.cmpi ne, %10, %c0_i32_9 : i32
    scf.if %11 {
      %c0_10 = arith.constant 0 : index
      %c0_11 = arith.constant 0 : index
      %12 = vector.load %arg6[%c0_10, %c0_11] : memref<128x128xf32, #tpu.memory_space<vmem>>, vector<128x128xf32>
      %c0_12 = arith.constant 0 : index
      %c0_13 = arith.constant 0 : index
      %13 = vector.load %arg4[%c0_12, %c0_13] : memref<1x128xf32, #tpu.memory_space<vmem>>, vector<1x128xf32>
      %14 = vector.broadcast %13 : vector<1x128xf32> to vector<128x128xf32>
      %15 = arith.addf %12, %14 : vector<128x128xf32>
      %cst_14 = arith.constant 0.000000e+00 : f32
      %16 = vector.broadcast %cst_14 : f32 to vector<128x128xf32>
      %17 = arith.maximumf %15, %16 : vector<128x128xf32>
      %18 = arith.truncf %17 : vector<128x128xf32> to vector<128x128xbf16>
      %c0_15 = arith.constant 0 : index
      %c0_16 = arith.constant 0 : index
      %19 = vector.load %arg5[%c0_15, %c0_16] : memref<128x128xbf16, #tpu.memory_space<vmem>>, vector<128x128xbf16>
      tpu.vector_store %arg5[%c0_15, %c0_16], %18 {strides = array<i32>} : memref<128x128xbf16, #tpu.memory_space<vmem>>, vector<128x128xbf16>,
    } else {
    }
    return
  }
  func.func @transform_0(%arg0: i32, %arg1: i32) -> (i32, i32) {
    %c0_i32 = arith.constant 0 : i32
    return %arg0, %arg1 : i32, i32
  }
  func.func @transform_1(%arg0: i32, %arg1: i32) -> (i32, i32) {
    %c0_i32 = arith.constant 0 : i32
    %c0_i32_0 = arith.constant 0 : i32
    return %arg1, %c0_i32 : i32, i32
  }
  func.func @transform_2(%arg0: i32, %arg1: i32) -> (i32, i32) {
    %c0_i32 = arith.constant 0 : i32
    %c0_i32_0 = arith.constant 0 : i32
    %c0_i32_1 = arith.constant 0 : i32
    return %c0_i32, %c0_i32_0 : i32, i32
  }
  func.func @transform_3(%arg0: i32, %arg1: i32) -> (i32, i32) {
    %c0_i32 = arith.constant 0 : i32
    %c0_i32_0 = arith.constant 0 : i32
    return %arg0, %c0_i32 : i32, i32
  }
}

module attributes {stable_mosaic.version = 11 : i64} {
  func.func @_conv_mm_kernel(%arg0: i32, %arg1: i32, %arg2: memref<128x640xbf16, #tpu.memory_space<vmem>>, %arg3: memref<640x128xbf16, #tpu.memory_space<vmem>>, %arg4: memref<1x128xf32, #tpu.memory_space<vmem>>, %arg5: memref<128x128xbf16, #tpu.memory_space<vmem>>, %arg6: memref<128x128xf32, #tpu.memory_space<vmem>>) attributes {dimension_semantics = [#tpu.dimension_semantics<parallel>, #tpu.dimension_semantics<arbitrary>], iteration_bounds = array<i64: 1, 1>, scalar_prefetch = 0 : i64, scratch_operands = 1 : i64, tpu.core_type = #tpu.core_type<tc>, window_params = [{transform_indices = @transform_0, window_bounds = array<i64: 128, 640>}, {transform_indices = @transform_1, window_bounds = array<i64: 640, 128>}, {pipeline_mode = #tpu.pipeline_mode<synchronous>, transform_indices = @transform_2, window_bounds = array<i64: 1, 128>}, {transform_indices = @transform_3, window_bounds = array<i64: 128, 128>}]} {
    %c0_i32 = arith.constant 0 : i32
    %0 = arith.cmpi eq, %arg1, %c0_i32 : i32
    %1 = arith.extui %0 : i1 to i32
    %c0_i32_0 = arith.constant 0 : i32
    %2 = arith.cmpi ne, %1, %c0_i32_0 : i32
    scf.if %2 {
      %cst_10 = arith.constant 0.000000e+00 : f32
      %12 = vector.broadcast %cst_10 : f32 to vector<128x128xf32>
      %c0_11 = arith.constant 0 : index
      %c0_12 = arith.constant 0 : index
      %13 = vector.load %arg6[%c0_11, %c0_12] : memref<128x128xf32, #tpu.memory_space<vmem>>, vector<128x128xf32>
      tpu.vector_store %arg6[%c0_11, %c0_12], %12 {strides = array<i32>} : memref<128x128xf32, #tpu.memory_space<vmem>>, vector<128x128xf32>,
    } else {
    }
    %c0 = arith.constant 0 : index
    %c0_1 = arith.constant 0 : index
    %3 = vector.load %arg6[%c0, %c0_1] : memref<128x128xf32, #tpu.memory_space<vmem>>, vector<128x128xf32>
    %c0_2 = arith.constant 0 : index
    %c0_3 = arith.constant 0 : index
    %4 = vector.load %arg2[%c0_2, %c0_3] : memref<128x640xbf16, #tpu.memory_space<vmem>>, vector<128x640xbf16>
    %c0_4 = arith.constant 0 : index
    %c0_5 = arith.constant 0 : index
    %5 = vector.load %arg3[%c0_4, %c0_5] : memref<640x128xbf16, #tpu.memory_space<vmem>>, vector<640x128xbf16>
    %cst = arith.constant dense<0.000000e+00> : vector<128x128xf32>
    %6 = tpu.matmul %4, %5, %cst {dimension_numbers = #tpu.dot_dimension_numbers<[1], [0], [0], [1], [0, 0, 1, 1], [], []>} : vector<128x640xbf16>, vector<640x128xbf16>, vector<128x128xf32> -> vector<128x128xf32>
    %7 = arith.addf %3, %6 : vector<128x128xf32>
    %c0_6 = arith.constant 0 : index
    %c0_7 = arith.constant 0 : index
    %8 = vector.load %arg6[%c0_6, %c0_7] : memref<128x128xf32, #tpu.memory_space<vmem>>, vector<128x128xf32>
    tpu.vector_store %arg6[%c0_6, %c0_7], %7 {strides = array<i32>} : memref<128x128xf32, #tpu.memory_space<vmem>>, vector<128x128xf32>,
    %c0_i32_8 = arith.constant 0 : i32
    %9 = arith.cmpi eq, %arg1, %c0_i32_8 : i32
    %10 = arith.extui %9 : i1 to i32
    %c0_i32_9 = arith.constant 0 : i32
    %11 = arith.cmpi ne, %10, %c0_i32_9 : i32
    scf.if %11 {
      %c0_10 = arith.constant 0 : index
      %c0_11 = arith.constant 0 : index
      %12 = vector.load %arg6[%c0_10, %c0_11] : memref<128x128xf32, #tpu.memory_space<vmem>>, vector<128x128xf32>
      %c0_12 = arith.constant 0 : index
      %c0_13 = arith.constant 0 : index
      %13 = vector.load %arg4[%c0_12, %c0_13] : memref<1x128xf32, #tpu.memory_space<vmem>>, vector<1x128xf32>
      %14 = vector.broadcast %13 : vector<1x128xf32> to vector<128x128xf32>
      %15 = arith.addf %12, %14 : vector<128x128xf32>
      %cst_14 = arith.constant 0.000000e+00 : f32
      %16 = vector.broadcast %cst_14 : f32 to vector<128x128xf32>
      %17 = arith.maximumf %15, %16 : vector<128x128xf32>
      %18 = arith.truncf %17 : vector<128x128xf32> to vector<128x128xbf16>
      %c0_15 = arith.constant 0 : index
      %c0_16 = arith.constant 0 : index
      %19 = vector.load %arg5[%c0_15, %c0_16] : memref<128x128xbf16, #tpu.memory_space<vmem>>, vector<128x128xbf16>
      tpu.vector_store %arg5[%c0_15, %c0_16], %18 {strides = array<i32>} : memref<128x128xbf16, #tpu.memory_space<vmem>>, vector<128x128xbf16>,
    } else {
    }
    return
  }
  func.func @transform_0(%arg0: i32, %arg1: i32) -> (i32, i32) {
    %c0_i32 = arith.constant 0 : i32
    return %arg0, %arg1 : i32, i32
  }
  func.func @transform_1(%arg0: i32, %arg1: i32) -> (i32, i32) {
    %c0_i32 = arith.constant 0 : i32
    %c0_i32_0 = arith.constant 0 : i32
    return %arg1, %c0_i32 : i32, i32
  }
  func.func @transform_2(%arg0: i32, %arg1: i32) -> (i32, i32) {
    %c0_i32 = arith.constant 0 : i32
    %c0_i32_0 = arith.constant 0 : i32
    %c0_i32_1 = arith.constant 0 : i32
    return %c0_i32, %c0_i32_0 : i32, i32
  }
  func.func @transform_3(%arg0: i32, %arg1: i32) -> (i32, i32) {
    %c0_i32 = arith.constant 0 : i32
    %c0_i32_0 = arith.constant 0 : i32
    return %arg0, %c0_i32 : i32, i32
  }
}

module attributes {stable_mosaic.version = 11 : i64} {
  func.func @_conv_mm_kernel(%arg0: i32, %arg1: i32, %arg2: memref<128x384xbf16, #tpu.memory_space<vmem>>, %arg3: memref<384x128xbf16, #tpu.memory_space<vmem>>, %arg4: memref<1x128xf32, #tpu.memory_space<vmem>>, %arg5: memref<128x128xbf16, #tpu.memory_space<vmem>>, %arg6: memref<128x128xf32, #tpu.memory_space<vmem>>) attributes {dimension_semantics = [#tpu.dimension_semantics<parallel>, #tpu.dimension_semantics<arbitrary>], iteration_bounds = array<i64: 1, 1>, scalar_prefetch = 0 : i64, scratch_operands = 1 : i64, tpu.core_type = #tpu.core_type<tc>, window_params = [{transform_indices = @transform_0, window_bounds = array<i64: 128, 384>}, {transform_indices = @transform_1, window_bounds = array<i64: 384, 128>}, {pipeline_mode = #tpu.pipeline_mode<synchronous>, transform_indices = @transform_2, window_bounds = array<i64: 1, 128>}, {transform_indices = @transform_3, window_bounds = array<i64: 128, 128>}]} {
    %c0_i32 = arith.constant 0 : i32
    %0 = arith.cmpi eq, %arg1, %c0_i32 : i32
    %1 = arith.extui %0 : i1 to i32
    %c0_i32_0 = arith.constant 0 : i32
    %2 = arith.cmpi ne, %1, %c0_i32_0 : i32
    scf.if %2 {
      %cst_10 = arith.constant 0.000000e+00 : f32
      %12 = vector.broadcast %cst_10 : f32 to vector<128x128xf32>
      %c0_11 = arith.constant 0 : index
      %c0_12 = arith.constant 0 : index
      %13 = vector.load %arg6[%c0_11, %c0_12] : memref<128x128xf32, #tpu.memory_space<vmem>>, vector<128x128xf32>
      tpu.vector_store %arg6[%c0_11, %c0_12], %12 {strides = array<i32>} : memref<128x128xf32, #tpu.memory_space<vmem>>, vector<128x128xf32>,
    } else {
    }
    %c0 = arith.constant 0 : index
    %c0_1 = arith.constant 0 : index
    %3 = vector.load %arg6[%c0, %c0_1] : memref<128x128xf32, #tpu.memory_space<vmem>>, vector<128x128xf32>
    %c0_2 = arith.constant 0 : index
    %c0_3 = arith.constant 0 : index
    %4 = vector.load %arg2[%c0_2, %c0_3] : memref<128x384xbf16, #tpu.memory_space<vmem>>, vector<128x384xbf16>
    %c0_4 = arith.constant 0 : index
    %c0_5 = arith.constant 0 : index
    %5 = vector.load %arg3[%c0_4, %c0_5] : memref<384x128xbf16, #tpu.memory_space<vmem>>, vector<384x128xbf16>
    %cst = arith.constant dense<0.000000e+00> : vector<128x128xf32>
    %6 = tpu.matmul %4, %5, %cst {dimension_numbers = #tpu.dot_dimension_numbers<[1], [0], [0], [1], [0, 0, 1, 1], [], []>} : vector<128x384xbf16>, vector<384x128xbf16>, vector<128x128xf32> -> vector<128x128xf32>
    %7 = arith.addf %3, %6 : vector<128x128xf32>
    %c0_6 = arith.constant 0 : index
    %c0_7 = arith.constant 0 : index
    %8 = vector.load %arg6[%c0_6, %c0_7] : memref<128x128xf32, #tpu.memory_space<vmem>>, vector<128x128xf32>
    tpu.vector_store %arg6[%c0_6, %c0_7], %7 {strides = array<i32>} : memref<128x128xf32, #tpu.memory_space<vmem>>, vector<128x128xf32>,
    %c0_i32_8 = arith.constant 0 : i32
    %9 = arith.cmpi eq, %arg1, %c0_i32_8 : i32
    %10 = arith.extui %9 : i1 to i32
    %c0_i32_9 = arith.constant 0 : i32
    %11 = arith.cmpi ne, %10, %c0_i32_9 : i32
    scf.if %11 {
      %c0_10 = arith.constant 0 : index
      %c0_11 = arith.constant 0 : index
      %12 = vector.load %arg6[%c0_10, %c0_11] : memref<128x128xf32, #tpu.memory_space<vmem>>, vector<128x128xf32>
      %c0_12 = arith.constant 0 : index
      %c0_13 = arith.constant 0 : index
      %13 = vector.load %arg4[%c0_12, %c0_13] : memref<1x128xf32, #tpu.memory_space<vmem>>, vector<1x128xf32>
      %14 = vector.broadcast %13 : vector<1x128xf32> to vector<128x128xf32>
      %15 = arith.addf %12, %14 : vector<128x128xf32>
      %cst_14 = arith.constant 0.000000e+00 : f32
      %16 = vector.broadcast %cst_14 : f32 to vector<128x128xf32>
      %17 = arith.maximumf %15, %16 : vector<128x128xf32>
      %18 = arith.truncf %17 : vector<128x128xf32> to vector<128x128xbf16>
      %c0_15 = arith.constant 0 : index
      %c0_16 = arith.constant 0 : index
      %19 = vector.load %arg5[%c0_15, %c0_16] : memref<128x128xbf16, #tpu.memory_space<vmem>>, vector<128x128xbf16>
      tpu.vector_store %arg5[%c0_15, %c0_16], %18 {strides = array<i32>} : memref<128x128xbf16, #tpu.memory_space<vmem>>, vector<128x128xbf16>,
    } else {
    }
    return
  }
  func.func @transform_0(%arg0: i32, %arg1: i32) -> (i32, i32) {
    %c0_i32 = arith.constant 0 : i32
    return %arg0, %arg1 : i32, i32
  }
  func.func @transform_1(%arg0: i32, %arg1: i32) -> (i32, i32) {
    %c0_i32 = arith.constant 0 : i32
    %c0_i32_0 = arith.constant 0 : i32
    return %arg1, %c0_i32 : i32, i32
  }
  func.func @transform_2(%arg0: i32, %arg1: i32) -> (i32, i32) {
    %c0_i32 = arith.constant 0 : i32
    %c0_i32_0 = arith.constant 0 : i32
    %c0_i32_1 = arith.constant 0 : i32
    return %c0_i32, %c0_i32_0 : i32, i32
  }
  func.func @transform_3(%arg0: i32, %arg1: i32) -> (i32, i32) {
    %c0_i32 = arith.constant 0 : i32
    %c0_i32_0 = arith.constant 0 : i32
    return %arg0, %c0_i32 : i32, i32
  }
}

module attributes {stable_mosaic.version = 11 : i64} {
  func.func @_conv_mm_kernel(%arg0: i32, %arg1: i32, %arg2: memref<256x384xbf16, #tpu.memory_space<vmem>>, %arg3: memref<384x128xbf16, #tpu.memory_space<vmem>>, %arg4: memref<1x128xf32, #tpu.memory_space<vmem>>, %arg5: memref<256x128xbf16, #tpu.memory_space<vmem>>, %arg6: memref<256x128xf32, #tpu.memory_space<vmem>>) attributes {dimension_semantics = [#tpu.dimension_semantics<parallel>, #tpu.dimension_semantics<arbitrary>], iteration_bounds = array<i64: 2, 1>, scalar_prefetch = 0 : i64, scratch_operands = 1 : i64, tpu.core_type = #tpu.core_type<tc>, window_params = [{transform_indices = @transform_0, window_bounds = array<i64: 256, 384>}, {transform_indices = @transform_1, window_bounds = array<i64: 384, 128>}, {pipeline_mode = #tpu.pipeline_mode<synchronous>, transform_indices = @transform_2, window_bounds = array<i64: 1, 128>}, {transform_indices = @transform_3, window_bounds = array<i64: 256, 128>}]} {
    %c0_i32 = arith.constant 0 : i32
    %0 = arith.cmpi eq, %arg1, %c0_i32 : i32
    %1 = arith.extui %0 : i1 to i32
    %c0_i32_0 = arith.constant 0 : i32
    %2 = arith.cmpi ne, %1, %c0_i32_0 : i32
    scf.if %2 {
      %cst_10 = arith.constant 0.000000e+00 : f32
      %12 = vector.broadcast %cst_10 : f32 to vector<256x128xf32>
      %c0_11 = arith.constant 0 : index
      %c0_12 = arith.constant 0 : index
      %13 = vector.load %arg6[%c0_11, %c0_12] : memref<256x128xf32, #tpu.memory_space<vmem>>, vector<256x128xf32>
      tpu.vector_store %arg6[%c0_11, %c0_12], %12 {strides = array<i32>} : memref<256x128xf32, #tpu.memory_space<vmem>>, vector<256x128xf32>,
    } else {
    }
    %c0 = arith.constant 0 : index
    %c0_1 = arith.constant 0 : index
    %3 = vector.load %arg6[%c0, %c0_1] : memref<256x128xf32, #tpu.memory_space<vmem>>, vector<256x128xf32>
    %c0_2 = arith.constant 0 : index
    %c0_3 = arith.constant 0 : index
    %4 = vector.load %arg2[%c0_2, %c0_3] : memref<256x384xbf16, #tpu.memory_space<vmem>>, vector<256x384xbf16>
    %c0_4 = arith.constant 0 : index
    %c0_5 = arith.constant 0 : index
    %5 = vector.load %arg3[%c0_4, %c0_5] : memref<384x128xbf16, #tpu.memory_space<vmem>>, vector<384x128xbf16>
    %cst = arith.constant dense<0.000000e+00> : vector<256x128xf32>
    %6 = tpu.matmul %4, %5, %cst {dimension_numbers = #tpu.dot_dimension_numbers<[1], [0], [0], [1], [0, 0, 1, 1], [], []>} : vector<256x384xbf16>, vector<384x128xbf16>, vector<256x128xf32> -> vector<256x128xf32>
    %7 = arith.addf %3, %6 : vector<256x128xf32>
    %c0_6 = arith.constant 0 : index
    %c0_7 = arith.constant 0 : index
    %8 = vector.load %arg6[%c0_6, %c0_7] : memref<256x128xf32, #tpu.memory_space<vmem>>, vector<256x128xf32>
    tpu.vector_store %arg6[%c0_6, %c0_7], %7 {strides = array<i32>} : memref<256x128xf32, #tpu.memory_space<vmem>>, vector<256x128xf32>,
    %c0_i32_8 = arith.constant 0 : i32
    %9 = arith.cmpi eq, %arg1, %c0_i32_8 : i32
    %10 = arith.extui %9 : i1 to i32
    %c0_i32_9 = arith.constant 0 : i32
    %11 = arith.cmpi ne, %10, %c0_i32_9 : i32
    scf.if %11 {
      %c0_10 = arith.constant 0 : index
      %c0_11 = arith.constant 0 : index
      %12 = vector.load %arg6[%c0_10, %c0_11] : memref<256x128xf32, #tpu.memory_space<vmem>>, vector<256x128xf32>
      %c0_12 = arith.constant 0 : index
      %c0_13 = arith.constant 0 : index
      %13 = vector.load %arg4[%c0_12, %c0_13] : memref<1x128xf32, #tpu.memory_space<vmem>>, vector<1x128xf32>
      %14 = vector.broadcast %13 : vector<1x128xf32> to vector<256x128xf32>
      %15 = arith.addf %12, %14 : vector<256x128xf32>
      %cst_14 = arith.constant 0.000000e+00 : f32
      %16 = vector.broadcast %cst_14 : f32 to vector<256x128xf32>
      %17 = arith.maximumf %15, %16 : vector<256x128xf32>
      %18 = arith.truncf %17 : vector<256x128xf32> to vector<256x128xbf16>
      %c0_15 = arith.constant 0 : index
      %c0_16 = arith.constant 0 : index
      %19 = vector.load %arg5[%c0_15, %c0_16] : memref<256x128xbf16, #tpu.memory_space<vmem>>, vector<256x128xbf16>
      tpu.vector_store %arg5[%c0_15, %c0_16], %18 {strides = array<i32>} : memref<256x128xbf16, #tpu.memory_space<vmem>>, vector<256x128xbf16>,
    } else {
    }
    return
  }
  func.func @transform_0(%arg0: i32, %arg1: i32) -> (i32, i32) {
    %c0_i32 = arith.constant 0 : i32
    return %arg0, %arg1 : i32, i32
  }
  func.func @transform_1(%arg0: i32, %arg1: i32) -> (i32, i32) {
    %c0_i32 = arith.constant 0 : i32
    %c0_i32_0 = arith.constant 0 : i32
    return %arg1, %c0_i32 : i32, i32
  }
  func.func @transform_2(%arg0: i32, %arg1: i32) -> (i32, i32) {
    %c0_i32 = arith.constant 0 : i32
    %c0_i32_0 = arith.constant 0 : i32
    %c0_i32_1 = arith.constant 0 : i32
    return %c0_i32, %c0_i32_0 : i32, i32
  }
  func.func @transform_3(%arg0: i32, %arg1: i32) -> (i32, i32) {
    %c0_i32 = arith.constant 0 : i32
    %c0_i32_0 = arith.constant 0 : i32
    return %arg0, %c0_i32 : i32, i32
  }
}

module attributes {stable_mosaic.version = 11 : i64} {
  func.func @_conv_mm_kernel(%arg0: i32, %arg1: i32, %arg2: memref<256x256xbf16, #tpu.memory_space<vmem>>, %arg3: memref<256x128xbf16, #tpu.memory_space<vmem>>, %arg4: memref<1x128xf32, #tpu.memory_space<vmem>>, %arg5: memref<256x128xf32, #tpu.memory_space<vmem>>, %arg6: memref<256x128xf32, #tpu.memory_space<vmem>>) attributes {dimension_semantics = [#tpu.dimension_semantics<parallel>, #tpu.dimension_semantics<arbitrary>], iteration_bounds = array<i64: 2, 1>, scalar_prefetch = 0 : i64, scratch_operands = 1 : i64, tpu.core_type = #tpu.core_type<tc>, window_params = [{transform_indices = @transform_0, window_bounds = array<i64: 256, 256>}, {transform_indices = @transform_1, window_bounds = array<i64: 256, 128>}, {pipeline_mode = #tpu.pipeline_mode<synchronous>, transform_indices = @transform_2, window_bounds = array<i64: 1, 128>}, {transform_indices = @transform_3, window_bounds = array<i64: 256, 128>}]} {
    %c0_i32 = arith.constant 0 : i32
    %0 = arith.cmpi eq, %arg1, %c0_i32 : i32
    %1 = arith.extui %0 : i1 to i32
    %c0_i32_0 = arith.constant 0 : i32
    %2 = arith.cmpi ne, %1, %c0_i32_0 : i32
    scf.if %2 {
      %cst_10 = arith.constant 0.000000e+00 : f32
      %12 = vector.broadcast %cst_10 : f32 to vector<256x128xf32>
      %c0_11 = arith.constant 0 : index
      %c0_12 = arith.constant 0 : index
      %13 = vector.load %arg6[%c0_11, %c0_12] : memref<256x128xf32, #tpu.memory_space<vmem>>, vector<256x128xf32>
      tpu.vector_store %arg6[%c0_11, %c0_12], %12 {strides = array<i32>} : memref<256x128xf32, #tpu.memory_space<vmem>>, vector<256x128xf32>,
    } else {
    }
    %c0 = arith.constant 0 : index
    %c0_1 = arith.constant 0 : index
    %3 = vector.load %arg6[%c0, %c0_1] : memref<256x128xf32, #tpu.memory_space<vmem>>, vector<256x128xf32>
    %c0_2 = arith.constant 0 : index
    %c0_3 = arith.constant 0 : index
    %4 = vector.load %arg2[%c0_2, %c0_3] : memref<256x256xbf16, #tpu.memory_space<vmem>>, vector<256x256xbf16>
    %c0_4 = arith.constant 0 : index
    %c0_5 = arith.constant 0 : index
    %5 = vector.load %arg3[%c0_4, %c0_5] : memref<256x128xbf16, #tpu.memory_space<vmem>>, vector<256x128xbf16>
    %cst = arith.constant dense<0.000000e+00> : vector<256x128xf32>
    %6 = tpu.matmul %4, %5, %cst {dimension_numbers = #tpu.dot_dimension_numbers<[1], [0], [0], [1], [0, 0, 1, 1], [], []>} : vector<256x256xbf16>, vector<256x128xbf16>, vector<256x128xf32> -> vector<256x128xf32>
    %7 = arith.addf %3, %6 : vector<256x128xf32>
    %c0_6 = arith.constant 0 : index
    %c0_7 = arith.constant 0 : index
    %8 = vector.load %arg6[%c0_6, %c0_7] : memref<256x128xf32, #tpu.memory_space<vmem>>, vector<256x128xf32>
    tpu.vector_store %arg6[%c0_6, %c0_7], %7 {strides = array<i32>} : memref<256x128xf32, #tpu.memory_space<vmem>>, vector<256x128xf32>,
    %c0_i32_8 = arith.constant 0 : i32
    %9 = arith.cmpi eq, %arg1, %c0_i32_8 : i32
    %10 = arith.extui %9 : i1 to i32
    %c0_i32_9 = arith.constant 0 : i32
    %11 = arith.cmpi ne, %10, %c0_i32_9 : i32
    scf.if %11 {
      %c0_10 = arith.constant 0 : index
      %c0_11 = arith.constant 0 : index
      %12 = vector.load %arg6[%c0_10, %c0_11] : memref<256x128xf32, #tpu.memory_space<vmem>>, vector<256x128xf32>
      %c0_12 = arith.constant 0 : index
      %c0_13 = arith.constant 0 : index
      %13 = vector.load %arg4[%c0_12, %c0_13] : memref<1x128xf32, #tpu.memory_space<vmem>>, vector<1x128xf32>
      %14 = vector.broadcast %13 : vector<1x128xf32> to vector<256x128xf32>
      %15 = arith.addf %12, %14 : vector<256x128xf32>
      %16 = math.tanh %15 : vector<256x128xf32>
      %cst_14 = arith.constant 5.000000e-01 : f32
      %17 = vector.broadcast %cst_14 : f32 to vector<256x128xf32>
      %18 = arith.mulf %16, %17 : vector<256x128xf32>
      %cst_15 = arith.constant 5.000000e-01 : f32
      %19 = vector.broadcast %cst_15 : f32 to vector<256x128xf32>
      %20 = arith.addf %18, %19 : vector<256x128xf32>
      %c0_16 = arith.constant 0 : index
      %c0_17 = arith.constant 0 : index
      %21 = vector.load %arg5[%c0_16, %c0_17] : memref<256x128xf32, #tpu.memory_space<vmem>>, vector<256x128xf32>
      tpu.vector_store %arg5[%c0_16, %c0_17], %20 {strides = array<i32>} : memref<256x128xf32, #tpu.memory_space<vmem>>, vector<256x128xf32>,
    } else {
    }
    return
  }
  func.func @transform_0(%arg0: i32, %arg1: i32) -> (i32, i32) {
    %c0_i32 = arith.constant 0 : i32
    return %arg0, %arg1 : i32, i32
  }
  func.func @transform_1(%arg0: i32, %arg1: i32) -> (i32, i32) {
    %c0_i32 = arith.constant 0 : i32
    %c0_i32_0 = arith.constant 0 : i32
    return %arg1, %c0_i32 : i32, i32
  }
  func.func @transform_2(%arg0: i32, %arg1: i32) -> (i32, i32) {
    %c0_i32 = arith.constant 0 : i32
    %c0_i32_0 = arith.constant 0 : i32
    %c0_i32_1 = arith.constant 0 : i32
    return %c0_i32, %c0_i32_0 : i32, i32
  }
  func.func @transform_3(%arg0: i32, %arg1: i32) -> (i32, i32) {
    %c0_i32 = arith.constant 0 : i32
    %c0_i32_0 = arith.constant 0 : i32
    return %arg0, %c0_i32 : i32, i32
  }
}

</mosaic_0001>

<bundles_post_ra>
// kernel: ds_hide_forward.8
= control target key start
LH: loop header
LB: loop body
LE: loop exit
PB: predicated region body
PF: predicated region fallthrough
CT: control target
= control target key end

     0   :  { %s1202_s12 = smov 0   ;;  %s1204_s13 = smov 0   ;;  %s1342_s0 = inlined_call_operand.vmem [shape: bf16[1024,128], index: 0, kind: input, shape index: {}]   ;;  %s1343_s1 = inlined_call_operand.vmem [shape: bf16[128,128], index: 1, kind: input, shape index: {}]   ;;  %s1344_s2 = inlined_call_operand.vmem [shape: f32[1,128], index: 2, kind: input, shape index: {}]   ;;  %s1345_s3 = inlined_call_operand.vmem [shape: bf16[1024,128], index: 3, kind: output, shape index: {}]  }
   0x1   :  { %s1206_s14 = smov 0  }
   0x2 LB: > { %s25_s15 = sadd.s32 1, %s1176_s13  ;;  %p887_p0 = scmp.ge.s32.totalorder %s1180_s14, 1  ;;  %s1180_s14 = sphi %s1206_s14, %s13_s14   ;;  %s1176_s13 = sphi %s1204_s13, %s1347_s13   ;;  %s1172_s12 = sphi %s1202_s12, %s1346_s12  }
   0x3   : > { %p27_p1 = scmp.ge.s32.totalorder %s25_s15, 4  ;;  %p166_p2 = scmp.lt.s32.totalorder %s1180_s14, 5 }
   0x5   : > { %s1349_s15 = smov (%p27_p1, %s25_s15), 0  ;;  %p167_p3 = pnand %p887_p0, %p166_p2 }
   0x6   : > { %s888_s24 = sshll.u32 (!%p167_p3), %s1172_s12, 5 }
   0x7   : > { %170 = sbr.rel (%p167_p3) target bundleno = 241 (0xf1), region = 32  ;;  %p199_p4 = scmp.lt.s32.totalorder (!%p167_p3), %s888_s24, 127 }
   0xc   : > { %v1013_v0 = vld [vmem:[%s1343_s1 + $0x38] sm:$0xff]  ;;  %v1012_v1 = vld [vmem:[%s1343_s1 + $0x30] sm:$0xff]  ;;  %v1011_v2 = vld [vmem:[%s1343_s1 + $0x28] sm:$0xff]  ;;  %s1351_s24 = smov (!%p199_p4, %s888_s24), 127 }
   0xd   : > { %479 = vmatpush.bf16.msra.mxu0 %v1013_v0  ;;  %1109 = vmatpush.bf16.msra.mxu1 %v1013_v0  ;;  %v1010_v3 = vld [vmem:[%s1343_s1 + $0x20] sm:$0xff]  ;;  %v1009_v4 = vld [vmem:[%s1343_s1 + $0x18] sm:$0xff]  ;;  %v1008_v5 = vld [vmem:[%s1343_s1 + $0x10] sm:$0xff]  ;;  %s889_s4 = sshll.u32 %s1351_s24, 2 }
   0xe   : > { %1110 = vmatpush.bf16.msra.mxu2 %v1013_v0  ;;  %1111 = vmatpush.bf16.msra.mxu3 %v1013_v0  ;;  %v1007_v6 = vld [vmem:[%s1343_s1 + $0x8] sm:$0xff]  ;;  %v1006_v7 = vld [vmem:[%s1343_s1] sm:$0xff]  ;;  %s1255_s9 = scalar_lea.vmem %s1342_s0, %s889_s4  ;;  %s1287_s17 = scalar_lea.vmem %s1345_s3, %s889_s4 }
   0xf   : > { %v990_v8 = vld [vmem:[%s1255_s9] sm:$0xff]  ;;  %v991_v12 = vld [vmem:[%s1255_s9 + $0x8] sm:$0xff]  ;;  %v992_v16 = vld [vmem:[%s1255_s9 + $0x10] sm:$0xff] }
  0x10   : > { %v994_v9 = vld [vmem:[%s1255_s9 + $0x20] sm:$0xff]  ;;  %v995_v13 = vld [vmem:[%s1255_s9 + $0x28] sm:$0xff]  ;;  %v996_v17 = vld [vmem:[%s1255_s9 + $0x30] sm:$0xff] }
  0x11   : > { %480 = vmatpush.bf16.msra.mxu0 %v1012_v1  ;;  %1112 = vmatpush.bf16.msra.mxu1 %v1012_v1  ;;  %v998_v10 = vld [vmem:[%s1255_s9 + $0x40] sm:$0xff]  ;;  %v999_v14 = vld [vmem:[%s1255_s9 + $0x48] sm:$0xff]  ;;  %v1000_v18 = vld [vmem:[%s1255_s9 + $0x50] sm:$0xff] }
  0x12   : > { %1113 = vmatpush.bf16.msra.mxu2 %v1012_v1  ;;  %1114 = vmatpush.bf16.msra.mxu3 %v1012_v1  ;;  %v1002_v11 = vld [vmem:[%s1255_s9 + $0x60] sm:$0xff]  ;;  %v1003_v15 = vld [vmem:[%s1255_s9 + $0x68] sm:$0xff]  ;;  %v1004_v19 = vld [vmem:[%s1255_s9 + $0x70] sm:$0xff] }
  0x13   : > { %v993_v20 = vld [vmem:[%s1255_s9 + $0x18] sm:$0xff]  ;;  %v1276_v26 = vld [vmem:[%s1344_s2] ss:$0 sm:$0xff] }
  0x14   : > { %v997_v21 = vld [vmem:[%s1255_s9 + $0x38] sm:$0xff] }
  0x15   : > { %481 = vmatpush.bf16.msra.mxu0 %v1011_v2  ;;  %1115 = vmatpush.bf16.msra.mxu1 %v1011_v2  ;;  %v1001_v22 = vld [vmem:[%s1255_s9 + $0x58] sm:$0xff] }
  0x16   : > { %1116 = vmatpush.bf16.msra.mxu2 %v1011_v2  ;;  %1117 = vmatpush.bf16.msra.mxu3 %v1011_v2  ;;  %v1005_v23 = vld [vmem:[%s1255_s9 + $0x78] sm:$0xff] }
  0x19   : > { %482 = vmatpush.bf16.msra.mxu0 %v1010_v3  ;;  %1118 = vmatpush.bf16.msra.mxu1 %v1010_v3 }
  0x1a   : > { %1119 = vmatpush.bf16.msra.mxu2 %v1010_v3  ;;  %1120 = vmatpush.bf16.msra.mxu3 %v1010_v3 }
  0x1d   : > { %483 = vmatpush.bf16.msra.mxu0 %v1009_v4  ;;  %1121 = vmatpush.bf16.msra.mxu1 %v1009_v4 }
  0x1e   : > { %1122 = vmatpush.bf16.msra.mxu2 %v1009_v4  ;;  %1123 = vmatpush.bf16.msra.mxu3 %v1009_v4 }
  0x21   : > { %484 = vmatpush.bf16.msra.mxu0 %v1008_v5  ;;  %1124 = vmatpush.bf16.msra.mxu1 %v1008_v5 }
  0x22   : > { %1125 = vmatpush.bf16.msra.mxu2 %v1008_v5  ;;  %1126 = vmatpush.bf16.msra.mxu3 %v1008_v5 }
  0x25   : > { %485 = vmatpush.bf16.msra.mxu0 %v1007_v6  ;;  %1127 = vmatpush.bf16.msra.mxu1 %v1007_v6 }
  0x26   : > { %1128 = vmatpush.bf16.msra.mxu2 %v1007_v6  ;;  %1129 = vmatpush.bf16.msra.mxu3 %v1007_v6 }
  0x29   : > { %486 = vmatpush.bf16.msra.mxu0 %v1006_v7  ;;  %1130 = vmatpush.bf16.msra.mxu1 %v1006_v7 }
  0x2a   : > { %1131 = vmatpush.bf16.msra.mxu2 %v1006_v7  ;;  %1132 = vmatpush.bf16.msra.mxu3 %v1006_v7 }
  0x2c   : > { %487 = vmatmul.bf16.vlgmr.msra.gmra.mxu0 %v990_v8  ;;  %507 = vmatmul.bf16.vlgmr.msra.gmra.mxu1 %v994_v9 }
  0x2d   : > { %527 = vmatmul.bf16.vlgmr.msra.gmra.mxu2 %v998_v10  ;;  %547 = vmatmul.bf16.vlgmr.msra.gmra.mxu3 %v1002_v11 }
  0x3c   : > { %492 = vmatmul.bf16.gmra.mxu0 %v991_v12  ;;  %512 = vmatmul.bf16.gmra.mxu1 %v995_v13 }
  0x3d   : > { %532 = vmatmul.bf16.gmra.mxu2 %v999_v14  ;;  %552 = vmatmul.bf16.gmra.mxu3 %v1003_v15 }
  0x4c   : > { %497 = vmatmul.bf16.gmra.mxu0 %v992_v16  ;;  %517 = vmatmul.bf16.gmra.mxu1 %v996_v17 }
  0x4d   : > { %537 = vmatmul.bf16.gmra.mxu2 %v1000_v18  ;;  %557 = vmatmul.bf16.gmra.mxu3 %v1004_v19 }
  0x5c   : > { %502 = vmatmul.bf16.gmra.mxu0 %v993_v20  ;;  %522 = vmatmul.bf16.gmra.mxu1 %v997_v21 }
  0x5d   : > { %542 = vmatmul.bf16.gmra.mxu2 %v1001_v22  ;;  %562 = vmatmul.bf16.gmra.mxu3 %v1005_v23 }
  0xa9   : > { %v488_v24 = vpop.f32.mrf.mxu0  ;;  %v508_v25 = vpop.f32.mrf.mxu1 }
  0xaa   : > { %v671_v27 = vadd.f32 %v1276_v26, %v488_v24  ;;  %v679_v28 = vadd.f32 %v1276_v26, %v508_v25 }
  0xac   : > { %v703_v35 = vmax.f32 %v671_v27, 0.0  ;;  %v711_v36 = vmax.f32 %v679_v28, 0.0 }
  0xb0   : > { %v528_v29 = vpop.f32.mrf.mxu2  ;;  %v548_v30 = vpop.f32.mrf.mxu3 }
  0xb1   : > { %v490_v31 = vpop.f32.mrf.mxu0  ;;  %v510_v32 = vpop.f32.mrf.mxu1  ;;  %v687_v41 = vadd.f32 %v1276_v26, %v528_v29  ;;  %v695_v42 = vadd.f32 %v1276_v26, %v548_v30 }
  0xb2   : > { %v672_v33 = vadd.f32 %v1276_v26, %v490_v31  ;;  %v680_v34 = vadd.f32 %v1276_v26, %v510_v32 }
  0xb3   : > { %v719_v49 = vmax.f32 %v687_v41, 0.0  ;;  %v727_v50 = vmax.f32 %v695_v42, 0.0 }
  0xb4   : > { %v704_v37 = vmax.f32 %v672_v33, 0.0  ;;  %v712_v38 = vmax.f32 %v680_v34, 0.0 }
  0xb6   : > { %v1017_v39 = vpack.c.bf16 %v704_v37, %v703_v35  ;;  %v1037_v40 = vpack.c.bf16 %v712_v38, %v711_v36 }
  0xb8   : > { %1018 = vst [vmem:[%s1287_s17] sm:$0xff] %v1017_v39   ;;  %v530_v43 = vpop.f32.mrf.mxu2  ;;  %v550_v44 = vpop.f32.mrf.mxu3 }
  0xb9   : > { %1097 = vst [vmem:[%s1287_s17 + $0x20] sm:$0xff] %v1037_v40   ;;  %v688_v45 = vadd.f32 %v1276_v26, %v530_v43  ;;  %v696_v46 = vadd.f32 %v1276_v26, %v550_v44  ;;  %v493_v47 = vpop.f32.mrf.mxu0  ;;  %v513_v48 = vpop.f32.mrf.mxu1 }
  0xba   : > { %v673_v55 = vadd.f32 %v1276_v26, %v493_v47  ;;  %v681_v56 = vadd.f32 %v1276_v26, %v513_v48 }
  0xbb   : > { %v720_v51 = vmax.f32 %v688_v45, 0.0  ;;  %v728_v52 = vmax.f32 %v696_v46, 0.0 }
  0xbc   : > { %v705_v63 = vmax.f32 %v673_v55, 0.0  ;;  %v713_v0 = vmax.f32 %v681_v56, 0.0 }
  0xbd   : > { %v1057_v53 = vpack.c.bf16 %v720_v51, %v719_v49  ;;  %v1077_v54 = vpack.c.bf16 %v728_v52, %v727_v50 }
  0xbf   : > { %1101 = vst [vmem:[%s1287_s17 + $0x40] sm:$0xff] %v1057_v53  }
  0xc0   : > { %1105 = vst [vmem:[%s1287_s17 + $0x60] sm:$0xff] %v1077_v54   ;;  %v533_v57 = vpop.f32.mrf.mxu2  ;;  %v553_v58 = vpop.f32.mrf.mxu3 }
  0xc1   : > { %v495_v59 = vpop.f32.mrf.mxu0  ;;  %v515_v60 = vpop.f32.mrf.mxu1  ;;  %v689_v5 = vadd.f32 %v1276_v26, %v533_v57  ;;  %v697_v6 = vadd.f32 %v1276_v26, %v553_v58 }
  0xc2   : > { %v674_v61 = vadd.f32 %v1276_v26, %v495_v59  ;;  %v682_v62 = vadd.f32 %v1276_v26, %v515_v60 }
  0xc3   : > { %v721_v13 = vmax.f32 %v689_v5, 0.0  ;;  %v729_v14 = vmax.f32 %v697_v6, 0.0 }
  0xc4   : > { %v706_v1 = vmax.f32 %v674_v61, 0.0  ;;  %v714_v2 = vmax.f32 %v682_v62, 0.0 }
  0xc6   : > { %v1022_v3 = vpack.c.bf16 %v706_v1, %v705_v63  ;;  %v1042_v4 = vpack.c.bf16 %v714_v2, %v713_v0 }
  0xc8   : > { %1094 = vst [vmem:[%s1287_s17 + $0x8] sm:$0xff] %v1022_v3   ;;  %v535_v7 = vpop.f32.mrf.mxu2  ;;  %v555_v8 = vpop.f32.mrf.mxu3 }
  0xc9   : > { %1098 = vst [vmem:[%s1287_s17 + $0x28] sm:$0xff] %v1042_v4   ;;  %v690_v9 = vadd.f32 %v1276_v26, %v535_v7  ;;  %v698_v10 = vadd.f32 %v1276_v26, %v555_v8  ;;  %v498_v11 = vpop.f32.mrf.mxu0  ;;  %v518_v12 = vpop.f32.mrf.mxu1 }
  0xca   : > { %v675_v19 = vadd.f32 %v1276_v26, %v498_v11  ;;  %v683_v20 = vadd.f32 %v1276_v26, %v518_v12 }
  0xcb   : > { %v722_v15 = vmax.f32 %v690_v9, 0.0  ;;  %v730_v16 = vmax.f32 %v698_v10, 0.0 }
  0xcc   : > { %v707_v28 = vmax.f32 %v675_v19, 0.0  ;;  %v715_v29 = vmax.f32 %v683_v20, 0.0 }
  0xcd   : > { %v1062_v17 = vpack.c.bf16 %v722_v15, %v721_v13  ;;  %v1082_v18 = vpack.c.bf16 %v730_v16, %v729_v14 }
  0xcf   : > { %1102 = vst [vmem:[%s1287_s17 + $0x48] sm:$0xff] %v1062_v17  }
  0xd0   : > { %1106 = vst [vmem:[%s1287_s17 + $0x68] sm:$0xff] %v1082_v18   ;;  %v538_v21 = vpop.f32.mrf.mxu2  ;;  %v558_v22 = vpop.f32.mrf.mxu3 }
  0xd1   : > { %v500_v23 = vpop.f32.mrf.mxu0  ;;  %v520_v24 = vpop.f32.mrf.mxu1  ;;  %v691_v34 = vadd.f32 %v1276_v26, %v538_v21  ;;  %v699_v35 = vadd.f32 %v1276_v26, %v558_v22 }
  0xd2   : > { %v676_v25 = vadd.f32 %v1276_v26, %v500_v23  ;;  %v684_v27 = vadd.f32 %v1276_v26, %v520_v24 }
  0xd3   : > { %v723_v42 = vmax.f32 %v691_v34, 0.0  ;;  %v731_v43 = vmax.f32 %v699_v35, 0.0 }
  0xd4   : > { %v708_v30 = vmax.f32 %v676_v25, 0.0  ;;  %v716_v31 = vmax.f32 %v684_v27, 0.0 }
  0xd6   : > { %v1027_v32 = vpack.c.bf16 %v708_v30, %v707_v28  ;;  %v1047_v33 = vpack.c.bf16 %v716_v31, %v715_v29 }
  0xd8   : > { %1095 = vst [vmem:[%s1287_s17 + $0x10] sm:$0xff] %v1027_v32   ;;  %v540_v36 = vpop.f32.mrf.mxu2  ;;  %v560_v37 = vpop.f32.mrf.mxu3 }
  0xd9   : > { %1099 = vst [vmem:[%s1287_s17 + $0x30] sm:$0xff] %v1047_v33   ;;  %v692_v38 = vadd.f32 %v1276_v26, %v540_v36  ;;  %v700_v39 = vadd.f32 %v1276_v26, %v560_v37  ;;  %v503_v40 = vpop.f32.mrf.mxu0  ;;  %v523_v41 = vpop.f32.mrf.mxu1 }
  0xda   : > { %v677_v48 = vadd.f32 %v1276_v26, %v503_v40  ;;  %v685_v49 = vadd.f32 %v1276_v26, %v523_v41 }
  0xdb   : > { %v724_v44 = vmax.f32 %v692_v38, 0.0  ;;  %v732_v45 = vmax.f32 %v700_v39, 0.0 }
  0xdc   : > { %v709_v56 = vmax.f32 %v677_v48, 0.0  ;;  %v717_v57 = vmax.f32 %v685_v49, 0.0 }
  0xdd   : > { %v1067_v46 = vpack.c.bf16 %v724_v44, %v723_v42  ;;  %v1087_v47 = vpack.c.bf16 %v732_v45, %v731_v43 }
  0xdf   : > { %1103 = vst [vmem:[%s1287_s17 + $0x50] sm:$0xff] %v1067_v46  }
  0xe0   : > { %1107 = vst [vmem:[%s1287_s17 + $0x70] sm:$0xff] %v1087_v47   ;;  %v543_v50 = vpop.f32.mrf.mxu2  ;;  %v563_v51 = vpop.f32.mrf.mxu3 }
  0xe1   : > { %v505_v52 = vpop.f32.mrf.mxu0  ;;  %v525_v53 = vpop.f32.mrf.mxu1  ;;  %v693_v62 = vadd.f32 %v1276_v26, %v543_v50  ;;  %v701_v63 = vadd.f32 %v1276_v26, %v563_v51 }
  0xe2   : > { %v678_v54 = vadd.f32 %v1276_v26, %v505_v52  ;;  %v686_v55 = vadd.f32 %v1276_v26, %v525_v53 }
  0xe3   : > { %v725_v4 = vmax.f32 %v693_v62, 0.0  ;;  %v733_v5 = vmax.f32 %v701_v63, 0.0 }
  0xe4   : > { %v710_v58 = vmax.f32 %v678_v54, 0.0  ;;  %v718_v59 = vmax.f32 %v686_v55, 0.0 }
  0xe6   : > { %v1032_v60 = vpack.c.bf16 %v710_v58, %v709_v56  ;;  %v1052_v61 = vpack.c.bf16 %v718_v59, %v717_v57 }
  0xe8   : > { %1096 = vst [vmem:[%s1287_s17 + $0x18] sm:$0xff] %v1032_v60   ;;  %v545_v0 = vpop.f32.mrf.mxu2  ;;  %v565_v1 = vpop.f32.mrf.mxu3 }
  0xe9   : > { %1100 = vst [vmem:[%s1287_s17 + $0x38] sm:$0xff] %v1052_v61   ;;  %v694_v2 = vadd.f32 %v1276_v26, %v545_v0  ;;  %v702_v3 = vadd.f32 %v1276_v26, %v565_v1 }
  0xeb   : > { %v726_v6 = vmax.f32 %v694_v2, 0.0  ;;  %v734_v7 = vmax.f32 %v702_v3, 0.0 }
  0xed   : > { %v1072_v8 = vpack.c.bf16 %v726_v6, %v725_v4  ;;  %v1092_v9 = vpack.c.bf16 %v734_v7, %v733_v5 }
  0xef   : > { %1104 = vst [vmem:[%s1287_s17 + $0x58] sm:$0xff] %v1072_v8  }
  0xf0   : > { %1108 = vst [vmem:[%s1287_s17 + $0x78] sm:$0xff] %v1092_v9  }
  0xf1 PF: > { %s13_s14 = sadd.s32 1, %s1180_s14   ;;  %s1346_s12 = smov %s1176_s13 }
  0xf2   : > { %p10_p5 = scmp.ge.s32.totalorder %s13_s14, 6   ;;  %s1347_s13 = smov %s1349_s15 }
  0xf4   :  { %12 = sbr.rel (!%p10_p5) target bundleno = 2 (0x2), region = 73 }

// kernel: ds_hide_forward.10
= control target key start
LH: loop header
LB: loop body
LE: loop exit
PB: predicated region body
PF: predicated region fallthrough
CT: control target
= control target key end

     0   :  { %s597_s1 = inlined_call_operand.vmem [shape: bf16[128,128], index: 1, kind: input, shape index: {}]   ;;  %s598_s2 = inlined_call_operand.vmem [shape: f32[1,128], index: 2, kind: input, shape index: {}]   ;;  %s599_s0 = inlined_call_operand.vmem [shape: bf16[128,128], index: 0, kind: input, shape index: {}]   ;;  %s600_s3 = inlined_call_operand.vmem [shape: bf16[128,128], index: 3, kind: output, shape index: {}]  }
   0x1   :  { %v429_v0 = vld [vmem:[%s597_s1 + $0x38] sm:$0xff]  ;;  %v428_v1 = vld [vmem:[%s597_s1 + $0x30] sm:$0xff]  ;;  %v427_v2 = vld [vmem:[%s597_s1 + $0x28] sm:$0xff] }
   0x2   :  { %178 = vmatpush.bf16.msra.mxu0 %v429_v0  ;;  %477 = vmatpush.bf16.msra.mxu1 %v429_v0  ;;  %v426_v3 = vld [vmem:[%s597_s1 + $0x20] sm:$0xff]  ;;  %v425_v4 = vld [vmem:[%s597_s1 + $0x18] sm:$0xff]  ;;  %v424_v5 = vld [vmem:[%s597_s1 + $0x10] sm:$0xff] }
   0x3   :  { %478 = vmatpush.bf16.msra.mxu2 %v429_v0  ;;  %479 = vmatpush.bf16.msra.mxu3 %v429_v0  ;;  %v423_v6 = vld [vmem:[%s597_s1 + $0x8] sm:$0xff]  ;;  %v422_v7 = vld [vmem:[%s597_s1] sm:$0xff]  ;;  %v416_v9 = vld [vmem:[%s599_s0 + $0x10] sm:$0xff] }
   0x4   :  { %v414_v8 = vld [vmem:[%s599_s0] sm:$0xff]  ;;  %v420_v11 = vld [vmem:[%s599_s0 + $0x30] sm:$0xff]  ;;  %v415_v12 = vld [vmem:[%s599_s0 + $0x8] sm:$0xff] }
   0x5   :  { %v418_v10 = vld [vmem:[%s599_s0 + $0x20] sm:$0xff]  ;;  %v417_v13 = vld [vmem:[%s599_s0 + $0x18] sm:$0xff]  ;;  %v419_v14 = vld [vmem:[%s599_s0 + $0x28] sm:$0xff] }
   0x6   :  { %179 = vmatpush.bf16.msra.mxu0 %v428_v1  ;;  %480 = vmatpush.bf16.msra.mxu1 %v428_v1  ;;  %v421_v15 = vld [vmem:[%s599_s0 + $0x38] sm:$0xff]  ;;  %v501_v18 = vld [vmem:[%s598_s2] ss:$0 sm:$0xff] }
   0x7   :  { %481 = vmatpush.bf16.msra.mxu2 %v428_v1  ;;  %482 = vmatpush.bf16.msra.mxu3 %v428_v1 }
   0xa   :  { %180 = vmatpush.bf16.msra.mxu0 %v427_v2  ;;  %483 = vmatpush.bf16.msra.mxu1 %v427_v2 }
   0xb   :  { %484 = vmatpush.bf16.msra.mxu2 %v427_v2  ;;  %485 = vmatpush.bf16.msra.mxu3 %v427_v2 }
   0xe   :  { %181 = vmatpush.bf16.msra.mxu0 %v426_v3  ;;  %486 = vmatpush.bf16.msra.mxu1 %v426_v3 }
   0xf   :  { %487 = vmatpush.bf16.msra.mxu2 %v426_v3  ;;  %488 = vmatpush.bf16.msra.mxu3 %v426_v3 }
  0x12   :  { %182 = vmatpush.bf16.msra.mxu0 %v425_v4  ;;  %489 = vmatpush.bf16.msra.mxu1 %v425_v4 }
  0x13   :  { %490 = vmatpush.bf16.msra.mxu2 %v425_v4  ;;  %491 = vmatpush.bf16.msra.mxu3 %v425_v4 }
  0x16   :  { %183 = vmatpush.bf16.msra.mxu0 %v424_v5  ;;  %492 = vmatpush.bf16.msra.mxu1 %v424_v5 }
  0x17   :  { %493 = vmatpush.bf16.msra.mxu2 %v424_v5  ;;  %494 = vmatpush.bf16.msra.mxu3 %v424_v5 }
  0x1a   :  { %184 = vmatpush.bf16.msra.mxu0 %v423_v6  ;;  %495 = vmatpush.bf16.msra.mxu1 %v423_v6 }
  0x1b   :  { %496 = vmatpush.bf16.msra.mxu2 %v423_v6  ;;  %497 = vmatpush.bf16.msra.mxu3 %v423_v6 }
  0x1e   :  { %185 = vmatpush.bf16.msra.mxu0 %v422_v7  ;;  %498 = vmatpush.bf16.msra.mxu1 %v422_v7 }
  0x1f   :  { %499 = vmatpush.bf16.msra.mxu2 %v422_v7  ;;  %500 = vmatpush.bf16.msra.mxu3 %v422_v7 }
  0x21   :  { %186 = vmatmul.bf16.vlgmr.msra.gmra.mxu0 %v414_v8  ;;  %196 = vmatmul.bf16.vlgmr.msra.gmra.mxu1 %v416_v9 }
  0x22   :  { %206 = vmatmul.bf16.vlgmr.msra.gmra.mxu2 %v418_v10  ;;  %216 = vmatmul.bf16.vlgmr.msra.gmra.mxu3 %v420_v11 }
  0x31   :  { %191 = vmatmul.bf16.gmra.mxu0 %v415_v12  ;;  %201 = vmatmul.bf16.gmra.mxu1 %v417_v13 }
  0x32   :  { %211 = vmatmul.bf16.gmra.mxu2 %v419_v14  ;;  %221 = vmatmul.bf16.gmra.mxu3 %v421_v15 }
  0x9e   :  { %v187_v16 = vpop.f32.mrf.mxu0  ;;  %v197_v17 = vpop.f32.mrf.mxu1 }
  0x9f   :  { %v282_v19 = vadd.f32 %v501_v18, %v187_v16  ;;  %v286_v20 = vadd.f32 %v501_v18, %v197_v17 }
  0xa1   :  { %v298_v27 = vmax.f32 %v282_v19, 0.0  ;;  %v302_v28 = vmax.f32 %v286_v20, 0.0 }
  0xa5   :  { %v207_v21 = vpop.f32.mrf.mxu2  ;;  %v217_v22 = vpop.f32.mrf.mxu3 }
  0xa6   :  { %v189_v23 = vpop.f32.mrf.mxu0  ;;  %v199_v24 = vpop.f32.mrf.mxu1  ;;  %v290_v33 = vadd.f32 %v501_v18, %v207_v21  ;;  %v294_v34 = vadd.f32 %v501_v18, %v217_v22 }
  0xa7   :  { %v283_v25 = vadd.f32 %v501_v18, %v189_v23  ;;  %v287_v26 = vadd.f32 %v501_v18, %v199_v24 }
  0xa8   :  { %v306_v41 = vmax.f32 %v290_v33, 0.0  ;;  %v310_v42 = vmax.f32 %v294_v34, 0.0 }
  0xa9   :  { %v299_v29 = vmax.f32 %v283_v25, 0.0  ;;  %v303_v30 = vmax.f32 %v287_v26, 0.0 }
  0xab   :  { %v433_v31 = vpack.c.bf16 %v299_v29, %v298_v27  ;;  %v443_v32 = vpack.c.bf16 %v303_v30, %v302_v28 }
  0xad   :  { %434 = vst [vmem:[%s600_s3] sm:$0xff] %v433_v31   ;;  %v209_v35 = vpop.f32.mrf.mxu2  ;;  %v219_v36 = vpop.f32.mrf.mxu3 }
  0xae   :  { %471 = vst [vmem:[%s600_s3 + $0x10] sm:$0xff] %v443_v32   ;;  %v291_v37 = vadd.f32 %v501_v18, %v209_v35  ;;  %v295_v38 = vadd.f32 %v501_v18, %v219_v36  ;;  %v192_v39 = vpop.f32.mrf.mxu0  ;;  %v202_v40 = vpop.f32.mrf.mxu1 }
  0xaf   :  { %v284_v47 = vadd.f32 %v501_v18, %v192_v39  ;;  %v288_v48 = vadd.f32 %v501_v18, %v202_v40 }
  0xb0   :  { %v307_v43 = vmax.f32 %v291_v37, 0.0  ;;  %v311_v44 = vmax.f32 %v295_v38, 0.0 }
  0xb1   :  { %v300_v55 = vmax.f32 %v284_v47, 0.0  ;;  %v304_v56 = vmax.f32 %v288_v48, 0.0 }
  0xb2   :  { %v453_v45 = vpack.c.bf16 %v307_v43, %v306_v41  ;;  %v463_v46 = vpack.c.bf16 %v311_v44, %v310_v42 }
  0xb4   :  { %473 = vst [vmem:[%s600_s3 + $0x20] sm:$0xff] %v453_v45  }
  0xb5   :  { %475 = vst [vmem:[%s600_s3 + $0x30] sm:$0xff] %v463_v46   ;;  %v212_v49 = vpop.f32.mrf.mxu2  ;;  %v222_v50 = vpop.f32.mrf.mxu3 }
  0xb6   :  { %v194_v51 = vpop.f32.mrf.mxu0  ;;  %v204_v52 = vpop.f32.mrf.mxu1  ;;  %v292_v61 = vadd.f32 %v501_v18, %v212_v49  ;;  %v296_v62 = vadd.f32 %v501_v18, %v222_v50 }
  0xb7   :  { %v285_v53 = vadd.f32 %v501_v18, %v194_v51  ;;  %v289_v54 = vadd.f32 %v501_v18, %v204_v52 }
  0xb8   :  { %v308_v3 = vmax.f32 %v292_v61, 0.0  ;;  %v312_v4 = vmax.f32 %v296_v62, 0.0 }
  0xb9   :  { %v301_v57 = vmax.f32 %v285_v53, 0.0  ;;  %v305_v58 = vmax.f32 %v289_v54, 0.0 }
  0xbb   :  { %v438_v59 = vpack.c.bf16 %v301_v57, %v300_v55  ;;  %v448_v60 = vpack.c.bf16 %v305_v58, %v304_v56 }
  0xbd   :  { %470 = vst [vmem:[%s600_s3 + $0x8] sm:$0xff] %v438_v59   ;;  %v214_v63 = vpop.f32.mrf.mxu2  ;;  %v224_v0 = vpop.f32.mrf.mxu3 }
  0xbe   :  { %472 = vst [vmem:[%s600_s3 + $0x18] sm:$0xff] %v448_v60   ;;  %v293_v1 = vadd.f32 %v501_v18, %v214_v63  ;;  %v297_v2 = vadd.f32 %v501_v18, %v224_v0 }
  0xc0   :  { %v309_v5 = vmax.f32 %v293_v1, 0.0  ;;  %v313_v6 = vmax.f32 %v297_v2, 0.0 }
  0xc2   :  { %v458_v7 = vpack.c.bf16 %v309_v5, %v308_v3  ;;  %v468_v8 = vpack.c.bf16 %v313_v6, %v312_v4 }
  0xc4   :  { %474 = vst [vmem:[%s600_s3 + $0x28] sm:$0xff] %v458_v7  }
  0xc5   :  { %476 = vst [vmem:[%s600_s3 + $0x38] sm:$0xff] %v468_v8  }

// kernel: ds_hide_forward.9
= control target key start
LH: loop header
LB: loop body
LE: loop exit
PB: predicated region body
PF: predicated region fallthrough
CT: control target
= control target key end

     0   :  { %s4526_s1 = inlined_call_operand.vmem [shape: bf16[1024,128], index: 1, kind: input, shape index: {}]   ;;  %s4527_s0 = inlined_call_operand.vmem [shape: bf16[256,1024], index: 0, kind: input, shape index: {}]   ;;  %s4528_s2 = inlined_call_operand.vmem [shape: f32[1,128], index: 2, kind: input, shape index: {}]   ;;  %s4529_s3 = inlined_call_operand.vmem [shape: bf16[256,128], index: 3, kind: output, shape index: {}]  }
   0x1   :  { %v3212_v0 = vld [vmem:[%s4526_s1 + $0x38] sm:$0xff]  ;;  %v3211_v4 = vld [vmem:[%s4526_s1 + $0x30] sm:$0xff]  ;;  %v3210_v8 = vld [vmem:[%s4526_s1 + $0x28] sm:$0xff] }
   0x2   :  { %v3220_v1 = vld [vmem:[%s4526_s1 + $0x78] sm:$0xff]  ;;  %1362 = vmatpush.bf16.msra.mxu0 %v3212_v0  ;;  %v3219_v5 = vld [vmem:[%s4526_s1 + $0x70] sm:$0xff]  ;;  %v3218_v9 = vld [vmem:[%s4526_s1 + $0x68] sm:$0xff] }
   0x3   :  { %v3228_v2 = vld [vmem:[%s4526_s1 + $0xb8] sm:$0xff]  ;;  %1451 = vmatpush.bf16.msra.mxu1 %v3220_v1  ;;  %v3227_v6 = vld [vmem:[%s4526_s1 + $0xb0] sm:$0xff]  ;;  %v3226_v10 = vld [vmem:[%s4526_s1 + $0xa8] sm:$0xff] }
   0x4   :  { %v3236_v3 = vld [vmem:[%s4526_s1 + $0xf8] sm:$0xff]  ;;  %1540 = vmatpush.bf16.msra.mxu2 %v3228_v2  ;;  %v3235_v7 = vld [vmem:[%s4526_s1 + $0xf0] sm:$0xff]  ;;  %v3234_v11 = vld [vmem:[%s4526_s1 + $0xe8] sm:$0xff] }
   0x5   :  { %1629 = vmatpush.bf16.msra.mxu3 %v3236_v3  ;;  %v3209_v12 = vld [vmem:[%s4526_s1 + $0x20] sm:$0xff]  ;;  %v3208_v16 = vld [vmem:[%s4526_s1 + $0x18] sm:$0xff]  ;;  %v3207_v20 = vld [vmem:[%s4526_s1 + $0x10] sm:$0xff] }
   0x6   :  { %1363 = vmatpush.bf16.msra.mxu0 %v3211_v4  ;;  %v3217_v13 = vld [vmem:[%s4526_s1 + $0x60] sm:$0xff]  ;;  %v3216_v17 = vld [vmem:[%s4526_s1 + $0x58] sm:$0xff]  ;;  %v3215_v21 = vld [vmem:[%s4526_s1 + $0x50] sm:$0xff] }
   0x7   :  { %1452 = vmatpush.bf16.msra.mxu1 %v3219_v5  ;;  %v3225_v14 = vld [vmem:[%s4526_s1 + $0xa0] sm:$0xff]  ;;  %v3224_v18 = vld [vmem:[%s4526_s1 + $0x98] sm:$0xff]  ;;  %v3223_v22 = vld [vmem:[%s4526_s1 + $0x90] sm:$0xff] }
   0x8   :  { %1541 = vmatpush.bf16.msra.mxu2 %v3227_v6  ;;  %v3233_v15 = vld [vmem:[%s4526_s1 + $0xe0] sm:$0xff]  ;;  %v3232_v19 = vld [vmem:[%s4526_s1 + $0xd8] sm:$0xff]  ;;  %v3231_v23 = vld [vmem:[%s4526_s1 + $0xd0] sm:$0xff] }
   0x9   :  { %1630 = vmatpush.bf16.msra.mxu3 %v3235_v7  ;;  %v3206_v24 = vld [vmem:[%s4526_s1 + $0x8] sm:$0xff]  ;;  %v3205_v28 = vld [vmem:[%s4526_s1] sm:$0xff]  ;;  %v3260_v40 = vld [vmem:[%s4526_s1 + $0x1b8] sm:$0xff] }
   0xa   :  { %1364 = vmatpush.bf16.msra.mxu0 %v3210_v8  ;;  %v3214_v25 = vld [vmem:[%s4526_s1 + $0x48] sm:$0xff]  ;;  %v3213_v29 = vld [vmem:[%s4526_s1 + $0x40] sm:$0xff]  ;;  %v3244_v41 = vld [vmem:[%s4526_s1 + $0x138] sm:$0xff] }
   0xb   :  { %1453 = vmatpush.bf16.msra.mxu1 %v3218_v9  ;;  %v3222_v26 = vld [vmem:[%s4526_s1 + $0x88] sm:$0xff]  ;;  %v3221_v30 = vld [vmem:[%s4526_s1 + $0x80] sm:$0xff]  ;;  %v3268_v46 = vld [vmem:[%s4526_s1 + $0x1f8] sm:$0xff] }
   0xc   :  { %1542 = vmatpush.bf16.msra.mxu2 %v3226_v10  ;;  %v3230_v27 = vld [vmem:[%s4526_s1 + $0xc8] sm:$0xff]  ;;  %v3229_v31 = vld [vmem:[%s4526_s1 + $0xc0] sm:$0xff]  ;;  %v3252_v47 = vld [vmem:[%s4526_s1 + $0x178] sm:$0xff] }
   0xd   :  { %1631 = vmatpush.bf16.msra.mxu3 %v3234_v11  ;;  %v2311_v32 = vld [vmem:[%s4527_s0] sm:$0xf]  ;;  %v3077_v34 = vld [vmem:[%s4527_s0 + $0x4] sm:$0xf]  ;;  %v2319_v36 = vld [vmem:[%s4527_s0 + $0x8] sm:$0xf] }
   0xe   :  { %1365 = vmatpush.bf16.msra.mxu0 %v3209_v12  ;;  %v3081_v33 = vld [vmem:[%s4527_s0 + $0x1c] sm:$0xf0]  ;;  %v2313_v35 = vld [vmem:[%s4527_s0 + $0x20] sm:$0xf0]  ;;  %v3082_v37 = vld [vmem:[%s4527_s0 + $0x24] sm:$0xf0] }
   0xf   :  { %1454 = vmatpush.bf16.msra.mxu1 %v3217_v13  ;;  %v3078_v38 = vld [vmem:[%s4527_s0 + $0xc] sm:$0xf]  ;;  %v2312_v42 = vor.u32 %v3081_v33, %v2311_v32  ;;  %v2316_v43 = vor.u32 %v3077_v34, %v2313_v35  ;;  %v2320_v44 = vor.u32 %v3082_v37, %v2319_v36  ;;  %v3259_v48 = vld [vmem:[%s4526_s1 + $0x1b0] sm:$0xff]  ;;  %v2343_v52 = vld [vmem:[%s4527_s0 + $0x40] sm:$0xf] }
  0x10   :  { %1543 = vmatpush.bf16.msra.mxu2 %v3225_v14  ;;  %v2321_v39 = vld [vmem:[%s4527_s0 + $0x28] sm:$0xf0]  ;;  %v3243_v49 = vld [vmem:[%s4526_s1 + $0x130] sm:$0xff]  ;;  %v3089_v53 = vld [vmem:[%s4527_s0 + $0x5c] sm:$0xf0] }
  0x11   :  { %1632 = vmatpush.bf16.msra.mxu3 %v3233_v15  ;;  %v2324_v45 = vor.u32 %v3078_v38, %v2321_v39  ;;  %v3267_v50 = vld [vmem:[%s4526_s1 + $0x1f0] sm:$0xff]  ;;  %v3085_v54 = vld [vmem:[%s4527_s0 + $0x44] sm:$0xf]  ;;  %v2351_v56 = vld [vmem:[%s4527_s0 + $0x48] sm:$0xf]  ;;  %v2344_v60 = vor.u32 %v3089_v53, %v2343_v52 }
  0x12   :  { %1366 = vmatpush.bf16.msra.mxu0 %v3208_v16  ;;  %v3251_v51 = vld [vmem:[%s4526_s1 + $0x170] sm:$0xff]  ;;  %v2345_v55 = vld [vmem:[%s4527_s0 + $0x60] sm:$0xf0]  ;;  %v3090_v57 = vld [vmem:[%s4527_s0 + $0x64] sm:$0xf0] }
  0x13   :  { %1455 = vmatpush.bf16.msra.mxu1 %v3216_v17  ;;  %v3086_v58 = vld [vmem:[%s4527_s0 + $0x4c] sm:$0xf]  ;;  %v2348_v61 = vor.u32 %v3085_v54, %v2345_v55  ;;  %v2352_v62 = vor.u32 %v3090_v57, %v2351_v56  ;;  %v2375_v0 = vld [vmem:[%s4527_s0 + $0x80] sm:$0xf]  ;;  %v3093_v2 = vld [vmem:[%s4527_s0 + $0x84] sm:$0xf] }
  0x14   :  { %1544 = vmatpush.bf16.msra.mxu2 %v3224_v18  ;;  %v2353_v59 = vld [vmem:[%s4527_s0 + $0x68] sm:$0xf0]  ;;  %v3097_v1 = vld [vmem:[%s4527_s0 + $0x9c] sm:$0xf0]  ;;  %v2377_v3 = vld [vmem:[%s4527_s0 + $0xa0] sm:$0xf0] }
  0x15   :  { %1633 = vmatpush.bf16.msra.mxu3 %v3232_v19  ;;  %v2356_v63 = vor.u32 %v3086_v58, %v2353_v59  ;;  %v2383_v4 = vld [vmem:[%s4527_s0 + $0x88] sm:$0xf]  ;;  %v3094_v6 = vld [vmem:[%s4527_s0 + $0x8c] sm:$0xf]  ;;  %v2376_v8 = vor.u32 %v3097_v1, %v2375_v0  ;;  %v2380_v9 = vor.u32 %v3093_v2, %v2377_v3  ;;  %v2407_v16 = vld [vmem:[%s4527_s0 + $0xc0] sm:$0xf] }
  0x16   :  { %1367 = vmatpush.bf16.msra.mxu0 %v3207_v20  ;;  %v3098_v5 = vld [vmem:[%s4527_s0 + $0xa4] sm:$0xf0]  ;;  %v2385_v7 = vld [vmem:[%s4527_s0 + $0xa8] sm:$0xf0]  ;;  %v3105_v17 = vld [vmem:[%s4527_s0 + $0xdc] sm:$0xf0] }
  0x17   :  { %1456 = vmatpush.bf16.msra.mxu1 %v3215_v21  ;;  %v2384_v10 = vor.u32 %v3098_v5, %v2383_v4  ;;  %v2388_v11 = vor.u32 %v3094_v6, %v2385_v7  ;;  %v3258_v12 = vld [vmem:[%s4526_s1 + $0x1a8] sm:$0xff]  ;;  %v3101_v18 = vld [vmem:[%s4527_s0 + $0xc4] sm:$0xf]  ;;  %v2503_v56 = vld [vmem:[%s4527_s0 + $0x180] sm:$0xf] }
  0x18   :  { %1545 = vmatpush.bf16.msra.mxu2 %v3223_v22  ;;  %v3242_v13 = vld [vmem:[%s4526_s1 + $0x128] sm:$0xff]  ;;  %v2409_v19 = vld [vmem:[%s4527_s0 + $0xe0] sm:$0xf0]  ;;  %v3129_v57 = vld [vmem:[%s4527_s0 + $0x19c] sm:$0xf0] }
  0x19   :  { %1634 = vmatpush.bf16.msra.mxu3 %v3231_v23  ;;  %v3266_v14 = vld [vmem:[%s4526_s1 + $0x1e8] sm:$0xff]  ;;  %v3125_v58 = vld [vmem:[%s4527_s0 + $0x184] sm:$0xf]  ;;  %v2504_v0 = vor.u32 %v3129_v57, %v2503_v56  ;;  %v3256_v4 = vld [vmem:[%s4526_s1 + $0x198] sm:$0xff] }
  0x1a   :  { %1368 = vmatpush.bf16.msra.mxu0 %v3206_v24  ;;  %v3250_v15 = vld [vmem:[%s4526_s1 + $0x168] sm:$0xff]  ;;  %v2408_v24 = vor.u32 %v3105_v17, %v2407_v16  ;;  %v2505_v59 = vld [vmem:[%s4527_s0 + $0x1a0] sm:$0xf0]  ;;  %v3240_v5 = vld [vmem:[%s4526_s1 + $0x118] sm:$0xff] }
  0x1b   :  { %1457 = vmatpush.bf16.msra.mxu1 %v3214_v25  ;;  %v2415_v20 = vld [vmem:[%s4527_s0 + $0xc8] sm:$0xf]  ;;  %v3102_v22 = vld [vmem:[%s4527_s0 + $0xcc] sm:$0xf]  ;;  %v2412_v25 = vor.u32 %v3101_v18, %v2409_v19  ;;  %v2508_v1 = vor.u32 %v3125_v58, %v2505_v59  ;;  %v3264_v6 = vld [vmem:[%s4526_s1 + $0x1d8] sm:$0xff] }
  0x1c   :  { %1546 = vmatpush.bf16.msra.mxu2 %v3222_v26  ;;  %v3106_v21 = vld [vmem:[%s4527_s0 + $0xe4] sm:$0xf0]  ;;  %v2417_v23 = vld [vmem:[%s4527_s0 + $0xe8] sm:$0xf0]  ;;  %v3248_v7 = vld [vmem:[%s4526_s1 + $0x158] sm:$0xff] }
  0x1d   :  { %1635 = vmatpush.bf16.msra.mxu3 %v3230_v27  ;;  %v2416_v26 = vor.u32 %v3106_v21, %v2415_v20  ;;  %v2420_v27 = vor.u32 %v3102_v22, %v2417_v23  ;;  %v2447_v32 = vld [vmem:[%s4527_s0 + $0x108] sm:$0xf]  ;;  %v3110_v34 = vld [vmem:[%s4527_s0 + $0x10c] sm:$0xf]  ;;  %v2567_v20 = vld [vmem:[%s4527_s0 + $0x200] sm:$0xf] }
  0x1e   :  { %1369 = vmatpush.bf16.msra.mxu0 %v3205_v28  ;;  %v2439_v28 = vld [vmem:[%s4527_s0 + $0x100] sm:$0xf]  ;;  %v3114_v33 = vld [vmem:[%s4527_s0 + $0x124] sm:$0xf0]  ;;  %v2449_v35 = vld [vmem:[%s4527_s0 + $0x128] sm:$0xf0] }
  0x1f   :  { %1458 = vmatpush.bf16.msra.mxu1 %v3213_v29  ;;  %v3113_v29 = vld [vmem:[%s4527_s0 + $0x11c] sm:$0xf0]  ;;  %v2448_v38 = vor.u32 %v3114_v33, %v2447_v32  ;;  %v2452_v39 = vor.u32 %v3110_v34, %v2449_v35  ;;  %v3141_v22 = vld [vmem:[%s4527_s0 + $0x204] sm:$0xf]  ;;  %v3255_v35 = vld [vmem:[%s4526_s1 + $0x190] sm:$0xff] }
  0x20   :  { %1547 = vmatpush.bf16.msra.mxu2 %v3221_v30  ;;  %v3109_v30 = vld [vmem:[%s4527_s0 + $0x104] sm:$0xf]  ;;  %v2440_v36 = vor.u32 %v3113_v29, %v2439_v28  ;;  %v3145_v21 = vld [vmem:[%s4527_s0 + $0x21c] sm:$0xf0] }
  0x21   :  { %1636 = vmatpush.bf16.msra.mxu3 %v3229_v31  ;;  %1370 = vmatmul.bf16.vlgmr.msra.gmra.mxu0 %v2312_v42  ;;  %v2441_v31 = vld [vmem:[%s4527_s0 + $0x120] sm:$0xf0]  ;;  %v2568_v28 = vor.u32 %v3145_v21, %v2567_v20 }
  0x22   :  { %1718 = vmatpush.bf16.msrb.mxu0 %v3244_v41  ;;  %1459 = vmatmul.bf16.vlgmr.msra.gmra.mxu1 %v2316_v43  ;;  %v2444_v37 = vor.u32 %v3109_v30, %v2441_v31  ;;  %v3241_v41 = vld [vmem:[%s4526_s1 + $0x120] sm:$0xff] }
  0x23   :  { %1548 = vmatmul.bf16.vlgmr.msra.gmra.mxu2 %v2320_v44  ;;  %1807 = vmatpush.bf16.msrb.mxu1 %v3252_v47  ;;  %v3265_v42 = vld [vmem:[%s4526_s1 + $0x1e0] sm:$0xff] }
  0x24   :  { %1896 = vmatpush.bf16.msrb.mxu2 %v3260_v40  ;;  %1637 = vmatmul.bf16.vlgmr.msra.gmra.mxu3 %v2324_v45  ;;  %v3257_v40 = vld [vmem:[%s4526_s1 + $0x1a0] sm:$0xff] }
  0x25   :  { %1985 = vmatpush.bf16.msrb.mxu3 %v3268_v46  ;;  %v3249_v43 = vld [vmem:[%s4526_s1 + $0x160] sm:$0xff] }
  0x26   :  { %1719 = vmatpush.bf16.msrb.mxu0 %v3243_v49  ;;  %v2471_v44 = vld [vmem:[%s4527_s0 + $0x140] sm:$0xf]  ;;  %v3117_v46 = vld [vmem:[%s4527_s0 + $0x144] sm:$0xf]  ;;  %v3122_v49 = vld [vmem:[%s4527_s0 + $0x164] sm:$0xf0] }
  0x27   :  { %1808 = vmatpush.bf16.msrb.mxu1 %v3251_v51  ;;  %v3121_v45 = vld [vmem:[%s4527_s0 + $0x15c] sm:$0xf0]  ;;  %v2473_v47 = vld [vmem:[%s4527_s0 + $0x160] sm:$0xf0]  ;;  %v2481_v51 = vld [vmem:[%s4527_s0 + $0x168] sm:$0xf0] }
  0x28   :  { %1897 = vmatpush.bf16.msrb.mxu2 %v3259_v48  ;;  %v2479_v48 = vld [vmem:[%s4527_s0 + $0x148] sm:$0xf]  ;;  %v2472_v52 = vor.u32 %v3121_v45, %v2471_v44  ;;  %v2476_v53 = vor.u32 %v3117_v46, %v2473_v47  ;;  %v2569_v23 = vld [vmem:[%s4527_s0 + $0x220] sm:$0xf0]  ;;  %v3247_v45 = vld [vmem:[%s4526_s1 + $0x150] sm:$0xff] }
  0x29   :  { %1986 = vmatpush.bf16.msrb.mxu3 %v3267_v50  ;;  %v3118_v50 = vld [vmem:[%s4527_s0 + $0x14c] sm:$0xf]  ;;  %v2480_v54 = vor.u32 %v3122_v49, %v2479_v48  ;;  %v2572_v29 = vor.u32 %v3141_v22, %v2569_v23  ;;  %v2599_v46 = vld [vmem:[%s4527_s0 + $0x240] sm:$0xf]  ;;  %v3149_v48 = vld [vmem:[%s4527_s0 + $0x244] sm:$0xf] }
  0x2a   :  { %1720 = vmatpush.bf16.msrb.mxu0 %v3242_v13  ;;  %v2484_v55 = vor.u32 %v3118_v50, %v2481_v51  ;;  %v3138_v13 = vld [vmem:[%s4527_s0 + $0x1e4] sm:$0xf0]  ;;  %v3153_v47 = vld [vmem:[%s4527_s0 + $0x25c] sm:$0xf0]  ;;  %v2601_v49 = vld [vmem:[%s4527_s0 + $0x260] sm:$0xf0] }
  0x2b   :  { %1809 = vmatpush.bf16.msrb.mxu1 %v3250_v15  ;;  %v2545_v15 = vld [vmem:[%s4527_s0 + $0x1e8] sm:$0xf0]  ;;  %v2607_v50 = vld [vmem:[%s4527_s0 + $0x248] sm:$0xf]  ;;  %v2600_v56 = vor.u32 %v3153_v47, %v2599_v46  ;;  %v2604_v57 = vor.u32 %v3149_v48, %v2601_v49 }
  0x2c   :  { %1898 = vmatpush.bf16.msrb.mxu2 %v3258_v12  ;;  %v2543_v12 = vld [vmem:[%s4527_s0 + $0x1c8] sm:$0xf]  ;;  %v2673_v46 = vld [vmem:[%s4527_s0 + $0x2e8] sm:$0xf0] }
  0x2d   :  { %1987 = vmatpush.bf16.msrb.mxu3 %v3266_v14  ;;  %v3134_v14 = vld [vmem:[%s4527_s0 + $0x1cc] sm:$0xf]  ;;  %v2544_v18 = vor.u32 %v3138_v13, %v2543_v12  ;;  %v3154_v51 = vld [vmem:[%s4527_s0 + $0x264] sm:$0xf0] }
  0x2e   :  { %1721 = vmatpush.bf16.msrb.mxu0 %v3241_v41  ;;  %v2548_v19 = vor.u32 %v3134_v14, %v2545_v15  ;;  %v2639_v12 = vld [vmem:[%s4527_s0 + $0x288] sm:$0xf]  ;;  %v3158_v14 = vld [vmem:[%s4527_s0 + $0x28c] sm:$0xf] }
  0x2f   :  { %1810 = vmatpush.bf16.msrb.mxu1 %v3249_v43  ;;  %v3162_v13 = vld [vmem:[%s4527_s0 + $0x2a4] sm:$0xf0]  ;;  %v2641_v15 = vld [vmem:[%s4527_s0 + $0x2a8] sm:$0xf0] }
  0x30   :  { %1899 = vmatpush.bf16.msrb.mxu2 %v3257_v40  ;;  %v2640_v23 = vor.u32 %v3162_v13, %v2639_v12 }
  0x31   :  { %1375 = vmatmul.bf16.gmra.mxu0 %v2344_v60  ;;  %1988 = vmatpush.bf16.msrb.mxu3 %v3265_v42  ;;  %v2511_v60 = vld [vmem:[%s4527_s0 + $0x188] sm:$0xf] }
  0x32   :  { %1464 = vmatmul.bf16.gmra.mxu1 %v2348_v61  ;;  %v3130_v61 = vld [vmem:[%s4527_s0 + $0x1a4] sm:$0xf0]  ;;  %1722 = vmatpush.bf16.msrb.mxu0 %v3240_v5 }
  0x33   :  { %1553 = vmatmul.bf16.gmra.mxu2 %v2352_v62  ;;  %v3126_v62 = vld [vmem:[%s4527_s0 + $0x18c] sm:$0xf]  ;;  %v2512_v2 = vor.u32 %v3130_v61, %v2511_v60  ;;  %1811 = vmatpush.bf16.msrb.mxu1 %v3248_v7  ;;  %v2608_v61 = vor.u32 %v3154_v51, %v2607_v50 }
  0x34   :  { %1642 = vmatmul.bf16.gmra.mxu3 %v2356_v63  ;;  %v2513_v63 = vld [vmem:[%s4527_s0 + $0x1a8] sm:$0xf0]  ;;  %1900 = vmatpush.bf16.msrb.mxu2 %v3256_v4 }
  0x35   :  { %v2516_v3 = vor.u32 %v3126_v62, %v2513_v63  ;;  %1989 = vmatpush.bf16.msrb.mxu3 %v3264_v6 }
  0x37   :  { %1812 = vmatpush.bf16.msrb.mxu1 %v3247_v45  ;;  %v3166_v45 = vld [vmem:[%s4527_s0 + $0x2cc] sm:$0xf] }
  0x38   :  { %1901 = vmatpush.bf16.msrb.mxu2 %v3255_v35 }
  0x41   :  { %1380 = vmatmul.bf16.gmra.mxu0 %v2376_v8  ;;  %v2535_v8 = vld [vmem:[%s4527_s0 + $0x1c0] sm:$0xf] }
  0x42   :  { %1469 = vmatmul.bf16.gmra.mxu1 %v2380_v9  ;;  %v3137_v9 = vld [vmem:[%s4527_s0 + $0x1dc] sm:$0xf0] }
  0x43   :  { %1558 = vmatmul.bf16.gmra.mxu2 %v2384_v10  ;;  %v3133_v10 = vld [vmem:[%s4527_s0 + $0x1c4] sm:$0xf]  ;;  %v2536_v16 = vor.u32 %v3137_v9, %v2535_v8  ;;  %v2631_v8 = vld [vmem:[%s4527_s0 + $0x280] sm:$0xf] }
  0x44   :  { %1647 = vmatmul.bf16.gmra.mxu3 %v2388_v11  ;;  %v2537_v11 = vld [vmem:[%s4527_s0 + $0x1e0] sm:$0xf0]  ;;  %v3161_v9 = vld [vmem:[%s4527_s0 + $0x29c] sm:$0xf0] }
  0x45   :  { %v2540_v17 = vor.u32 %v3133_v10, %v2537_v11  ;;  %v3157_v10 = vld [vmem:[%s4527_s0 + $0x284] sm:$0xf] }
  0x46   :  { %v2633_v11 = vld [vmem:[%s4527_s0 + $0x2a0] sm:$0xf0] }
  0x51   :  { %1385 = vmatmul.bf16.gmra.mxu0 %v2408_v24  ;;  %v2575_v24 = vld [vmem:[%s4527_s0 + $0x208] sm:$0xf] }
  0x52   :  { %1474 = vmatmul.bf16.gmra.mxu1 %v2412_v25  ;;  %v3146_v25 = vld [vmem:[%s4527_s0 + $0x224] sm:$0xf0] }
  0x53   :  { %1563 = vmatmul.bf16.gmra.mxu2 %v2416_v26  ;;  %v3142_v26 = vld [vmem:[%s4527_s0 + $0x20c] sm:$0xf]  ;;  %v2576_v32 = vor.u32 %v3146_v25, %v2575_v24  ;;  %v2644_v24 = vor.u32 %v3158_v14, %v2641_v15 }
  0x54   :  { %1652 = vmatmul.bf16.gmra.mxu3 %v2420_v27  ;;  %v2577_v27 = vld [vmem:[%s4527_s0 + $0x228] sm:$0xf0] }
  0x55   :  { %v2580_v33 = vor.u32 %v3142_v26, %v2577_v27  ;;  %v3254_v27 = vld [vmem:[%s4526_s1 + $0x188] sm:$0xff] }
  0x56   :  { %1902 = vmatpush.bf16.msrb.mxu2 %v3254_v27 }
  0x61   :  { %1390 = vmatmul.bf16.gmra.mxu0 %v2440_v36  ;;  %v3239_v36 = vld [vmem:[%s4526_s1 + $0x110] sm:$0xff] }
  0x62   :  { %1479 = vmatmul.bf16.gmra.mxu1 %v2444_v37  ;;  %v3263_v37 = vld [vmem:[%s4526_s1 + $0x1d0] sm:$0xff]  ;;  %1723 = vmatpush.bf16.msrb.mxu0 %v3239_v36 }
  0x63   :  { %1568 = vmatmul.bf16.gmra.mxu2 %v2448_v38  ;;  %1990 = vmatpush.bf16.msrb.mxu3 %v3263_v37  ;;  %v3246_v37 = vld [vmem:[%s4526_s1 + $0x148] sm:$0xff] }
  0x64   :  { %1657 = vmatmul.bf16.gmra.mxu3 %v2452_v39  ;;  %1813 = vmatpush.bf16.msrb.mxu1 %v3246_v37  ;;  %v3181_v37 = vld [vmem:[%s4527_s0 + $0x344] sm:$0xf] }
  0x71   :  { %1395 = vmatmul.bf16.gmra.mxu0 %v2472_v52  ;;  %v3150_v52 = vld [vmem:[%s4527_s0 + $0x24c] sm:$0xf] }
  0x72   :  { %1484 = vmatmul.bf16.gmra.mxu1 %v2476_v53  ;;  %v2609_v53 = vld [vmem:[%s4527_s0 + $0x268] sm:$0xf0] }
  0x73   :  { %1573 = vmatmul.bf16.gmra.mxu2 %v2480_v54  ;;  %v2612_v62 = vor.u32 %v3150_v52, %v2609_v53 }
  0x74   :  { %1662 = vmatmul.bf16.gmra.mxu3 %v2484_v55 }
  0x81   :  { %1400 = vmatmul.bf16.gmra.mxu0 %v2504_v0 }
  0x82   :  { %1489 = vmatmul.bf16.gmra.mxu1 %v2508_v1 }
  0x83   :  { %1578 = vmatmul.bf16.gmra.mxu2 %v2512_v2 }
  0x84   :  { %1667 = vmatmul.bf16.gmra.mxu3 %v2516_v3 }
  0x91   :  { %1405 = vmatmul.bf16.gmra.mxu0 %v2536_v16 }
  0x92   :  { %1494 = vmatmul.bf16.gmra.mxu1 %v2540_v17 }
  0x93   :  { %1583 = vmatmul.bf16.gmra.mxu2 %v2544_v18  ;;  %v2632_v18 = vor.u32 %v3161_v9, %v2631_v8  ;;  %v3178_v8 = vld [vmem:[%s4527_s0 + $0x324] sm:$0xf0]  ;;  %v3174_v9 = vld [vmem:[%s4527_s0 + $0x30c] sm:$0xf] }
  0x94   :  { %1672 = vmatmul.bf16.gmra.mxu3 %v2548_v19  ;;  %v2636_v19 = vor.u32 %v3157_v10, %v2633_v11  ;;  %v2705_v10 = vld [vmem:[%s4527_s0 + $0x328] sm:$0xf0] }
  0x9e   :  { %v1371_v30 = vpop.f32.mrf.mxu0 }
  0x9f   :  { %v1460_v31 = vpop.f32.mrf.mxu1 }
  0xa0   :  { %v1461_v34 = vadd.f32 %v1460_v31, %v1371_v30 }
  0xa1   :  { %1410 = vmatmul.bf16.gmra.mxu0 %v2568_v28  ;;  %v3238_v28 = vld [vmem:[%s4526_s1 + $0x108] sm:$0xff] }
  0xa2   :  { %1499 = vmatmul.bf16.gmra.mxu1 %v2572_v29  ;;  %v3262_v29 = vld [vmem:[%s4526_s1 + $0x1c8] sm:$0xff]  ;;  %1724 = vmatpush.bf16.msrb.mxu0 %v3238_v28 }
  0xa3   :  { %1588 = vmatmul.bf16.gmra.mxu2 %v2576_v32  ;;  %1991 = vmatpush.bf16.msrb.mxu3 %v3262_v29 }
  0xa4   :  { %1677 = vmatmul.bf16.gmra.mxu3 %v2580_v33 }
  0xa6   :  { %v1549_v38 = vpop.f32.mrf.mxu2  ;;  %v1373_v41 = vpop.f32.mrf.mxu0 }
  0xa7   :  { %v1638_v39 = vpop.f32.mrf.mxu3  ;;  %v1550_v40 = vadd.f32 %v1549_v38, %v1461_v34  ;;  %v1462_v42 = vpop.f32.mrf.mxu1  ;;  %v2663_v38 = vld [vmem:[%s4527_s0 + $0x2c0] sm:$0xf] }
  0xa8   :  { %v1463_v43 = vadd.f32 %v1462_v42, %v1373_v41  ;;  %v2665_v41 = vld [vmem:[%s4527_s0 + $0x2e0] sm:$0xf0]  ;;  %v2671_v42 = vld [vmem:[%s4527_s0 + $0x2c8] sm:$0xf] }
  0xa9   :  { %v3766_v44 = vadd.f32 %v1638_v39, %v1550_v40  ;;  %v3169_v39 = vld [vmem:[%s4527_s0 + $0x2dc] sm:$0xf0]  ;;  %v3165_v40 = vld [vmem:[%s4527_s0 + $0x2c4] sm:$0xf] }
  0xaa   :  { %v2664_v49 = vor.u32 %v3169_v39, %v2663_v38  ;;  %v2668_v50 = vor.u32 %v3165_v40, %v2665_v41  ;;  %v2729_v38 = vld [vmem:[%s4527_s0 + $0x360] sm:$0xf0]  ;;  %v2735_v39 = vld [vmem:[%s4527_s0 + $0x348] sm:$0xf]  ;;  %v3182_v41 = vld [vmem:[%s4527_s0 + $0x34c] sm:$0xf] }
  0xab   :  { %v3186_v40 = vld [vmem:[%s4527_s0 + $0x364] sm:$0xf0] }
  0xae   :  { %v1551_v54 = vpop.f32.mrf.mxu2  ;;  %v1376_v59 = vpop.f32.mrf.mxu0 }
  0xaf   :  { %v1640_v55 = vpop.f32.mrf.mxu3  ;;  %v1552_v58 = vadd.f32 %v1551_v54, %v1463_v43  ;;  %v1465_v60 = vpop.f32.mrf.mxu1  ;;  %v3170_v43 = vld [vmem:[%s4527_s0 + $0x2e4] sm:$0xf0] }
  0xb0   :  { %v1466_v63 = vadd.f32 %v1465_v60, %v1376_v59  ;;  %v2672_v54 = vor.u32 %v3170_v43, %v2671_v42  ;;  %v2737_v42 = vld [vmem:[%s4527_s0 + $0x368] sm:$0xf0] }
  0xb1   :  { %v3795_v0 = vadd.f32 %v1640_v55, %v1552_v58  ;;  %1415 = vmatmul.bf16.gmra.mxu0 %v2600_v56  ;;  %v2676_v55 = vor.u32 %v3166_v45, %v2673_v46 }
  0xb2   :  { %1504 = vmatmul.bf16.gmra.mxu1 %v2604_v57 }
  0xb3   :  { %1593 = vmatmul.bf16.gmra.mxu2 %v2608_v61 }
  0xb4   :  { %1682 = vmatmul.bf16.gmra.mxu3 %v2612_v62 }
  0xb6   :  { %v1554_v1 = vpop.f32.mrf.mxu2  ;;  %v1378_v4 = vpop.f32.mrf.mxu0 }
  0xb7   :  { %v1643_v2 = vpop.f32.mrf.mxu3  ;;  %v1555_v3 = vadd.f32 %v1554_v1, %v1466_v63  ;;  %v1467_v5 = vpop.f32.mrf.mxu1 }
  0xb8   :  { %v1468_v6 = vadd.f32 %v1467_v5, %v1378_v4  ;;  %v3173_v4 = vld [vmem:[%s4527_s0 + $0x304] sm:$0xf] }
  0xb9   :  { %v3797_v7 = vadd.f32 %v1643_v2, %v1555_v3  ;;  %v2695_v2 = vld [vmem:[%s4527_s0 + $0x300] sm:$0xf]  ;;  %v2697_v5 = vld [vmem:[%s4527_s0 + $0x320] sm:$0xf0] }
  0xba   :  { %v3177_v3 = vld [vmem:[%s4527_s0 + $0x31c] sm:$0xf0]  ;;  %v2700_v14 = vor.u32 %v3173_v4, %v2697_v5  ;;  %v2761_v4 = vld [vmem:[%s4527_s0 + $0x3a0] sm:$0xf0]  ;;  %v2767_v5 = vld [vmem:[%s4527_s0 + $0x388] sm:$0xf] }
  0xbb   :  { %v2696_v13 = vor.u32 %v3177_v3, %v2695_v2  ;;  %v3193_v2 = vld [vmem:[%s4527_s0 + $0x39c] sm:$0xf0]  ;;  %v3189_v3 = vld [vmem:[%s4527_s0 + $0x384] sm:$0xf] }
  0xbe   :  { %v1556_v16 = vpop.f32.mrf.mxu2  ;;  %v1381_v21 = vpop.f32.mrf.mxu0 }
  0xbf   :  { %v1645_v17 = vpop.f32.mrf.mxu3  ;;  %v1557_v20 = vadd.f32 %v1556_v16, %v1468_v6  ;;  %v1470_v22 = vpop.f32.mrf.mxu1  ;;  %v2703_v6 = vld [vmem:[%s4527_s0 + $0x308] sm:$0xf] }
  0xc0   :  { %v1471_v25 = vadd.f32 %v1470_v22, %v1381_v21  ;;  %v3253_v22 = vld [vmem:[%s4526_s1 + $0x180] sm:$0xff] }
  0xc1   :  { %v3823_v26 = vadd.f32 %v1645_v17, %v1557_v20  ;;  %1420 = vmatmul.bf16.gmra.mxu0 %v2632_v18  ;;  %v2704_v18 = vor.u32 %v3178_v8, %v2703_v6  ;;  %1903 = vmatpush.bf16.msrb.mxu2 %v3253_v22  ;;  %v3194_v6 = vld [vmem:[%s4527_s0 + $0x3a4] sm:$0xf0]  ;;  %v3190_v8 = vld [vmem:[%s4527_s0 + $0x38c] sm:$0xf] }
  0xc2   :  { %1509 = vmatmul.bf16.gmra.mxu1 %v2636_v19  ;;  %v2708_v19 = vor.u32 %v3174_v9, %v2705_v10  ;;  %v2769_v9 = vld [vmem:[%s4527_s0 + $0x3a8] sm:$0xf0] }
  0xc3   :  { %1598 = vmatmul.bf16.gmra.mxu2 %v2640_v23  ;;  %v3237_v23 = vld [vmem:[%s4526_s1 + $0x100] sm:$0xff] }
  0xc4   :  { %1687 = vmatmul.bf16.gmra.mxu3 %v2644_v24  ;;  %v3261_v24 = vld [vmem:[%s4526_s1 + $0x1c0] sm:$0xff]  ;;  %1725 = vmatpush.bf16.msrb.mxu0 %v3237_v23 }
  0xc5   :  { %1992 = vmatpush.bf16.msrb.mxu3 %v3261_v24 }
  0xc6   :  { %v1559_v30 = vpop.f32.mrf.mxu2  ;;  %v1383_v33 = vpop.f32.mrf.mxu0 }
  0xc7   :  { %v1648_v31 = vpop.f32.mrf.mxu3  ;;  %v1560_v32 = vadd.f32 %v1559_v30, %v1471_v25  ;;  %v1472_v34 = vpop.f32.mrf.mxu1 }
  0xc8   :  { %v1473_v35 = vadd.f32 %v1472_v34, %v1383_v33  ;;  %v3245_v33 = vld [vmem:[%s4526_s1 + $0x140] sm:$0xff] }
  0xc9   :  { %v3834_v36 = vadd.f32 %v1648_v31, %v1560_v32  ;;  %v2727_v34 = vld [vmem:[%s4527_s0 + $0x340] sm:$0xf]  ;;  %1814 = vmatpush.bf16.msrb.mxu1 %v3245_v33  ;;  %v3197_v33 = vld [vmem:[%s4527_s0 + $0x3c4] sm:$0xf] }
  0xce   :  { %v1561_v47 = vpop.f32.mrf.mxu2  ;;  %v1386_v52 = vpop.f32.mrf.mxu0 }
  0xcf   :  { %v1650_v48 = vpop.f32.mrf.mxu3  ;;  %v1562_v51 = vadd.f32 %v1561_v47, %v1473_v35  ;;  %v1475_v53 = vpop.f32.mrf.mxu1  ;;  %v3185_v35 = vld [vmem:[%s4527_s0 + $0x35c] sm:$0xf0]  ;;  %v2732_v47 = vor.u32 %v3181_v37, %v2729_v38  ;;  %v3202_v37 = vld [vmem:[%s4527_s0 + $0x3e4] sm:$0xf0]  ;;  %v3198_v38 = vld [vmem:[%s4527_s0 + $0x3cc] sm:$0xf] }
  0xd0   :  { %v1476_v56 = vadd.f32 %v1475_v53, %v1386_v52  ;;  %v2728_v46 = vor.u32 %v3185_v35, %v2727_v34  ;;  %v2740_v52 = vor.u32 %v3182_v41, %v2737_v42  ;;  %v2793_v34 = vld [vmem:[%s4527_s0 + $0x3e0] sm:$0xf0]  ;;  %v2799_v35 = vld [vmem:[%s4527_s0 + $0x3c8] sm:$0xf] }
  0xd1   :  { %v3863_v57 = vadd.f32 %v1650_v48, %v1562_v51  ;;  %1425 = vmatmul.bf16.gmra.mxu0 %v2664_v49  ;;  %v2736_v51 = vor.u32 %v3186_v40, %v2735_v39  ;;  %v2801_v39 = vld [vmem:[%s4527_s0 + $0x3e8] sm:$0xf0] }
  0xd2   :  { %1514 = vmatmul.bf16.gmra.mxu1 %v2668_v50 }
  0xd3   :  { %1603 = vmatmul.bf16.gmra.mxu2 %v2672_v54 }
  0xd4   :  { %1692 = vmatmul.bf16.gmra.mxu3 %v2676_v55 }
  0xd6   :  { %v1564_v58 = vpop.f32.mrf.mxu2  ;;  %v1388_v61 = vpop.f32.mrf.mxu0 }
  0xd7   :  { %v1653_v59 = vpop.f32.mrf.mxu3  ;;  %v1565_v60 = vadd.f32 %v1564_v58, %v1476_v56  ;;  %v1477_v62 = vpop.f32.mrf.mxu1 }
  0xd8   :  { %v1478_v63 = vadd.f32 %v1477_v62, %v1388_v61 }
  0xd9   :  { %v3865_v1 = vadd.f32 %v1653_v59, %v1565_v60 }
  0xde   :  { %v1566_v11 = vpop.f32.mrf.mxu2  ;;  %v1391_v16 = vpop.f32.mrf.mxu0 }
  0xdf   :  { %v1655_v12 = vpop.f32.mrf.mxu3  ;;  %v1567_v15 = vadd.f32 %v1566_v11, %v1478_v63  ;;  %v1480_v17 = vpop.f32.mrf.mxu1  ;;  %v2759_v63 = vld [vmem:[%s4527_s0 + $0x380] sm:$0xf] }
  0xe0   :  { %v1481_v20 = vadd.f32 %v1480_v17, %v1391_v16  ;;  %v2768_v17 = vor.u32 %v3194_v6, %v2767_v5  ;;  %v3084_v5 = vld [vmem:[%s4527_s0 + $0x34] sm:$0xf0]  ;;  %v3080_v6 = vld [vmem:[%s4527_s0 + $0x1c] sm:$0xf] }
  0xe1   :  { %v3891_v21 = vadd.f32 %v1655_v12, %v1567_v15  ;;  %1430 = vmatmul.bf16.gmra.mxu0 %v2696_v13  ;;  %v2760_v12 = vor.u32 %v3193_v2, %v2759_v63  ;;  %v2764_v13 = vor.u32 %v3189_v3, %v2761_v4  ;;  %v3083_v63 = vld [vmem:[%s4527_s0 + $0x2c] sm:$0xf0]  ;;  %v3079_v2 = vld [vmem:[%s4527_s0 + $0x14] sm:$0xf]  ;;  %v2335_v4 = vld [vmem:[%s4527_s0 + $0x18] sm:$0xf] }
  0xe2   :  { %1519 = vmatmul.bf16.gmra.mxu1 %v2700_v14  ;;  %v2329_v3 = vld [vmem:[%s4527_s0 + $0x30] sm:$0xf0] }
  0xe3   :  { %1608 = vmatmul.bf16.gmra.mxu2 %v2704_v18  ;;  %v2772_v18 = vor.u32 %v3190_v8, %v2769_v9  ;;  %v2337_v8 = vld [vmem:[%s4527_s0 + $0x38] sm:$0xf0] }
  0xe4   :  { %1697 = vmatmul.bf16.gmra.mxu3 %v2708_v19 }
  0xe6   :  { %v1569_v25 = vpop.f32.mrf.mxu2  ;;  %v1393_v29 = vpop.f32.mrf.mxu0 }
  0xe7   :  { %v1658_v27 = vpop.f32.mrf.mxu3  ;;  %v1570_v28 = vadd.f32 %v1569_v25, %v1481_v20  ;;  %v1482_v30 = vpop.f32.mrf.mxu1 }
  0xe8   :  { %v1483_v31 = vadd.f32 %v1482_v30, %v1393_v29  ;;  %v2791_v30 = vld [vmem:[%s4527_s0 + $0x3c0] sm:$0xf] }
  0xe9   :  { %v3902_v32 = vadd.f32 %v1658_v27, %v1570_v28 }
  0xee   :  { %v1571_v43 = vpop.f32.mrf.mxu2  ;;  %v1396_v49 = vpop.f32.mrf.mxu0 }
  0xef   :  { %v1660_v45 = vpop.f32.mrf.mxu3  ;;  %v1572_v48 = vadd.f32 %v1571_v43, %v1483_v31  ;;  %v1485_v50 = vpop.f32.mrf.mxu1  ;;  %v3201_v31 = vld [vmem:[%s4527_s0 + $0x3dc] sm:$0xf0]  ;;  %v2796_v43 = vor.u32 %v3197_v33, %v2793_v34  ;;  %v3091_v33 = vld [vmem:[%s4527_s0 + $0x6c] sm:$0xf0]  ;;  %v3087_v34 = vld [vmem:[%s4527_s0 + $0x54] sm:$0xf] }
  0xf0   :  { %v1486_v53 = vadd.f32 %v1485_v50, %v1396_v49  ;;  %v2792_v42 = vor.u32 %v3201_v31, %v2791_v30  ;;  %v2804_v49 = vor.u32 %v3198_v38, %v2801_v39  ;;  %v2359_v31 = vld [vmem:[%s4527_s0 + $0x50] sm:$0xf]  ;;  %v3092_v38 = vld [vmem:[%s4527_s0 + $0x74] sm:$0xf0]  ;;  %v3088_v39 = vld [vmem:[%s4527_s0 + $0x5c] sm:$0xf] }
  0xf1   :  { %v3931_v54 = vadd.f32 %v1660_v45, %v1572_v48  ;;  %1435 = vmatmul.bf16.gmra.mxu0 %v2728_v46  ;;  %v2800_v48 = vor.u32 %v3202_v37, %v2799_v35  ;;  %v2361_v35 = vld [vmem:[%s4527_s0 + $0x70] sm:$0xf0]  ;;  %v2367_v37 = vld [vmem:[%s4527_s0 + $0x58] sm:$0xf] }
  0xf2   :  { %1524 = vmatmul.bf16.gmra.mxu1 %v2732_v47 }
  0xf3   :  { %1613 = vmatmul.bf16.gmra.mxu2 %v2736_v51 }
  0xf4   :  { %1702 = vmatmul.bf16.gmra.mxu3 %v2740_v52 }
  0xf6   :  { %v1574_v55 = vpop.f32.mrf.mxu2  ;;  %v1398_v59 = vpop.f32.mrf.mxu0 }
  0xf7   :  { %v1663_v56 = vpop.f32.mrf.mxu3  ;;  %v1575_v58 = vadd.f32 %v1574_v55, %v1486_v53  ;;  %v1487_v60 = vpop.f32.mrf.mxu1 }
  0xf8   :  { %v1488_v61 = vadd.f32 %v1487_v60, %v1398_v59 }
  0xf9   :  { %v3933_v62 = vadd.f32 %v1663_v56, %v1575_v58 }
  0xfe   :  { %v1576_v10 = vpop.f32.mrf.mxu2  ;;  %v1401_v15 = vpop.f32.mrf.mxu0 }
  0xff   :  { %v1665_v11 = vpop.f32.mrf.mxu3  ;;  %v1577_v14 = vadd.f32 %v1576_v10, %v1488_v61  ;;  %v1490_v16 = vpop.f32.mrf.mxu1  ;;  %v2327_v61 = vld [vmem:[%s4527_s0 + $0x10] sm:$0xf] }
 0x100   :  { %v1491_v19 = vadd.f32 %v1490_v16, %v1401_v15  ;;  %v2336_v16 = vor.u32 %v3084_v5, %v2335_v4  ;;  %v3099_v4 = vld [vmem:[%s4527_s0 + $0xac] sm:$0xf0]  ;;  %v3095_v5 = vld [vmem:[%s4527_s0 + $0x94] sm:$0xf] }
 0x101   :  { %v3959_v20 = vadd.f32 %v1665_v11, %v1577_v14  ;;  %1440 = vmatmul.bf16.gmra.mxu0 %v2760_v12  ;;  %v2328_v11 = vor.u32 %v3083_v63, %v2327_v61  ;;  %v2332_v12 = vor.u32 %v3079_v2, %v2329_v3  ;;  %v2391_v3 = vld [vmem:[%s4527_s0 + $0x90] sm:$0xf] }
 0x102   :  { %1529 = vmatmul.bf16.gmra.mxu1 %v2764_v13 }
 0x103   :  { %1618 = vmatmul.bf16.gmra.mxu2 %v2768_v17  ;;  %v2340_v17 = vor.u32 %v3080_v6, %v2337_v8  ;;  %v2393_v6 = vld [vmem:[%s4527_s0 + $0xb0] sm:$0xf0]  ;;  %v2399_v8 = vld [vmem:[%s4527_s0 + $0x98] sm:$0xf] }
 0x104   :  { %1707 = vmatmul.bf16.gmra.mxu3 %v2772_v18 }
 0x106   :  { %v1579_v22 = vpop.f32.mrf.mxu2  ;;  %v1403_v25 = vpop.f32.mrf.mxu0 }
 0x107   :  { %v1668_v23 = vpop.f32.mrf.mxu3  ;;  %v1580_v24 = vadd.f32 %v1579_v22, %v1491_v19  ;;  %v1492_v27 = vpop.f32.mrf.mxu1 }
 0x108   :  { %v1493_v28 = vadd.f32 %v1492_v27, %v1403_v25 }
 0x109   :  { %v3961_v29 = vadd.f32 %v1668_v23, %v1580_v24 }
 0x10e   :  { %v1581_v40 = vpop.f32.mrf.mxu2  ;;  %v1406_v46 = vpop.f32.mrf.mxu0 }
 0x10f   :  { %v1670_v41 = vpop.f32.mrf.mxu3  ;;  %v1582_v45 = vadd.f32 %v1581_v40, %v1493_v28  ;;  %v1495_v47 = vpop.f32.mrf.mxu1  ;;  %v2369_v40 = vld [vmem:[%s4527_s0 + $0x78] sm:$0xf0] }
 0x110   :  { %v1496_v50 = vadd.f32 %v1495_v47, %v1406_v46 }
 0x111   :  { %v3987_v51 = vadd.f32 %v1670_v41, %v1582_v45  ;;  %1445 = vmatmul.bf16.gmra.mxu0 %v2792_v42  ;;  %v2364_v45 = vor.u32 %v3087_v34, %v2361_v35 }
 0x112   :  { %1534 = vmatmul.bf16.gmra.mxu1 %v2796_v43  ;;  %v2360_v43 = vor.u32 %v3091_v33, %v2359_v31 }
 0x113   :  { %1623 = vmatmul.bf16.gmra.mxu2 %v2800_v48 }
 0x114   :  { %1712 = vmatmul.bf16.gmra.mxu3 %v2804_v49  ;;  %v2368_v49 = vor.u32 %v3092_v38, %v2367_v37  ;;  %v2423_v38 = vld [vmem:[%s4527_s0 + $0xd0] sm:$0xf] }
 0x116   :  { %v1584_v52 = vpop.f32.mrf.mxu2  ;;  %v1408_v56 = vpop.f32.mrf.mxu0 }
 0x117   :  { %v1673_v53 = vpop.f32.mrf.mxu3  ;;  %v1585_v55 = vadd.f32 %v1584_v52, %v1496_v50  ;;  %v1497_v58 = vpop.f32.mrf.mxu1  ;;  %v2372_v50 = vor.u32 %v3088_v39, %v2369_v40  ;;  %v3107_v39 = vld [vmem:[%s4527_s0 + $0xec] sm:$0xf0]  ;;  %v3103_v40 = vld [vmem:[%s4527_s0 + $0xd4] sm:$0xf] }
 0x118   :  { %v1498_v59 = vadd.f32 %v1497_v58, %v1408_v56 }
 0x119   :  { %v3989_v60 = vadd.f32 %v1673_v53, %v1585_v55 }
 0x11e   :  { %v1586_v9 = vpop.f32.mrf.mxu2  ;;  %v1411_v14 = vpop.f32.mrf.mxu0 }
 0x11f   :  { %v1675_v10 = vpop.f32.mrf.mxu3  ;;  %v1587_v13 = vadd.f32 %v1586_v9, %v1498_v59  ;;  %v1500_v15 = vpop.f32.mrf.mxu1  ;;  %v3100_v9 = vld [vmem:[%s4527_s0 + $0xb4] sm:$0xf0] }
 0x120   :  { %v1501_v18 = vadd.f32 %v1500_v15, %v1411_v14  ;;  %v2392_v14 = vor.u32 %v3099_v4, %v2391_v3  ;;  %v2396_v15 = vor.u32 %v3095_v5, %v2393_v6 }
 0x121   :  { %v4015_v19 = vadd.f32 %v1675_v10, %v1587_v13  ;;  %1726 = vmatmul.bf16.vlgmr.msrb.gmra.mxu0 %v2328_v11  ;;  %v3096_v10 = vld [vmem:[%s4527_s0 + $0x9c] sm:$0xf] }
 0x122   :  { %1815 = vmatmul.bf16.vlgmr.msrb.gmra.mxu1 %v2332_v12  ;;  %v2401_v11 = vld [vmem:[%s4527_s0 + $0xb8] sm:$0xf0] }
 0x123   :  { %1904 = vmatmul.bf16.vlgmr.msrb.gmra.mxu2 %v2336_v16 }
 0x124   :  { %1993 = vmatmul.bf16.vlgmr.msrb.gmra.mxu3 %v2340_v17 }
 0x126   :  { %v1589_v22 = vpop.f32.mrf.mxu2  ;;  %v1413_v25 = vpop.f32.mrf.mxu0 }
 0x127   :  { %v1678_v23 = vpop.f32.mrf.mxu3  ;;  %v1590_v24 = vadd.f32 %v1589_v22, %v1501_v18  ;;  %v1502_v27 = vpop.f32.mrf.mxu1  ;;  %v2400_v22 = vor.u32 %v3100_v9, %v2399_v8 }
 0x128   :  { %v1503_v28 = vadd.f32 %v1502_v27, %v1413_v25 }
 0x129   :  { %v4017_v30 = vadd.f32 %v1678_v23, %v1590_v24  ;;  %v2404_v23 = vor.u32 %v3096_v10, %v2401_v11  ;;  %v2455_v11 = vld [vmem:[%s4527_s0 + $0x110] sm:$0xf] }
 0x12e   :  { %v1591_v41 = vpop.f32.mrf.mxu2  ;;  %v1416_v47 = vpop.f32.mrf.mxu0 }
 0x12f   :  { %v1680_v42 = vpop.f32.mrf.mxu3  ;;  %v1592_v46 = vadd.f32 %v1591_v41, %v1503_v28  ;;  %v1505_v48 = vpop.f32.mrf.mxu1  ;;  %v2425_v41 = vld [vmem:[%s4527_s0 + $0xf0] sm:$0xf0] }
 0x130   :  { %v1506_v52 = vadd.f32 %v1505_v48, %v1416_v47 }
 0x131   :  { %v4043_v53 = vadd.f32 %v1680_v42, %v1592_v46  ;;  %1731 = vmatmul.bf16.gmra.mxu0 %v2360_v43  ;;  %v2431_v42 = vld [vmem:[%s4527_s0 + $0xd8] sm:$0xf]  ;;  %v2433_v46 = vld [vmem:[%s4527_s0 + $0xf8] sm:$0xf0] }
 0x132   :  { %1820 = vmatmul.bf16.gmra.mxu1 %v2364_v45  ;;  %v3108_v43 = vld [vmem:[%s4527_s0 + $0xf4] sm:$0xf0]  ;;  %v3104_v45 = vld [vmem:[%s4527_s0 + $0xdc] sm:$0xf] }
 0x133   :  { %1909 = vmatmul.bf16.gmra.mxu2 %v2368_v49  ;;  %v2424_v49 = vor.u32 %v3107_v39, %v2423_v38 }
 0x134   :  { %1998 = vmatmul.bf16.gmra.mxu3 %v2372_v50  ;;  %v2428_v50 = vor.u32 %v3103_v40, %v2425_v41 }
 0x136   :  { %v1594_v55 = vpop.f32.mrf.mxu2  ;;  %v1418_v59 = vpop.f32.mrf.mxu0 }
 0x137   :  { %v1683_v56 = vpop.f32.mrf.mxu3  ;;  %v1595_v58 = vadd.f32 %v1594_v55, %v1506_v52  ;;  %v1507_v61 = vpop.f32.mrf.mxu1 }
 0x138   :  { %v1508_v63 = vadd.f32 %v1507_v61, %v1418_v59  ;;  %v2436_v59 = vor.u32 %v3104_v45, %v2433_v46 }
 0x139   :  { %v4045_v2 = vadd.f32 %v1683_v56, %v1595_v58  ;;  %v2432_v58 = vor.u32 %v3108_v43, %v2431_v42 }
 0x13e   :  { %v1596_v12 = vpop.f32.mrf.mxu2  ;;  %v1421_v17 = vpop.f32.mrf.mxu0 }
 0x13f   :  { %v1685_v13 = vpop.f32.mrf.mxu3  ;;  %v1597_v16 = vadd.f32 %v1596_v12, %v1508_v63  ;;  %v1510_v18 = vpop.f32.mrf.mxu1  ;;  %v3115_v12 = vld [vmem:[%s4527_s0 + $0x12c] sm:$0xf0] }
 0x140   :  { %v1511_v24 = vadd.f32 %v1510_v18, %v1421_v17  ;;  %v3112_v17 = vld [vmem:[%s4527_s0 + $0x11c] sm:$0xf] }
 0x141   :  { %v4071_v25 = vadd.f32 %v1685_v13, %v1597_v16  ;;  %1736 = vmatmul.bf16.gmra.mxu0 %v2392_v14  ;;  %v3111_v13 = vld [vmem:[%s4527_s0 + $0x114] sm:$0xf]  ;;  %v3116_v16 = vld [vmem:[%s4527_s0 + $0x134] sm:$0xf0]  ;;  %v2465_v18 = vld [vmem:[%s4527_s0 + $0x138] sm:$0xf0] }
 0x142   :  { %1825 = vmatmul.bf16.gmra.mxu1 %v2396_v15  ;;  %v2457_v14 = vld [vmem:[%s4527_s0 + $0x130] sm:$0xf0]  ;;  %v2463_v15 = vld [vmem:[%s4527_s0 + $0x118] sm:$0xf] }
 0x143   :  { %1914 = vmatmul.bf16.gmra.mxu2 %v2400_v22 }
 0x144   :  { %2003 = vmatmul.bf16.gmra.mxu3 %v2404_v23 }
 0x146   :  { %v1599_v27 = vpop.f32.mrf.mxu2  ;;  %v1423_v33 = vpop.f32.mrf.mxu0 }
 0x147   :  { %v1688_v28 = vpop.f32.mrf.mxu3  ;;  %v1600_v31 = vadd.f32 %v1599_v27, %v1511_v24  ;;  %v1512_v34 = vpop.f32.mrf.mxu1  ;;  %v2456_v24 = vor.u32 %v3115_v12, %v2455_v11  ;;  %v2460_v27 = vor.u32 %v3111_v13, %v2457_v14 }
 0x148   :  { %v1513_v35 = vadd.f32 %v1512_v34, %v1423_v33  ;;  %v2464_v34 = vor.u32 %v3116_v16, %v2463_v15 }
 0x149   :  { %v4073_v37 = vadd.f32 %v1688_v28, %v1600_v31 }
 0x14e   :  { %v1601_v47 = vpop.f32.mrf.mxu2  ;;  %v1426_v55 = vpop.f32.mrf.mxu0 }
 0x14f   :  { %v1690_v48 = vpop.f32.mrf.mxu3  ;;  %v1602_v52 = vadd.f32 %v1601_v47, %v1513_v35  ;;  %v1515_v56 = vpop.f32.mrf.mxu1  ;;  %v2468_v35 = vor.u32 %v3112_v17, %v2465_v18 }
 0x150   :  { %v1516_v61 = vadd.f32 %v1515_v56, %v1426_v55  ;;  %v2495_v55 = vld [vmem:[%s4527_s0 + $0x158] sm:$0xf] }
 0x151   :  { %v4099_v63 = vadd.f32 %v1690_v48, %v1602_v52  ;;  %1741 = vmatmul.bf16.gmra.mxu0 %v2424_v49  ;;  %v2487_v48 = vld [vmem:[%s4527_s0 + $0x150] sm:$0xf]  ;;  %v2489_v52 = vld [vmem:[%s4527_s0 + $0x170] sm:$0xf0]  ;;  %v3124_v56 = vld [vmem:[%s4527_s0 + $0x174] sm:$0xf0] }
 0x152   :  { %1830 = vmatmul.bf16.gmra.mxu1 %v2428_v50  ;;  %v3123_v49 = vld [vmem:[%s4527_s0 + $0x16c] sm:$0xf0]  ;;  %v3119_v50 = vld [vmem:[%s4527_s0 + $0x154] sm:$0xf]  ;;  %v2496_v11 = vor.u32 %v3124_v56, %v2495_v55 }
 0x153   :  { %1919 = vmatmul.bf16.gmra.mxu2 %v2432_v58  ;;  %v3120_v58 = vld [vmem:[%s4527_s0 + $0x15c] sm:$0xf] }
 0x154   :  { %2008 = vmatmul.bf16.gmra.mxu3 %v2436_v59  ;;  %v2497_v59 = vld [vmem:[%s4527_s0 + $0x178] sm:$0xf0] }
 0x155   :  { %v2500_v12 = vor.u32 %v3120_v58, %v2497_v59 }
 0x156   :  { %v1604_v3 = vpop.f32.mrf.mxu2  ;;  %v1428_v6 = vpop.f32.mrf.mxu0 }
 0x157   :  { %v1693_v4 = vpop.f32.mrf.mxu3  ;;  %v1605_v5 = vadd.f32 %v1604_v3, %v1516_v61  ;;  %v1517_v8 = vpop.f32.mrf.mxu1 }
 0x158   :  { %v1518_v9 = vadd.f32 %v1517_v8, %v1428_v6 }
 0x159   :  { %v4101_v10 = vadd.f32 %v1693_v4, %v1605_v5  ;;  %v2488_v4 = vor.u32 %v3123_v49, %v2487_v48  ;;  %v2492_v5 = vor.u32 %v3119_v50, %v2489_v52 }
 0x15e   :  { %v1606_v22 = vpop.f32.mrf.mxu2  ;;  %v1431_v31 = vpop.f32.mrf.mxu0 }
 0x15f   :  { %v1695_v23 = vpop.f32.mrf.mxu3  ;;  %v1607_v28 = vadd.f32 %v1606_v22, %v1518_v9  ;;  %v1520_v33 = vpop.f32.mrf.mxu1 }
 0x160   :  { %v1521_v38 = vadd.f32 %v1520_v33, %v1431_v31  ;;  %v3127_v31 = vld [vmem:[%s4527_s0 + $0x194] sm:$0xf] }
 0x161   :  { %v4127_v39 = vadd.f32 %v1695_v23, %v1607_v28  ;;  %1746 = vmatmul.bf16.gmra.mxu0 %v2456_v24  ;;  %v3131_v28 = vld [vmem:[%s4527_s0 + $0x1ac] sm:$0xf0]  ;;  %v2521_v33 = vld [vmem:[%s4527_s0 + $0x1b0] sm:$0xf0] }
 0x162   :  { %1835 = vmatmul.bf16.gmra.mxu1 %v2460_v27  ;;  %v2519_v27 = vld [vmem:[%s4527_s0 + $0x190] sm:$0xf] }
 0x163   :  { %1924 = vmatmul.bf16.gmra.mxu2 %v2464_v34  ;;  %v2527_v34 = vld [vmem:[%s4527_s0 + $0x198] sm:$0xf] }
 0x164   :  { %2013 = vmatmul.bf16.gmra.mxu3 %v2468_v35  ;;  %v3132_v35 = vld [vmem:[%s4527_s0 + $0x1b4] sm:$0xf0] }
 0x165   :  { %v2528_v50 = vor.u32 %v3132_v35, %v2527_v34 }
 0x166   :  { %v1609_v40 = vpop.f32.mrf.mxu2  ;;  %v1433_v43 = vpop.f32.mrf.mxu0 }
 0x167   :  { %v1698_v41 = vpop.f32.mrf.mxu3  ;;  %v1610_v42 = vadd.f32 %v1609_v40, %v1521_v38  ;;  %v1522_v45 = vpop.f32.mrf.mxu1  ;;  %v3128_v38 = vld [vmem:[%s4527_s0 + $0x19c] sm:$0xf] }
 0x168   :  { %v1523_v46 = vadd.f32 %v1522_v45, %v1433_v43  ;;  %v2529_v40 = vld [vmem:[%s4527_s0 + $0x1b8] sm:$0xf0]  ;;  %v2520_v43 = vor.u32 %v3131_v28, %v2519_v27  ;;  %v2524_v45 = vor.u32 %v3127_v31, %v2521_v33 }
 0x169   :  { %v4129_v47 = vadd.f32 %v1698_v41, %v1610_v42  ;;  %v2532_v52 = vor.u32 %v3128_v38, %v2529_v40 }
 0x16e   :  { %v1611_v61 = vpop.f32.mrf.mxu2  ;;  %v1436_v8 = vpop.f32.mrf.mxu0 }
 0x16f   :  { %v1700_v3 = vpop.f32.mrf.mxu3  ;;  %v1612_v6 = vadd.f32 %v1611_v61, %v1523_v46  ;;  %v1525_v9 = vpop.f32.mrf.mxu1 }
 0x170   :  { %v1526_v13 = vadd.f32 %v1525_v9, %v1436_v8  ;;  %v2551_v8 = vld [vmem:[%s4527_s0 + $0x1d0] sm:$0xf] }
 0x171   :  { %v4155_v14 = vadd.f32 %v1700_v3, %v1612_v6  ;;  %1751 = vmatmul.bf16.gmra.mxu0 %v2488_v4  ;;  %v3139_v9 = vld [vmem:[%s4527_s0 + $0x1ec] sm:$0xf0] }
 0x172   :  { %1840 = vmatmul.bf16.gmra.mxu1 %v2492_v5 }
 0x173   :  { %1929 = vmatmul.bf16.gmra.mxu2 %v2496_v11  ;;  %v3135_v11 = vld [vmem:[%s4527_s0 + $0x1d4] sm:$0xf] }
 0x174   :  { %2018 = vmatmul.bf16.gmra.mxu3 %v2500_v12  ;;  %v2553_v12 = vld [vmem:[%s4527_s0 + $0x1f0] sm:$0xf0] }
 0x175   :  { %v2556_v27 = vor.u32 %v3135_v11, %v2553_v12 }
 0x176   :  { %v1614_v15 = vpop.f32.mrf.mxu2  ;;  %v1438_v18 = vpop.f32.mrf.mxu0 }
 0x177   :  { %v1703_v16 = vpop.f32.mrf.mxu3  ;;  %v1615_v17 = vadd.f32 %v1614_v15, %v1526_v13  ;;  %v1527_v22 = vpop.f32.mrf.mxu1  ;;  %v2559_v13 = vld [vmem:[%s4527_s0 + $0x1d8] sm:$0xf] }
 0x178   :  { %v1528_v23 = vadd.f32 %v1527_v22, %v1438_v18  ;;  %v3140_v15 = vld [vmem:[%s4527_s0 + $0x1f4] sm:$0xf0] }
 0x179   :  { %v4157_v24 = vadd.f32 %v1703_v16, %v1615_v17  ;;  %v3136_v16 = vld [vmem:[%s4527_s0 + $0x1dc] sm:$0xf]  ;;  %v2560_v34 = vor.u32 %v3140_v15, %v2559_v13 }
 0x17a   :  { %v2561_v17 = vld [vmem:[%s4527_s0 + $0x1f8] sm:$0xf0] }
 0x17b   :  { %v2564_v35 = vor.u32 %v3136_v16, %v2561_v17 }
 0x17e   :  { %v1616_v41 = vpop.f32.mrf.mxu2  ;;  %v1441_v48 = vpop.f32.mrf.mxu0 }
 0x17f   :  { %v1705_v42 = vpop.f32.mrf.mxu3  ;;  %v1617_v46 = vadd.f32 %v1616_v41, %v1528_v23  ;;  %v1530_v49 = vpop.f32.mrf.mxu1  ;;  %v2552_v23 = vor.u32 %v3139_v9, %v2551_v8 }
 0x180   :  { %v1531_v55 = vadd.f32 %v1530_v49, %v1441_v48 }
 0x181   :  { %v4183_v56 = vadd.f32 %v1705_v42, %v1617_v46  ;;  %1756 = vmatmul.bf16.gmra.mxu0 %v2520_v43 }
 0x182   :  { %1845 = vmatmul.bf16.gmra.mxu1 %v2524_v45 }
 0x183   :  { %1934 = vmatmul.bf16.gmra.mxu2 %v2528_v50  ;;  %v2583_v50 = vld [vmem:[%s4527_s0 + $0x210] sm:$0xf] }
 0x184   :  { %2023 = vmatmul.bf16.gmra.mxu3 %v2532_v52  ;;  %v3147_v52 = vld [vmem:[%s4527_s0 + $0x22c] sm:$0xf0] }
 0x185   :  { %v2584_v9 = vor.u32 %v3147_v52, %v2583_v50  ;;  %v4270_v50 = vld [vmem:[%s4528_s2] ss:$0 sm:$0xff] }
 0x186   :  { %v1619_v58 = vpop.f32.mrf.mxu2  ;;  %v1443_v3 = vpop.f32.mrf.mxu0 }
 0x187   :  { %v1708_v59 = vpop.f32.mrf.mxu3  ;;  %v1620_v61 = vadd.f32 %v1619_v58, %v1531_v55  ;;  %v1532_v4 = vpop.f32.mrf.mxu1  ;;  %v3143_v55 = vld [vmem:[%s4527_s0 + $0x214] sm:$0xf] }
 0x188   :  { %v1533_v5 = vadd.f32 %v1532_v4, %v1443_v3  ;;  %v2585_v58 = vld [vmem:[%s4527_s0 + $0x230] sm:$0xf0]  ;;  %v3144_v3 = vld [vmem:[%s4527_s0 + $0x21c] sm:$0xf] }
 0x189   :  { %v4185_v6 = vadd.f32 %v1708_v59, %v1620_v61  ;;  %v2591_v59 = vld [vmem:[%s4527_s0 + $0x218] sm:$0xf]  ;;  %v2593_v4 = vld [vmem:[%s4527_s0 + $0x238] sm:$0xf0]  ;;  %v2588_v11 = vor.u32 %v3143_v55, %v2585_v58 }
 0x18a   :  { %v3148_v61 = vld [vmem:[%s4527_s0 + $0x234] sm:$0xf0]  ;;  %v2596_v17 = vor.u32 %v3144_v3, %v2593_v4 }
 0x18b   :  { %v2592_v16 = vor.u32 %v3148_v61, %v2591_v59 }
 0x18e   :  { %v1621_v18 = vpop.f32.mrf.mxu2  ;;  %v1446_v31 = vpop.f32.mrf.mxu0 }
 0x18f   :  { %v1710_v22 = vpop.f32.mrf.mxu3  ;;  %v1622_v28 = vadd.f32 %v1621_v18, %v1533_v5  ;;  %v1535_v33 = vpop.f32.mrf.mxu1 }
 0x190   :  { %v1536_v38 = vadd.f32 %v1535_v33, %v1446_v31 }
 0x191   :  { %v4211_v40 = vadd.f32 %v1710_v22, %v1622_v28  ;;  %1761 = vmatmul.bf16.gmra.mxu0 %v2552_v23 }
 0x192   :  { %1850 = vmatmul.bf16.gmra.mxu1 %v2556_v27 }
 0x193   :  { %1939 = vmatmul.bf16.gmra.mxu2 %v2560_v34 }
 0x194   :  { %2028 = vmatmul.bf16.gmra.mxu3 %v2564_v35 }
 0x196   :  { %v1624_v41 = vpop.f32.mrf.mxu2  ;;  %v1448_v45 = vpop.f32.mrf.mxu0 }
 0x197   :  { %v1713_v42 = vpop.f32.mrf.mxu3  ;;  %v1625_v43 = vadd.f32 %v1624_v41, %v1536_v38  ;;  %v1537_v46 = vpop.f32.mrf.mxu1  ;;  %v2615_v38 = vld [vmem:[%s4527_s0 + $0x250] sm:$0xf] }
 0x198   :  { %v1538_v48 = vadd.f32 %v1537_v46, %v1448_v45  ;;  %v3155_v41 = vld [vmem:[%s4527_s0 + $0x26c] sm:$0xf0]  ;;  %v3152_v45 = vld [vmem:[%s4527_s0 + $0x25c] sm:$0xf] }
 0x199   :  { %v4213_v49 = vadd.f32 %v1713_v42, %v1625_v43  ;;  %v2617_v42 = vld [vmem:[%s4527_s0 + $0x270] sm:$0xf0]  ;;  %v3156_v43 = vld [vmem:[%s4527_s0 + $0x274] sm:$0xf0]  ;;  %v2625_v46 = vld [vmem:[%s4527_s0 + $0x278] sm:$0xf0]  ;;  %v2616_v59 = vor.u32 %v3155_v41, %v2615_v38 }
 0x19a   :  { %v3163_v38 = vld [vmem:[%s4527_s0 + $0x2ac] sm:$0xf0]  ;;  %v3159_v41 = vld [vmem:[%s4527_s0 + $0x294] sm:$0xf] }
 0x19e   :  { %v1626_v5 = vpop.f32.mrf.mxu2  ;;  %v1727_v13 = vpop.f32.mrf.mxu0 }
 0x19f   :  { %v1715_v8 = vpop.f32.mrf.mxu3  ;;  %v1627_v12 = vadd.f32 %v1626_v5, %v1538_v48  ;;  %v1816_v15 = vpop.f32.mrf.mxu1  ;;  %v1728_v22 = vadd.f32 %v1727_v13, %v3766_v44  ;;  %v3151_v44 = vld [vmem:[%s4527_s0 + $0x254] sm:$0xf] }
 0x1a0   :  { %v2620_v61 = vor.u32 %v3151_v44, %v2617_v42  ;;  %v2649_v44 = vld [vmem:[%s4527_s0 + $0x2b0] sm:$0xf0]  ;;  %v3164_v42 = vld [vmem:[%s4527_s0 + $0x2b4] sm:$0xf0] }
 0x1a1   :  { %v4239_v18 = vadd.f32 %v1715_v8, %v1627_v12  ;;  %1766 = vmatmul.bf16.gmra.mxu0 %v2584_v9  ;;  %v1817_v28 = vadd.f32 %v1816_v15, %v1728_v22  ;;  %v2628_v9 = vor.u32 %v3152_v45, %v2625_v46 }
 0x1a2   :  { %1855 = vmatmul.bf16.gmra.mxu1 %v2588_v11 }
 0x1a3   :  { %1944 = vmatmul.bf16.gmra.mxu2 %v2592_v16 }
 0x1a4   :  { %2033 = vmatmul.bf16.gmra.mxu3 %v2596_v17 }
 0x1a6   :  { %v1905_v23 = vpop.f32.mrf.mxu2  ;;  %v1729_v31 = vpop.f32.mrf.mxu0 }
 0x1a7   :  { %v1994_v27 = vpop.f32.mrf.mxu3  ;;  %v1818_v33 = vpop.f32.mrf.mxu1  ;;  %v1906_v34 = vadd.f32 %v1905_v23, %v1817_v28  ;;  %v1730_v35 = vadd.f32 %v1729_v31, %v3795_v0  ;;  %v2623_v0 = vld [vmem:[%s4527_s0 + $0x258] sm:$0xf] }
 0x1a8   :  { %v2624_v8 = vor.u32 %v3156_v43, %v2623_v0  ;;  %v3160_v0 = vld [vmem:[%s4527_s0 + $0x29c] sm:$0xf] }
 0x1a9   :  { %v1995_v48 = vadd.f32 %v1994_v27, %v1906_v34  ;;  %v1819_v52 = vadd.f32 %v1818_v33, %v1730_v35  ;;  %v2657_v43 = vld [vmem:[%s4527_s0 + $0x2b8] sm:$0xf0] }
 0x1ab   :  { %v2177_v11 = vadd.f32 %v4270_v50, %v1995_v48 }
 0x1ad   :  { %v2209_v16 = vmax.f32 %v2177_v11, 0.0 }
 0x1ae   :  { %v1907_v55 = vpop.f32.mrf.mxu2  ;;  %v1732_v4 = vpop.f32.mrf.mxu0 }
 0x1af   :  { %v1996_v58 = vpop.f32.mrf.mxu3  ;;  %v1908_v3 = vadd.f32 %v1907_v55, %v1819_v52  ;;  %v1821_v5 = vpop.f32.mrf.mxu1  ;;  %v1733_v15 = vadd.f32 %v1732_v4, %v3797_v7  ;;  %v2647_v7 = vld [vmem:[%s4527_s0 + $0x290] sm:$0xf] }
 0x1b0   :  { %v2648_v55 = vor.u32 %v3163_v38, %v2647_v7  ;;  %v2681_v7 = vld [vmem:[%s4527_s0 + $0x2f0] sm:$0xf0]  ;;  %v3172_v38 = vld [vmem:[%s4527_s0 + $0x2f4] sm:$0xf0] }
 0x1b1   :  { %v1997_v12 = vadd.f32 %v1996_v58, %v1908_v3  ;;  %1771 = vmatmul.bf16.gmra.mxu0 %v2616_v59  ;;  %v1822_v28 = vadd.f32 %v1821_v5, %v1733_v15  ;;  %v2652_v58 = vor.u32 %v3159_v41, %v2649_v44  ;;  %v2660_v5 = vor.u32 %v3160_v0, %v2657_v43  ;;  %v3168_v41 = vld [vmem:[%s4527_s0 + $0x2dc] sm:$0xf] }
 0x1b2   :  { %1860 = vmatmul.bf16.gmra.mxu1 %v2620_v61  ;;  %v2689_v44 = vld [vmem:[%s4527_s0 + $0x2f8] sm:$0xf0] }
 0x1b3   :  { %v2178_v13 = vadd.f32 %v4270_v50, %v1997_v12  ;;  %1949 = vmatmul.bf16.gmra.mxu2 %v2624_v8 }
 0x1b4   :  { %2038 = vmatmul.bf16.gmra.mxu3 %v2628_v9 }
 0x1b5   :  { %v2210_v17 = vmax.f32 %v2178_v13, 0.0 }
 0x1b6   :  { %v1910_v22 = vpop.f32.mrf.mxu2  ;;  %v1734_v31 = vpop.f32.mrf.mxu0 }
 0x1b7   :  { %v1999_v23 = vpop.f32.mrf.mxu3  ;;  %v3272_v27 = vpack.c.bf16 %v2210_v17, %v2209_v16  ;;  %v1823_v33 = vpop.f32.mrf.mxu1  ;;  %v1911_v34 = vadd.f32 %v1910_v22, %v1822_v28  ;;  %v1735_v35 = vadd.f32 %v1734_v31, %v3823_v26  ;;  %v2655_v26 = vld [vmem:[%s4527_s0 + $0x298] sm:$0xf] }
 0x1b8   :  { %v2656_v4 = vor.u32 %v3164_v42, %v2655_v26 }
 0x1b9   :  { %3273 = vst [vmem:[%s4529_s3] sm:$0xff] %v3272_v27   ;;  %v2000_v45 = vadd.f32 %v1999_v23, %v1911_v34  ;;  %v1824_v46 = vadd.f32 %v1823_v33, %v1735_v35  ;;  %v3171_v34 = vld [vmem:[%s4527_s0 + $0x2ec] sm:$0xf0]  ;;  %v3167_v35 = vld [vmem:[%s4527_s0 + $0x2d4] sm:$0xf] }
 0x1bb   :  { %v2179_v8 = vadd.f32 %v4270_v50, %v2000_v45 }
 0x1bd   :  { %v2211_v13 = vmax.f32 %v2179_v8, 0.0 }
 0x1be   :  { %v1912_v48 = vpop.f32.mrf.mxu2  ;;  %v1737_v61 = vpop.f32.mrf.mxu0 }
 0x1bf   :  { %v2001_v52 = vpop.f32.mrf.mxu3  ;;  %v1913_v59 = vadd.f32 %v1912_v48, %v1824_v46  ;;  %v1826_v3 = vpop.f32.mrf.mxu1  ;;  %v1738_v12 = vadd.f32 %v1737_v61, %v3834_v36  ;;  %v2679_v36 = vld [vmem:[%s4527_s0 + $0x2d0] sm:$0xf]  ;;  %v2684_v46 = vor.u32 %v3167_v35, %v2681_v7 }
 0x1c0   :  { %v2680_v45 = vor.u32 %v3171_v34, %v2679_v36  ;;  %v3176_v36 = vld [vmem:[%s4527_s0 + $0x31c] sm:$0xf] }
 0x1c1   :  { %v2002_v9 = vadd.f32 %v2001_v52, %v1913_v59  ;;  %1776 = vmatmul.bf16.gmra.mxu0 %v2648_v55  ;;  %v1827_v23 = vadd.f32 %v1826_v3, %v1738_v12  ;;  %v2692_v59 = vor.u32 %v3168_v41, %v2689_v44  ;;  %v2721_v34 = vld [vmem:[%s4527_s0 + $0x338] sm:$0xf0] }
 0x1c2   :  { %1865 = vmatmul.bf16.gmra.mxu1 %v2652_v58 }
 0x1c3   :  { %v2180_v11 = vadd.f32 %v4270_v50, %v2002_v9  ;;  %1954 = vmatmul.bf16.gmra.mxu2 %v2656_v4 }
 0x1c4   :  { %2043 = vmatmul.bf16.gmra.mxu3 %v2660_v5 }
 0x1c5   :  { %v2212_v15 = vmax.f32 %v2180_v11, 0.0 }
 0x1c6   :  { %v1915_v16 = vpop.f32.mrf.mxu2  ;;  %v1739_v27 = vpop.f32.mrf.mxu0 }
 0x1c7   :  { %v2004_v17 = vpop.f32.mrf.mxu3  ;;  %v3277_v22 = vpack.c.bf16 %v2212_v15, %v2211_v13  ;;  %v1828_v28 = vpop.f32.mrf.mxu1  ;;  %v1916_v31 = vadd.f32 %v1915_v16, %v1827_v23  ;;  %v1740_v33 = vadd.f32 %v1739_v27, %v3863_v57  ;;  %v2687_v57 = vld [vmem:[%s4527_s0 + $0x2d8] sm:$0xf]  ;;  %v3179_v27 = vld [vmem:[%s4527_s0 + $0x32c] sm:$0xf0] }
 0x1c8   :  { %v2688_v58 = vor.u32 %v3172_v38, %v2687_v57 }
 0x1c9   :  { %3349 = vst [vmem:[%s4529_s3 + $0x8] sm:$0xff] %v3277_v22   ;;  %v2005_v26 = vadd.f32 %v2004_v17, %v1916_v31  ;;  %v1829_v42 = vadd.f32 %v1828_v28, %v1740_v33  ;;  %v3175_v28 = vld [vmem:[%s4527_s0 + $0x314] sm:$0xf]  ;;  %v3180_v33 = vld [vmem:[%s4527_s0 + $0x334] sm:$0xf0] }
 0x1ca   :  { %v2713_v31 = vld [vmem:[%s4527_s0 + $0x330] sm:$0xf0] }
 0x1cb   :  { %v2181_v61 = vadd.f32 %v4270_v50, %v2005_v26  ;;  %v2716_v44 = vor.u32 %v3175_v28, %v2713_v31 }
 0x1cd   :  { %v2213_v8 = vmax.f32 %v2181_v61, 0.0 }
 0x1ce   :  { %v1917_v0 = vpop.f32.mrf.mxu2  ;;  %v1742_v52 = vpop.f32.mrf.mxu0 }
 0x1cf   :  { %v2006_v43 = vpop.f32.mrf.mxu3  ;;  %v1918_v48 = vadd.f32 %v1917_v0, %v1829_v42  ;;  %v1831_v55 = vpop.f32.mrf.mxu1  ;;  %v1743_v5 = vadd.f32 %v1742_v52, %v3865_v1  ;;  %v2711_v1 = vld [vmem:[%s4527_s0 + $0x310] sm:$0xf] }
 0x1d0   :  { %v2712_v41 = vor.u32 %v3179_v27, %v2711_v1 }
 0x1d1   :  { %v2007_v3 = vadd.f32 %v2006_v43, %v1918_v48  ;;  %1781 = vmatmul.bf16.gmra.mxu0 %v2680_v45  ;;  %v1832_v15 = vadd.f32 %v1831_v55, %v1743_v5  ;;  %v2724_v45 = vor.u32 %v3176_v36, %v2721_v34 }
 0x1d2   :  { %1870 = vmatmul.bf16.gmra.mxu1 %v2684_v46 }
 0x1d3   :  { %v2182_v4 = vadd.f32 %v4270_v50, %v2007_v3  ;;  %1959 = vmatmul.bf16.gmra.mxu2 %v2688_v58 }
 0x1d4   :  { %2048 = vmatmul.bf16.gmra.mxu3 %v2692_v59 }
 0x1d5   :  { %v2214_v9 = vmax.f32 %v2182_v4, 0.0 }
 0x1d6   :  { %v1920_v11 = vpop.f32.mrf.mxu2  ;;  %v1744_v16 = vpop.f32.mrf.mxu0 }
 0x1d7   :  { %v2009_v12 = vpop.f32.mrf.mxu3  ;;  %v3282_v13 = vpack.c.bf16 %v2214_v9, %v2213_v8  ;;  %v1833_v17 = vpop.f32.mrf.mxu1  ;;  %v1921_v22 = vadd.f32 %v1920_v11, %v1832_v15  ;;  %v1745_v23 = vadd.f32 %v1744_v16, %v3891_v21  ;;  %v2719_v21 = vld [vmem:[%s4527_s0 + $0x318] sm:$0xf]  ;;  %v3183_v15 = vld [vmem:[%s4527_s0 + $0x354] sm:$0xf] }
 0x1d8   :  { %v2720_v43 = vor.u32 %v3180_v33, %v2719_v21  ;;  %v2745_v16 = vld [vmem:[%s4527_s0 + $0x370] sm:$0xf0] }
 0x1d9   :  { %3350 = vst [vmem:[%s4529_s3 + $0x10] sm:$0xff] %v3282_v13   ;;  %v2010_v35 = vadd.f32 %v2009_v12, %v1921_v22  ;;  %v1834_v7 = vadd.f32 %v1833_v17, %v1745_v23  ;;  %v3187_v13 = vld [vmem:[%s4527_s0 + $0x36c] sm:$0xf0]  ;;  %v3188_v17 = vld [vmem:[%s4527_s0 + $0x374] sm:$0xf0]  ;;  %v2748_v33 = vor.u32 %v3183_v15, %v2745_v16 }
 0x1da   :  { %v3184_v22 = vld [vmem:[%s4527_s0 + $0x35c] sm:$0xf] }
 0x1db   :  { %v2183_v46 = vadd.f32 %v4270_v50, %v2010_v35  ;;  %v2753_v23 = vld [vmem:[%s4527_s0 + $0x378] sm:$0xf0] }
 0x1dd   :  { %v2215_v58 = vmax.f32 %v2183_v46, 0.0 }
 0x1de   :  { %v1922_v57 = vpop.f32.mrf.mxu2  ;;  %v1747_v42 = vpop.f32.mrf.mxu0 }
 0x1df   :  { %v2011_v38 = vpop.f32.mrf.mxu3  ;;  %v1923_v26 = vadd.f32 %v1922_v57, %v1834_v7  ;;  %v1836_v0 = vpop.f32.mrf.mxu1  ;;  %v1748_v55 = vadd.f32 %v1747_v42, %v3902_v32  ;;  %v2743_v32 = vld [vmem:[%s4527_s0 + $0x350] sm:$0xf]  ;;  %v2756_v57 = vor.u32 %v3184_v22, %v2753_v23 }
 0x1e0   :  { %v2744_v21 = vor.u32 %v3187_v13, %v2743_v32 }
 0x1e1   :  { %v2012_v48 = vadd.f32 %v2011_v38, %v1923_v26  ;;  %1786 = vmatmul.bf16.gmra.mxu0 %v2712_v41  ;;  %v1837_v5 = vadd.f32 %v1836_v0, %v1748_v55 }
 0x1e2   :  { %1875 = vmatmul.bf16.gmra.mxu1 %v2716_v44 }
 0x1e3   :  { %v2184_v52 = vadd.f32 %v4270_v50, %v2012_v48  ;;  %1964 = vmatmul.bf16.gmra.mxu2 %v2720_v43 }
 0x1e4   :  { %2053 = vmatmul.bf16.gmra.mxu3 %v2724_v45 }
 0x1e5   :  { %v2216_v59 = vmax.f32 %v2184_v52, 0.0 }
 0x1e6   :  { %v1925_v61 = vpop.f32.mrf.mxu2  ;;  %v1749_v8 = vpop.f32.mrf.mxu0 }
 0x1e7   :  { %v2014_v3 = vpop.f32.mrf.mxu3  ;;  %v3287_v4 = vpack.c.bf16 %v2216_v59, %v2215_v58  ;;  %v1838_v9 = vpop.f32.mrf.mxu1  ;;  %v1926_v11 = vadd.f32 %v1925_v61, %v1837_v5  ;;  %v1750_v12 = vadd.f32 %v1749_v8, %v3931_v54  ;;  %v2751_v54 = vld [vmem:[%s4527_s0 + $0x358] sm:$0xf]  ;;  %v3195_v61 = vld [vmem:[%s4527_s0 + $0x3ac] sm:$0xf0]  ;;  %v3192_v8 = vld [vmem:[%s4527_s0 + $0x39c] sm:$0xf] }
 0x1e8   :  { %v2752_v7 = vor.u32 %v3188_v17, %v2751_v54  ;;  %v3196_v5 = vld [vmem:[%s4527_s0 + $0x3b4] sm:$0xf0] }
 0x1e9   :  { %3351 = vst [vmem:[%s4529_s3 + $0x18] sm:$0xff] %v3287_v4   ;;  %v2015_v1 = vadd.f32 %v2014_v3, %v1926_v11  ;;  %v1839_v27 = vadd.f32 %v1838_v9, %v1750_v12  ;;  %v3191_v3 = vld [vmem:[%s4527_s0 + $0x394] sm:$0xf]  ;;  %v2785_v9 = vld [vmem:[%s4527_s0 + $0x3b8] sm:$0xf0] }
 0x1ea   :  { %v2777_v4 = vld [vmem:[%s4527_s0 + $0x3b0] sm:$0xf0] }
 0x1eb   :  { %v2185_v38 = vadd.f32 %v4270_v50, %v2015_v1  ;;  %v2780_v16 = vor.u32 %v3191_v3, %v2777_v4  ;;  %v2788_v1 = vor.u32 %v3192_v8, %v2785_v9 }
 0x1ed   :  { %v2217_v42 = vmax.f32 %v2185_v38, 0.0 }
 0x1ee   :  { %v1927_v28 = vpop.f32.mrf.mxu2  ;;  %v1752_v34 = vpop.f32.mrf.mxu0 }
 0x1ef   :  { %v2016_v31 = vpop.f32.mrf.mxu3  ;;  %v1928_v36 = vadd.f32 %v1927_v28, %v1839_v27  ;;  %v1841_v35 = vpop.f32.mrf.mxu1  ;;  %v1753_v26 = vadd.f32 %v1752_v34, %v3933_v62  ;;  %v2775_v62 = vld [vmem:[%s4527_s0 + $0x390] sm:$0xf] }
 0x1f0   :  { %v2776_v15 = vor.u32 %v3195_v61, %v2775_v62 }
 0x1f1   :  { %v2017_v41 = vadd.f32 %v2016_v31, %v1928_v36  ;;  %1791 = vmatmul.bf16.gmra.mxu0 %v2744_v21  ;;  %v1842_v48 = vadd.f32 %v1841_v35, %v1753_v26 }
 0x1f2   :  { %1880 = vmatmul.bf16.gmra.mxu1 %v2748_v33 }
 0x1f3   :  { %v2186_v44 = vadd.f32 %v4270_v50, %v2017_v41  ;;  %1969 = vmatmul.bf16.gmra.mxu2 %v2752_v7 }
 0x1f4   :  { %2058 = vmatmul.bf16.gmra.mxu3 %v2756_v57 }
 0x1f5   :  { %v2218_v0 = vmax.f32 %v2186_v44, 0.0 }
 0x1f6   :  { %v1930_v43 = vpop.f32.mrf.mxu2  ;;  %v1754_v52 = vpop.f32.mrf.mxu0 }
 0x1f7   :  { %v2019_v45 = vpop.f32.mrf.mxu3  ;;  %v3292_v46 = vpack.c.bf16 %v2218_v0, %v2217_v42  ;;  %v1843_v55 = vpop.f32.mrf.mxu1  ;;  %v1931_v58 = vadd.f32 %v1930_v43, %v1842_v48  ;;  %v1755_v59 = vadd.f32 %v1754_v52, %v3959_v20  ;;  %v2783_v20 = vld [vmem:[%s4527_s0 + $0x398] sm:$0xf]  ;;  %v3203_v42 = vld [vmem:[%s4527_s0 + $0x3ec] sm:$0xf0]  ;;  %v3199_v0 = vld [vmem:[%s4527_s0 + $0x3d4] sm:$0xf] }
 0x1f8   :  { %v2784_v23 = vor.u32 %v3196_v5, %v2783_v20  ;;  %v2809_v43 = vld [vmem:[%s4527_s0 + $0x3f0] sm:$0xf0]  ;;  %v2817_v48 = vld [vmem:[%s4527_s0 + $0x3f8] sm:$0xf0] }
 0x1f9   :  { %3352 = vst [vmem:[%s4529_s3 + $0x20] sm:$0xff] %v3292_v46   ;;  %v2020_v11 = vadd.f32 %v2019_v45, %v1931_v58  ;;  %v1844_v12 = vadd.f32 %v1843_v55, %v1755_v59  ;;  %v3204_v45 = vld [vmem:[%s4527_s0 + $0x3f4] sm:$0xf0]  ;;  %v3200_v46 = vld [vmem:[%s4527_s0 + $0x3dc] sm:$0xf]  ;;  %v2812_v61 = vor.u32 %v3199_v0, %v2809_v43 }
 0x1fa   :  { %v2820_v8 = vor.u32 %v3200_v46, %v2817_v48 }
 0x1fb   :  { %v2187_v27 = vadd.f32 %v4270_v50, %v2020_v11 }
 0x1fd   :  { %v2219_v33 = vmax.f32 %v2187_v27, 0.0 }
 0x1fe   :  { %v1932_v32 = vpop.f32.mrf.mxu2  ;;  %v1757_v17 = vpop.f32.mrf.mxu0 }
 0x1ff   :  { %v2021_v13 = vpop.f32.mrf.mxu3  ;;  %v1933_v54 = vadd.f32 %v1932_v32, %v1844_v12  ;;  %v1846_v22 = vpop.f32.mrf.mxu1  ;;  %v1758_v21 = vadd.f32 %v1757_v17, %v3961_v29  ;;  %v2807_v29 = vld [vmem:[%s4527_s0 + $0x3d0] sm:$0xf] }
 0x200   :  { %v2808_v62 = vor.u32 %v3203_v42, %v2807_v29 }
 0x201   :  { %v2022_v28 = vadd.f32 %v2021_v13, %v1933_v54  ;;  %1796 = vmatmul.bf16.gmra.mxu0 %v2776_v15  ;;  %v1847_v57 = vadd.f32 %v1846_v22, %v1758_v21 }
 0x202   :  { %1885 = vmatmul.bf16.gmra.mxu1 %v2780_v16 }
 0x203   :  { %v2188_v31 = vadd.f32 %v4270_v50, %v2022_v28  ;;  %1974 = vmatmul.bf16.gmra.mxu2 %v2784_v23 }
 0x204   :  { %2063 = vmatmul.bf16.gmra.mxu3 %v2788_v1 }
 0x205   :  { %v2220_v36 = vmax.f32 %v2188_v31, 0.0 }
 0x206   :  { %v1935_v34 = vpop.f32.mrf.mxu2  ;;  %v1759_v38 = vpop.f32.mrf.mxu0 }
 0x207   :  { %v2024_v35 = vpop.f32.mrf.mxu3  ;;  %v3297_v7 = vpack.c.bf16 %v2220_v36, %v2219_v33  ;;  %v1848_v41 = vpop.f32.mrf.mxu1  ;;  %v1936_v44 = vadd.f32 %v1935_v34, %v1847_v57  ;;  %v1760_v26 = vadd.f32 %v1759_v38, %v3987_v51  ;;  %v2815_v51 = vld [vmem:[%s4527_s0 + $0x3d8] sm:$0xf] }
 0x208   :  { %v2816_v5 = vor.u32 %v3204_v45, %v2815_v51 }
 0x209   :  { %3353 = vst [vmem:[%s4529_s3 + $0x28] sm:$0xff] %v3297_v7   ;;  %v2025_v52 = vadd.f32 %v2024_v35, %v1936_v44  ;;  %v1849_v55 = vadd.f32 %v1848_v41, %v1760_v26 }
 0x20b   :  { %v2189_v9 = vadd.f32 %v4270_v50, %v2025_v52 }
 0x20d   :  { %v2221_v13 = vmax.f32 %v2189_v9, 0.0 }
 0x20e   :  { %v1937_v58 = vpop.f32.mrf.mxu2  ;;  %v1762_v4 = vpop.f32.mrf.mxu0 }
 0x20f   :  { %v2026_v59 = vpop.f32.mrf.mxu3  ;;  %v1938_v3 = vadd.f32 %v1937_v58, %v1849_v55  ;;  %v1851_v20 = vpop.f32.mrf.mxu1  ;;  %v1763_v32 = vadd.f32 %v1762_v4, %v3989_v60 }
 0x211   :  { %v2027_v11 = vadd.f32 %v2026_v59, %v1938_v3  ;;  %1801 = vmatmul.bf16.gmra.mxu0 %v2808_v62  ;;  %v1852_v22 = vadd.f32 %v1851_v20, %v1763_v32 }
 0x212   :  { %1890 = vmatmul.bf16.gmra.mxu1 %v2812_v61 }
 0x213   :  { %v2190_v12 = vadd.f32 %v4270_v50, %v2027_v11  ;;  %1979 = vmatmul.bf16.gmra.mxu2 %v2816_v5 }
 0x214   :  { %2068 = vmatmul.bf16.gmra.mxu3 %v2820_v8 }
 0x215   :  { %v2222_v15 = vmax.f32 %v2190_v12, 0.0 }
 0x216   :  { %v1940_v16 = vpop.f32.mrf.mxu2  ;;  %v1764_v23 = vpop.f32.mrf.mxu0 }
 0x217   :  { %v2029_v54 = vpop.f32.mrf.mxu3  ;;  %v3302_v17 = vpack.c.bf16 %v2222_v15, %v2221_v13  ;;  %v1853_v1 = vpop.f32.mrf.mxu1  ;;  %v1941_v27 = vadd.f32 %v1940_v16, %v1852_v22  ;;  %v1765_v28 = vadd.f32 %v1764_v23, %v4015_v19 }
 0x219   :  { %3354 = vst [vmem:[%s4529_s3 + $0x30] sm:$0xff] %v3302_v17   ;;  %v2030_v31 = vadd.f32 %v2029_v54, %v1941_v27  ;;  %v1854_v21 = vadd.f32 %v1853_v1, %v1765_v28 }
 0x21b   :  { %v2191_v7 = vadd.f32 %v4270_v50, %v2030_v31 }
 0x21d   :  { %v2223_v44 = vmax.f32 %v2191_v7, 0.0 }
 0x21e   :  { %v1942_v60 = vpop.f32.mrf.mxu2  ;;  %v1767_v34 = vpop.f32.mrf.mxu0 }
 0x21f   :  { %v2031_v33 = vpop.f32.mrf.mxu3  ;;  %v1943_v36 = vadd.f32 %v1942_v60, %v1854_v21  ;;  %v1856_v35 = vpop.f32.mrf.mxu1  ;;  %v1768_v41 = vadd.f32 %v1767_v34, %v4017_v30 }
 0x221   :  { %v2032_v57 = vadd.f32 %v2031_v33, %v1943_v36  ;;  %v1857_v19 = vadd.f32 %v1856_v35, %v1768_v41 }
 0x223   :  { %v2192_v38 = vadd.f32 %v4270_v50, %v2032_v57 }
 0x225   :  { %v2224_v26 = vmax.f32 %v2192_v38, 0.0 }
 0x226   :  { %v1945_v29 = vpop.f32.mrf.mxu2  ;;  %v1769_v43 = vpop.f32.mrf.mxu0 }
 0x227   :  { %v2034_v42 = vpop.f32.mrf.mxu3  ;;  %v3307_v0 = vpack.c.bf16 %v2224_v26, %v2223_v44  ;;  %v1858_v51 = vpop.f32.mrf.mxu1  ;;  %v1946_v45 = vadd.f32 %v1945_v29, %v1857_v19  ;;  %v1770_v46 = vadd.f32 %v1769_v43, %v4043_v53 }
 0x229   :  { %3355 = vst [vmem:[%s4529_s3 + $0x38] sm:$0xff] %v3307_v0   ;;  %v2035_v48 = vadd.f32 %v2034_v42, %v1946_v45  ;;  %v1859_v52 = vadd.f32 %v1858_v51, %v1770_v46 }
 0x22b   :  { %v2193_v61 = vadd.f32 %v4270_v50, %v2035_v48 }
 0x22d   :  { %v2225_v5 = vmax.f32 %v2193_v61, 0.0 }
 0x22e   :  { %v1947_v55 = vpop.f32.mrf.mxu2  ;;  %v1772_v59 = vpop.f32.mrf.mxu0 }
 0x22f   :  { %v2036_v58 = vpop.f32.mrf.mxu3  ;;  %v1948_v30 = vadd.f32 %v1947_v55, %v1859_v52  ;;  %v1861_v62 = vpop.f32.mrf.mxu1  ;;  %v1773_v20 = vadd.f32 %v1772_v59, %v4045_v2 }
 0x231   :  { %v2037_v3 = vadd.f32 %v2036_v58, %v1948_v30  ;;  %v1862_v53 = vadd.f32 %v1861_v62, %v1773_v20 }
 0x233   :  { %v2194_v4 = vadd.f32 %v4270_v50, %v2037_v3 }
 0x235   :  { %v2226_v8 = vmax.f32 %v2194_v4, 0.0 }
 0x236   :  { %v1950_v9 = vpop.f32.mrf.mxu2  ;;  %v1774_v32 = vpop.f32.mrf.mxu0 }
 0x237   :  { %v2039_v11 = vpop.f32.mrf.mxu3  ;;  %v3312_v12 = vpack.c.bf16 %v2226_v8, %v2225_v5  ;;  %v1863_v13 = vpop.f32.mrf.mxu1  ;;  %v1951_v15 = vadd.f32 %v1950_v9, %v1862_v53  ;;  %v1775_v16 = vadd.f32 %v1774_v32, %v4071_v25 }
 0x239   :  { %3356 = vst [vmem:[%s4529_s3 + $0x40] sm:$0xff] %v3312_v12   ;;  %v2040_v54 = vadd.f32 %v2039_v11, %v1951_v15  ;;  %v1864_v17 = vadd.f32 %v1863_v13, %v1775_v16 }
 0x23b   :  { %v2195_v28 = vadd.f32 %v4270_v50, %v2040_v54 }
 0x23d   :  { %v2227_v33 = vmax.f32 %v2195_v28, 0.0 }
 0x23e   :  { %v1952_v22 = vpop.f32.mrf.mxu2  ;;  %v1777_v1 = vpop.f32.mrf.mxu0 }
 0x23f   :  { %v2041_v23 = vpop.f32.mrf.mxu3  ;;  %v1953_v2 = vadd.f32 %v1952_v22, %v1864_v17  ;;  %v1866_v27 = vpop.f32.mrf.mxu1  ;;  %v1778_v60 = vadd.f32 %v1777_v1, %v4073_v37 }
 0x241   :  { %v2042_v31 = vadd.f32 %v2041_v23, %v1953_v2  ;;  %v1867_v25 = vadd.f32 %v1866_v27, %v1778_v60 }
 0x243   :  { %v2196_v21 = vadd.f32 %v4270_v50, %v2042_v31 }
 0x245   :  { %v2228_v36 = vmax.f32 %v2196_v21, 0.0 }
 0x246   :  { %v1955_v34 = vpop.f32.mrf.mxu2  ;;  %v1779_v57 = vpop.f32.mrf.mxu0 }
 0x247   :  { %v2044_v35 = vpop.f32.mrf.mxu3  ;;  %v3317_v7 = vpack.c.bf16 %v2228_v36, %v2227_v33  ;;  %v1868_v38 = vpop.f32.mrf.mxu1  ;;  %v1956_v41 = vadd.f32 %v1955_v34, %v1867_v25  ;;  %v1780_v44 = vadd.f32 %v1779_v57, %v4099_v63 }
 0x249   :  { %3357 = vst [vmem:[%s4529_s3 + $0x48] sm:$0xff] %v3317_v7   ;;  %v2045_v26 = vadd.f32 %v2044_v35, %v1956_v41  ;;  %v1869_v29 = vadd.f32 %v1868_v38, %v1780_v44 }
 0x24b   :  { %v2197_v51 = vadd.f32 %v4270_v50, %v2045_v26 }
 0x24d   :  { %v2229_v52 = vmax.f32 %v2197_v51, 0.0 }
 0x24e   :  { %v1957_v42 = vpop.f32.mrf.mxu2  ;;  %v1782_v19 = vpop.f32.mrf.mxu0 }
 0x24f   :  { %v2046_v0 = vpop.f32.mrf.mxu3  ;;  %v1958_v37 = vadd.f32 %v1957_v42, %v1869_v29  ;;  %v1871_v43 = vpop.f32.mrf.mxu1  ;;  %v1783_v48 = vadd.f32 %v1782_v19, %v4101_v10 }
 0x251   :  { %v2047_v45 = vadd.f32 %v2046_v0, %v1958_v37  ;;  %v1872_v63 = vadd.f32 %v1871_v43, %v1783_v48 }
 0x253   :  { %v2198_v46 = vadd.f32 %v4270_v50, %v2047_v45 }
 0x255   :  { %v2230_v55 = vmax.f32 %v2198_v46, 0.0 }
 0x256   :  { %v1960_v58 = vpop.f32.mrf.mxu2  ;;  %v1784_v62 = vpop.f32.mrf.mxu0 }
 0x257   :  { %v2049_v30 = vpop.f32.mrf.mxu3  ;;  %v3322_v59 = vpack.c.bf16 %v2230_v55, %v2229_v52  ;;  %v1873_v61 = vpop.f32.mrf.mxu1  ;;  %v1961_v3 = vadd.f32 %v1960_v58, %v1872_v63  ;;  %v1785_v4 = vadd.f32 %v1784_v62, %v4127_v39 }
 0x259   :  { %3358 = vst [vmem:[%s4529_s3 + $0x50] sm:$0xff] %v3322_v59   ;;  %v2050_v20 = vadd.f32 %v2049_v30, %v1961_v3  ;;  %v1874_v5 = vadd.f32 %v1873_v61, %v1785_v4 }
 0x25b   :  { %v2199_v53 = vadd.f32 %v4270_v50, %v2050_v20 }
 0x25d   :  { %v2231_v16 = vmax.f32 %v2199_v53, 0.0 }
 0x25e   :  { %v1962_v8 = vpop.f32.mrf.mxu2  ;;  %v1787_v11 = vpop.f32.mrf.mxu0 }
 0x25f   :  { %v2051_v9 = vpop.f32.mrf.mxu3  ;;  %v1963_v10 = vadd.f32 %v1962_v8, %v1874_v5  ;;  %v1876_v12 = vpop.f32.mrf.mxu1  ;;  %v1788_v15 = vadd.f32 %v1787_v11, %v4129_v47 }
 0x261   :  { %v2052_v32 = vadd.f32 %v2051_v9, %v1963_v10  ;;  %v1877_v39 = vadd.f32 %v1876_v12, %v1788_v15 }
 0x263   :  { %v2200_v13 = vadd.f32 %v4270_v50, %v2052_v32 }
 0x265   :  { %v2232_v54 = vmax.f32 %v2200_v13, 0.0 }
 0x266   :  { %v1965_v17 = vpop.f32.mrf.mxu2  ;;  %v1789_v2 = vpop.f32.mrf.mxu0 }
 0x267   :  { %v2054_v22 = vpop.f32.mrf.mxu3  ;;  %v3327_v23 = vpack.c.bf16 %v2232_v54, %v2231_v16  ;;  %v1878_v1 = vpop.f32.mrf.mxu1  ;;  %v1966_v27 = vadd.f32 %v1965_v17, %v1877_v39  ;;  %v1790_v28 = vadd.f32 %v1789_v2, %v4155_v14 }
 0x269   :  { %3359 = vst [vmem:[%s4529_s3 + $0x58] sm:$0xff] %v3327_v23   ;;  %v2055_v31 = vadd.f32 %v2054_v22, %v1966_v27  ;;  %v1879_v21 = vadd.f32 %v1878_v1, %v1790_v28 }
 0x26b   :  { %v2201_v35 = vadd.f32 %v4270_v50, %v2055_v31 }
 0x26d   :  { %v2233_v38 = vmax.f32 %v2201_v35, 0.0 }
 0x26e   :  { %v1967_v60 = vpop.f32.mrf.mxu2  ;;  %v1792_v36 = vpop.f32.mrf.mxu0 }
 0x26f   :  { %v2056_v33 = vpop.f32.mrf.mxu3  ;;  %v1968_v47 = vadd.f32 %v1967_v60, %v1879_v21  ;;  %v1881_v34 = vpop.f32.mrf.mxu1  ;;  %v1793_v57 = vadd.f32 %v1792_v36, %v4157_v24 }
 0x271   :  { %v2057_v7 = vadd.f32 %v2056_v33, %v1968_v47  ;;  %v1882_v14 = vadd.f32 %v1881_v34, %v1793_v57 }
 0x273   :  { %v2202_v25 = vadd.f32 %v4270_v50, %v2057_v7 }
 0x275   :  { %v2234_v41 = vmax.f32 %v2202_v25, 0.0 }
 0x276   :  { %v1970_v44 = vpop.f32.mrf.mxu2  ;;  %v1794_v42 = vpop.f32.mrf.mxu0 }
 0x277   :  { %v2059_v26 = vpop.f32.mrf.mxu3  ;;  %v3332_v29 = vpack.c.bf16 %v2234_v41, %v2233_v38  ;;  %v1883_v0 = vpop.f32.mrf.mxu1  ;;  %v1971_v37 = vadd.f32 %v1970_v44, %v1882_v14  ;;  %v1795_v19 = vadd.f32 %v1794_v42, %v4183_v56 }
 0x279   :  { %3360 = vst [vmem:[%s4529_s3 + $0x60] sm:$0xff] %v3332_v29   ;;  %v2060_v43 = vadd.f32 %v2059_v26, %v1971_v37  ;;  %v1884_v51 = vadd.f32 %v1883_v0, %v1795_v19 }
 0x27b   :  { %v2203_v55 = vadd.f32 %v4270_v50, %v2060_v43 }
 0x27d   :  { %v2235_v63 = vmax.f32 %v2203_v55, 0.0 }
 0x27e   :  { %v1972_v45 = vpop.f32.mrf.mxu2  ;;  %v1797_v48 = vpop.f32.mrf.mxu0 }
 0x27f   :  { %v2061_v46 = vpop.f32.mrf.mxu3  ;;  %v1973_v24 = vadd.f32 %v1972_v45, %v1884_v51  ;;  %v1886_v52 = vpop.f32.mrf.mxu1  ;;  %v1798_v59 = vadd.f32 %v1797_v48, %v4185_v6 }
 0x281   :  { %v2062_v58 = vadd.f32 %v2061_v46, %v1973_v24  ;;  %v1887_v56 = vadd.f32 %v1886_v52, %v1798_v59 }
 0x283   :  { %v2204_v30 = vadd.f32 %v4270_v50, %v2062_v58 }
 0x285   :  { %v2236_v62 = vmax.f32 %v2204_v30, 0.0 }
 0x286   :  { %v1975_v61 = vpop.f32.mrf.mxu2  ;;  %v1799_v20 = vpop.f32.mrf.mxu0 }
 0x287   :  { %v2064_v3 = vpop.f32.mrf.mxu3  ;;  %v3337_v4 = vpack.c.bf16 %v2236_v62, %v2235_v63  ;;  %v1888_v5 = vpop.f32.mrf.mxu1  ;;  %v1976_v8 = vadd.f32 %v1975_v61, %v1887_v56  ;;  %v1800_v9 = vadd.f32 %v1799_v20, %v4211_v40 }
 0x289   :  { %3361 = vst [vmem:[%s4529_s3 + $0x68] sm:$0xff] %v3337_v4   ;;  %v2065_v10 = vadd.f32 %v2064_v3, %v1976_v8  ;;  %v1889_v11 = vadd.f32 %v1888_v5, %v1800_v9 }
 0x28b   :  { %v2205_v13 = vadd.f32 %v4270_v50, %v2065_v10 }
 0x28d   :  { %v2237_v22 = vmax.f32 %v2205_v13, 0.0 }
 0x28e   :  { %v1977_v12 = vpop.f32.mrf.mxu2  ;;  %v1802_v32 = vpop.f32.mrf.mxu0 }
 0x28f   :  { %v2066_v53 = vpop.f32.mrf.mxu3  ;;  %v1978_v6 = vadd.f32 %v1977_v12, %v1889_v11  ;;  %v1891_v16 = vpop.f32.mrf.mxu1  ;;  %v1803_v17 = vadd.f32 %v1802_v32, %v4213_v49 }
 0x291   :  { %v2067_v15 = vadd.f32 %v2066_v53, %v1978_v6  ;;  %v1892_v40 = vadd.f32 %v1891_v16, %v1803_v17 }
 0x293   :  { %v2206_v54 = vadd.f32 %v4270_v50, %v2067_v15 }
 0x295   :  { %v2238_v23 = vmax.f32 %v2206_v54, 0.0 }
 0x296   :  { %v1980_v39 = vpop.f32.mrf.mxu2  ;;  %v1804_v27 = vpop.f32.mrf.mxu0 }
 0x297   :  { %v2069_v2 = vpop.f32.mrf.mxu3  ;;  %v3342_v1 = vpack.c.bf16 %v2238_v23, %v2237_v22  ;;  %v1981_v28 = vadd.f32 %v1980_v39, %v1892_v40  ;;  %v1805_v31 = vadd.f32 %v1804_v27, %v4239_v18  ;;  %v1893_v21 = vpop.f32.mrf.mxu1 }
 0x299   :  { %3362 = vst [vmem:[%s4529_s3 + $0x70] sm:$0xff] %v3342_v1   ;;  %v2070_v60 = vadd.f32 %v2069_v2, %v1981_v28  ;;  %v1894_v33 = vadd.f32 %v1893_v21, %v1805_v31 }
 0x29b   :  { %v2207_v34 = vadd.f32 %v4270_v50, %v2070_v60 }
 0x29d   :  { %v2239_v25 = vmax.f32 %v2207_v34, 0.0 }
 0x29e   :  { %v1982_v47 = vpop.f32.mrf.mxu2 }
 0x29f   :  { %v1983_v36 = vadd.f32 %v1982_v47, %v1894_v33  ;;  %v2071_v49 = vpop.f32.mrf.mxu3 }
 0x2a1   :  { %v2072_v35 = vadd.f32 %v2071_v49, %v1983_v36 }
 0x2a3   :  { %v2208_v7 = vadd.f32 %v4270_v50, %v2072_v35 }
 0x2a5   :  { %v2240_v57 = vmax.f32 %v2208_v7, 0.0 }
 0x2a7   :  { %v3347_v38 = vpack.c.bf16 %v2240_v57, %v2239_v25 }
 0x2a9   :  { %3363 = vst [vmem:[%s4529_s3 + $0x78] sm:$0xff] %v3347_v38  }

// kernel: ds_hide_forward.11
= control target key start
LH: loop header
LB: loop body
LE: loop exit
PB: predicated region body
PF: predicated region fallthrough
CT: control target
= control target key end

     0   :  { %s1927_s1 = inlined_call_operand.vmem [shape: bf16[640,128], index: 1, kind: input, shape index: {}]   ;;  %s1928_s0 = inlined_call_operand.vmem [shape: bf16[128,640], index: 0, kind: input, shape index: {}]   ;;  %s1929_s2 = inlined_call_operand.vmem [shape: f32[1,128], index: 2, kind: input, shape index: {}]   ;;  %s1930_s3 = inlined_call_operand.vmem [shape: bf16[128,128], index: 3, kind: output, shape index: {}]  }
   0x1   :  { %v1361_v0 = vld [vmem:[%s1927_s1 + $0x38] sm:$0xff]  ;;  %v1360_v1 = vld [vmem:[%s1927_s1 + $0x30] sm:$0xff]  ;;  %v1359_v2 = vld [vmem:[%s1927_s1 + $0x28] sm:$0xff] }
   0x2   :  { %1441 = vmatpush.bf16.msra.mxu1 %v1361_v0  ;;  %1442 = vmatpush.bf16.msra.mxu2 %v1361_v0  ;;  %v1358_v3 = vld [vmem:[%s1927_s1 + $0x20] sm:$0xff]  ;;  %v1357_v4 = vld [vmem:[%s1927_s1 + $0x18] sm:$0xff]  ;;  %v1356_v5 = vld [vmem:[%s1927_s1 + $0x10] sm:$0xff] }
   0x3   :  { %1443 = vmatpush.bf16.msra.mxu3 %v1361_v0  ;;  %626 = vmatpush.bf16.msra.mxu0 %v1361_v0  ;;  %v1355_v6 = vld [vmem:[%s1927_s1 + $0x8] sm:$0xff]  ;;  %v1354_v7 = vld [vmem:[%s1927_s1] sm:$0xff]  ;;  %v1036_v8 = vld [vmem:[%s1928_s0 + $0x50] sm:$0xf] }
   0x4   :  { %v1326_v9 = vld [vmem:[%s1928_s0 + $0x60] sm:$0xf0]  ;;  %v1076_v10 = vld [vmem:[%s1928_s0 + $0xa0] sm:$0xf]  ;;  %v1336_v11 = vld [vmem:[%s1928_s0 + $0xb0] sm:$0xf0] }
   0x5   :  { %v1116_v12 = vld [vmem:[%s1928_s0 + $0xf0] sm:$0xf]  ;;  %v1346_v13 = vld [vmem:[%s1928_s0 + $0x100] sm:$0xf0]  ;;  %v996_v14 = vld [vmem:[%s1928_s0] sm:$0xf]  ;;  %v1037_v18 = vor.u32 %v1326_v9, %v1036_v8  ;;  %v1077_v19 = vor.u32 %v1336_v11, %v1076_v10 }
   0x6   :  { %1444 = vmatpush.bf16.msra.mxu1 %v1360_v1  ;;  %1445 = vmatpush.bf16.msra.mxu2 %v1360_v1  ;;  %v1316_v15 = vld [vmem:[%s1928_s0 + $0x10] sm:$0xf0]  ;;  %v1377_v16 = vld [vmem:[%s1927_s1 + $0xb8] sm:$0xff]  ;;  %v1117_v20 = vor.u32 %v1346_v13, %v1116_v12  ;;  %v1375_v28 = vld [vmem:[%s1927_s1 + $0xa8] sm:$0xff] }
   0x7   :  { %1446 = vmatpush.bf16.msra.mxu3 %v1360_v1  ;;  %627 = vmatpush.bf16.msra.mxu0 %v1360_v1  ;;  %v1369_v17 = vld [vmem:[%s1927_s1 + $0x78] sm:$0xff]  ;;  %v997_v21 = vor.u32 %v1316_v15, %v996_v14  ;;  %v1376_v24 = vld [vmem:[%s1927_s1 + $0xb0] sm:$0xff]  ;;  %v1367_v29 = vld [vmem:[%s1927_s1 + $0x68] sm:$0xff] }
   0x8   :  { %v1385_v22 = vld [vmem:[%s1927_s1 + $0xf8] sm:$0xff]  ;;  %v1368_v25 = vld [vmem:[%s1927_s1 + $0x70] sm:$0xff]  ;;  %v1383_v30 = vld [vmem:[%s1927_s1 + $0xe8] sm:$0xff] }
   0x9   :  { %v1393_v23 = vld [vmem:[%s1927_s1 + $0x138] sm:$0xff]  ;;  %v1384_v26 = vld [vmem:[%s1927_s1 + $0xf0] sm:$0xff]  ;;  %v1391_v31 = vld [vmem:[%s1927_s1 + $0x128] sm:$0xff] }
   0xa   :  { %1447 = vmatpush.bf16.msra.mxu1 %v1359_v2  ;;  %1448 = vmatpush.bf16.msra.mxu2 %v1359_v2  ;;  %v1392_v27 = vld [vmem:[%s1927_s1 + $0x130] sm:$0xff]  ;;  %v1374_v32 = vld [vmem:[%s1927_s1 + $0xa0] sm:$0xff]  ;;  %v1056_v36 = vld [vmem:[%s1928_s0 + $0x78] sm:$0xf] }
   0xb   :  { %1449 = vmatpush.bf16.msra.mxu3 %v1359_v2  ;;  %628 = vmatpush.bf16.msra.mxu0 %v1359_v2  ;;  %v1366_v33 = vld [vmem:[%s1927_s1 + $0x60] sm:$0xff]  ;;  %v1331_v37 = vld [vmem:[%s1928_s0 + $0x88] sm:$0xf0]  ;;  %v1096_v38 = vld [vmem:[%s1928_s0 + $0xc8] sm:$0xf] }
   0xc   :  { %v1382_v34 = vld [vmem:[%s1927_s1 + $0xe0] sm:$0xff]  ;;  %v1341_v39 = vld [vmem:[%s1928_s0 + $0xd8] sm:$0xf0]  ;;  %v1136_v40 = vld [vmem:[%s1928_s0 + $0x118] sm:$0xf]  ;;  %v1057_v46 = vor.u32 %v1331_v37, %v1056_v36 }
   0xd   :  { %v1390_v35 = vld [vmem:[%s1927_s1 + $0x120] sm:$0xff]  ;;  %v1351_v41 = vld [vmem:[%s1928_s0 + $0x128] sm:$0xf0]  ;;  %v1016_v42 = vld [vmem:[%s1928_s0 + $0x28] sm:$0xf]  ;;  %v1097_v47 = vor.u32 %v1341_v39, %v1096_v38 }
   0xe   :  { %1450 = vmatpush.bf16.msra.mxu1 %v1358_v3  ;;  %1451 = vmatpush.bf16.msra.mxu2 %v1358_v3  ;;  %v1321_v43 = vld [vmem:[%s1928_s0 + $0x38] sm:$0xf0]  ;;  %v1137_v48 = vor.u32 %v1351_v41, %v1136_v40  ;;  %v1372_v52 = vld [vmem:[%s1927_s1 + $0x90] sm:$0xff]  ;;  %v1371_v56 = vld [vmem:[%s1927_s1 + $0x88] sm:$0xff] }
   0xf   :  { %1452 = vmatpush.bf16.msra.mxu3 %v1358_v3  ;;  %629 = vmatpush.bf16.msra.mxu0 %v1358_v3  ;;  %v1373_v44 = vld [vmem:[%s1927_s1 + $0x98] sm:$0xff]  ;;  %v1017_v49 = vor.u32 %v1321_v43, %v1016_v42  ;;  %v1364_v53 = vld [vmem:[%s1927_s1 + $0x50] sm:$0xff]  ;;  %v1363_v57 = vld [vmem:[%s1927_s1 + $0x48] sm:$0xff] }
  0x10   :  { %v1365_v45 = vld [vmem:[%s1927_s1 + $0x58] sm:$0xff]  ;;  %v1380_v54 = vld [vmem:[%s1927_s1 + $0xd0] sm:$0xff]  ;;  %v1379_v58 = vld [vmem:[%s1927_s1 + $0xc8] sm:$0xff] }
  0x11   :  { %v1381_v50 = vld [vmem:[%s1927_s1 + $0xd8] sm:$0xff]  ;;  %v1388_v55 = vld [vmem:[%s1927_s1 + $0x110] sm:$0xff]  ;;  %v1387_v59 = vld [vmem:[%s1927_s1 + $0x108] sm:$0xff] }
  0x12   :  { %1453 = vmatpush.bf16.msra.mxu1 %v1357_v4  ;;  %1454 = vmatpush.bf16.msra.mxu2 %v1357_v4  ;;  %v1389_v51 = vld [vmem:[%s1927_s1 + $0x118] sm:$0xff]  ;;  %v1370_v60 = vld [vmem:[%s1927_s1 + $0x80] sm:$0xff]  ;;  %v1004_v2 = vld [vmem:[%s1928_s0 + $0x8] sm:$0xf] }
  0x13   :  { %1455 = vmatpush.bf16.msra.mxu3 %v1357_v4  ;;  %630 = vmatpush.bf16.msra.mxu0 %v1357_v4  ;;  %v1362_v61 = vld [vmem:[%s1927_s1 + $0x40] sm:$0xff]  ;;  %v998_v1 = vld [vmem:[%s1928_s0 + $0x14] sm:$0xf0]  ;;  %v1317_v3 = vld [vmem:[%s1928_s0 + $0x18] sm:$0xf0] }
  0x14   :  { %v1378_v62 = vld [vmem:[%s1927_s1 + $0xc0] sm:$0xff]  ;;  %v1315_v4 = vld [vmem:[%s1928_s0 + $0xc] sm:$0xf]  ;;  %v1005_v9 = vor.u32 %v1317_v3, %v1004_v2  ;;  %v1024_v14 = vld [vmem:[%s1928_s0 + $0x30] sm:$0xf] }
  0x15   :  { %v1386_v63 = vld [vmem:[%s1927_s1 + $0x100] sm:$0xff]  ;;  %v1319_v12 = vld [vmem:[%s1928_s0 + $0x2c] sm:$0xf]  ;;  %v1329_v36 = vld [vmem:[%s1928_s0 + $0x7c] sm:$0xf] }
  0x16   :  { %1456 = vmatpush.bf16.msra.mxu1 %v1356_v5  ;;  %1457 = vmatpush.bf16.msra.mxu2 %v1356_v5  ;;  %v1314_v0 = vld [vmem:[%s1928_s0 + $0x4] sm:$0xf]  ;;  %v1018_v13 = vld [vmem:[%s1928_s0 + $0x3c] sm:$0xf0]  ;;  %v1058_v37 = vld [vmem:[%s1928_s0 + $0x8c] sm:$0xf0] }
  0x17   :  { %1458 = vmatpush.bf16.msra.mxu3 %v1356_v5  ;;  %631 = vmatpush.bf16.msra.mxu0 %v1356_v5  ;;  %v1006_v5 = vld [vmem:[%s1928_s0 + $0x1c] sm:$0xf0]  ;;  %v1001_v8 = vor.u32 %v1314_v0, %v998_v1  ;;  %v1322_v15 = vld [vmem:[%s1928_s0 + $0x40] sm:$0xf0]  ;;  %v1332_v39 = vld [vmem:[%s1928_s0 + $0x90] sm:$0xf0] }
  0x18   :  { %v1009_v10 = vor.u32 %v1315_v4, %v1006_v5  ;;  %v1064_v38 = vld [vmem:[%s1928_s0 + $0x80] sm:$0xf]  ;;  %v1330_v40 = vld [vmem:[%s1928_s0 + $0x84] sm:$0xf]  ;;  %v1066_v41 = vld [vmem:[%s1928_s0 + $0x94] sm:$0xf0] }
  0x19   :  { %v1072_v42 = vld [vmem:[%s1928_s0 + $0x88] sm:$0xf]  ;;  %v1333_v43 = vld [vmem:[%s1928_s0 + $0x98] sm:$0xf0]  ;;  %v1340_v0 = vld [vmem:[%s1928_s0 + $0xd4] sm:$0xf] }
  0x1a   :  { %1459 = vmatpush.bf16.msra.mxu1 %v1355_v6  ;;  %1460 = vmatpush.bf16.msra.mxu2 %v1355_v6  ;;  %v1106_v1 = vld [vmem:[%s1928_s0 + $0xe4] sm:$0xf0]  ;;  %v1112_v2 = vld [vmem:[%s1928_s0 + $0xd8] sm:$0xf]  ;;  %v1343_v3 = vld [vmem:[%s1928_s0 + $0xe8] sm:$0xf0] }
  0x1b   :  { %1461 = vmatpush.bf16.msra.mxu3 %v1355_v6  ;;  %632 = vmatpush.bf16.msra.mxu0 %v1355_v6  ;;  %v1012_v6 = vld [vmem:[%s1928_s0 + $0x10] sm:$0xf] }
  0x1e   :  { %1462 = vmatpush.bf16.msra.mxu1 %v1354_v7  ;;  %1463 = vmatpush.bf16.msra.mxu2 %v1354_v7 }
  0x1f   :  { %1464 = vmatpush.bf16.msra.mxu3 %v1354_v7  ;;  %633 = vmatpush.bf16.msra.mxu0 %v1354_v7  ;;  %v1318_v7 = vld [vmem:[%s1928_s0 + $0x20] sm:$0xf0] }
  0x20   :  { %v1013_v11 = vor.u32 %v1318_v7, %v1012_v6  ;;  %v1109_v6 = vor.u32 %v1340_v0, %v1106_v1  ;;  %v1113_v7 = vor.u32 %v1343_v3, %v1112_v2 }
  0x21   :  { %644 = vmatmul.bf16.vlgmr.msra.gmra.mxu1 %v1037_v18  ;;  %654 = vmatmul.bf16.vlgmr.msra.gmra.mxu2 %v1077_v19  ;;  %v1032_v18 = vld [vmem:[%s1928_s0 + $0x38] sm:$0xf]  ;;  %v1323_v19 = vld [vmem:[%s1928_s0 + $0x48] sm:$0xf0] }
  0x22   :  { %724 = vmatpush.bf16.msrb.mxu2 %v1377_v16  ;;  %675 = vmatpush.bf16.msrb.mxu1 %v1369_v17  ;;  %v1320_v16 = vld [vmem:[%s1928_s0 + $0x34] sm:$0xf]  ;;  %v1026_v17 = vld [vmem:[%s1928_s0 + $0x44] sm:$0xf0] }
  0x23   :  { %664 = vmatmul.bf16.vlgmr.msra.gmra.mxu3 %v1117_v20  ;;  %634 = vmatmul.bf16.vlgmr.msra.gmra.mxu0 %v997_v21  ;;  %v1021_v20 = vor.u32 %v1319_v12, %v1018_v13  ;;  %v1025_v21 = vor.u32 %v1322_v15, %v1024_v14  ;;  %v1345_v12 = vld [vmem:[%s1928_s0 + $0xfc] sm:$0xf]  ;;  %v1126_v13 = vld [vmem:[%s1928_s0 + $0x10c] sm:$0xf0]  ;;  %v1132_v14 = vld [vmem:[%s1928_s0 + $0x100] sm:$0xf] }
  0x24   :  { %773 = vmatpush.bf16.msrb.mxu3 %v1385_v22  ;;  %822 = vmatpush.bf16.msrb.mxu0 %v1393_v23  ;;  %v1029_v22 = vor.u32 %v1320_v16, %v1026_v17  ;;  %v1033_v23 = vor.u32 %v1323_v19, %v1032_v18  ;;  %v1348_v15 = vld [vmem:[%s1928_s0 + $0x110] sm:$0xf0]  ;;  %v1129_v19 = vor.u32 %v1345_v12, %v1126_v13 }
  0x26   :  { %725 = vmatpush.bf16.msrb.mxu2 %v1376_v24  ;;  %676 = vmatpush.bf16.msrb.mxu1 %v1368_v25  ;;  %v1324_v24 = vld [vmem:[%s1928_s0 + $0x54] sm:$0xf]  ;;  %v1038_v25 = vld [vmem:[%s1928_s0 + $0x64] sm:$0xf0] }
  0x28   :  { %774 = vmatpush.bf16.msrb.mxu3 %v1384_v26  ;;  %823 = vmatpush.bf16.msrb.mxu0 %v1392_v27  ;;  %v1044_v26 = vld [vmem:[%s1928_s0 + $0x58] sm:$0xf]  ;;  %v1327_v27 = vld [vmem:[%s1928_s0 + $0x68] sm:$0xf0] }
  0x2a   :  { %726 = vmatpush.bf16.msrb.mxu2 %v1375_v28  ;;  %677 = vmatpush.bf16.msrb.mxu1 %v1367_v29  ;;  %v1325_v28 = vld [vmem:[%s1928_s0 + $0x5c] sm:$0xf]  ;;  %v1046_v29 = vld [vmem:[%s1928_s0 + $0x6c] sm:$0xf0] }
  0x2c   :  { %775 = vmatpush.bf16.msrb.mxu3 %v1383_v30  ;;  %824 = vmatpush.bf16.msrb.mxu0 %v1391_v31  ;;  %v1052_v30 = vld [vmem:[%s1928_s0 + $0x60] sm:$0xf]  ;;  %v1328_v31 = vld [vmem:[%s1928_s0 + $0x70] sm:$0xf0] }
  0x2e   :  { %727 = vmatpush.bf16.msrb.mxu2 %v1374_v32  ;;  %678 = vmatpush.bf16.msrb.mxu1 %v1366_v33  ;;  %v1041_v32 = vor.u32 %v1324_v24, %v1038_v25  ;;  %v1045_v33 = vor.u32 %v1327_v27, %v1044_v26  ;;  %v1349_v26 = vld [vmem:[%s1928_s0 + $0x11c] sm:$0xf]  ;;  %v1138_v27 = vld [vmem:[%s1928_s0 + $0x12c] sm:$0xf0] }
  0x30   :  { %776 = vmatpush.bf16.msrb.mxu3 %v1382_v34  ;;  %825 = vmatpush.bf16.msrb.mxu0 %v1390_v35  ;;  %v1049_v34 = vor.u32 %v1325_v28, %v1046_v29  ;;  %v1053_v35 = vor.u32 %v1328_v31, %v1052_v30  ;;  %v1144_v28 = vld [vmem:[%s1928_s0 + $0x120] sm:$0xf]  ;;  %v1352_v29 = vld [vmem:[%s1928_s0 + $0x130] sm:$0xf0]  ;;  %v1350_v30 = vld [vmem:[%s1928_s0 + $0x124] sm:$0xf] }
  0x31   :  { %649 = vmatmul.bf16.gmra.mxu1 %v1057_v46  ;;  %659 = vmatmul.bf16.gmra.mxu2 %v1097_v47  ;;  %v1069_v46 = vor.u32 %v1330_v40, %v1066_v41  ;;  %v1073_v47 = vor.u32 %v1333_v43, %v1072_v42  ;;  %v1146_v31 = vld [vmem:[%s1928_s0 + $0x134] sm:$0xf0] }
  0x32   :  { %728 = vmatpush.bf16.msrb.mxu2 %v1373_v44  ;;  %679 = vmatpush.bf16.msrb.mxu1 %v1365_v45  ;;  %v1061_v44 = vor.u32 %v1329_v36, %v1058_v37  ;;  %v1065_v45 = vor.u32 %v1332_v39, %v1064_v38  ;;  %v1141_v36 = vor.u32 %v1349_v26, %v1138_v27 }
  0x33   :  { %669 = vmatmul.bf16.gmra.mxu3 %v1137_v48  ;;  %639 = vmatmul.bf16.gmra.mxu0 %v1017_v49  ;;  %v1334_v48 = vld [vmem:[%s1928_s0 + $0xa4] sm:$0xf]  ;;  %v1078_v49 = vld [vmem:[%s1928_s0 + $0xb4] sm:$0xf0]  ;;  %v1145_v37 = vor.u32 %v1352_v29, %v1144_v28  ;;  %v1149_v39 = vor.u32 %v1350_v30, %v1146_v31 }
  0x34   :  { %777 = vmatpush.bf16.msrb.mxu3 %v1381_v50  ;;  %826 = vmatpush.bf16.msrb.mxu0 %v1389_v51  ;;  %v1084_v50 = vld [vmem:[%s1928_s0 + $0xa8] sm:$0xf]  ;;  %v1337_v51 = vld [vmem:[%s1928_s0 + $0xb8] sm:$0xf0] }
  0x36   :  { %729 = vmatpush.bf16.msrb.mxu2 %v1372_v52  ;;  %680 = vmatpush.bf16.msrb.mxu1 %v1364_v53  ;;  %v1335_v52 = vld [vmem:[%s1928_s0 + $0xac] sm:$0xf]  ;;  %v1086_v53 = vld [vmem:[%s1928_s0 + $0xbc] sm:$0xf0] }
  0x38   :  { %778 = vmatpush.bf16.msrb.mxu3 %v1380_v54  ;;  %827 = vmatpush.bf16.msrb.mxu0 %v1388_v55  ;;  %v1092_v54 = vld [vmem:[%s1928_s0 + $0xb0] sm:$0xf]  ;;  %v1338_v55 = vld [vmem:[%s1928_s0 + $0xc0] sm:$0xf0] }
  0x3a   :  { %730 = vmatpush.bf16.msrb.mxu2 %v1371_v56  ;;  %681 = vmatpush.bf16.msrb.mxu1 %v1363_v57  ;;  %v1081_v56 = vor.u32 %v1334_v48, %v1078_v49  ;;  %v1085_v57 = vor.u32 %v1337_v51, %v1084_v50 }
  0x3c   :  { %779 = vmatpush.bf16.msrb.mxu3 %v1379_v58  ;;  %828 = vmatpush.bf16.msrb.mxu0 %v1387_v59  ;;  %v1089_v58 = vor.u32 %v1335_v52, %v1086_v53  ;;  %v1093_v59 = vor.u32 %v1338_v55, %v1092_v54 }
  0x3e   :  { %731 = vmatpush.bf16.msrb.mxu2 %v1370_v60  ;;  %682 = vmatpush.bf16.msrb.mxu1 %v1362_v61  ;;  %v1339_v60 = vld [vmem:[%s1928_s0 + $0xcc] sm:$0xf]  ;;  %v1098_v61 = vld [vmem:[%s1928_s0 + $0xdc] sm:$0xf0] }
  0x3f   :  { %v1101_v4 = vor.u32 %v1339_v60, %v1098_v61  ;;  %v1873_v60 = vld [vmem:[%s1929_s2] ss:$0 sm:$0xff] }
  0x40   :  { %780 = vmatpush.bf16.msrb.mxu3 %v1378_v62  ;;  %829 = vmatpush.bf16.msrb.mxu0 %v1386_v63  ;;  %v1104_v62 = vld [vmem:[%s1928_s0 + $0xd0] sm:$0xf]  ;;  %v1342_v63 = vld [vmem:[%s1928_s0 + $0xe0] sm:$0xf0] }
  0x41   :  { %683 = vmatmul.bf16.vlgmr.msrb.gmra.mxu1 %v1001_v8  ;;  %732 = vmatmul.bf16.vlgmr.msrb.gmra.mxu2 %v1005_v9  ;;  %v1105_v5 = vor.u32 %v1342_v63, %v1104_v62  ;;  %v1344_v8 = vld [vmem:[%s1928_s0 + $0xf4] sm:$0xf]  ;;  %v1118_v9 = vld [vmem:[%s1928_s0 + $0x104] sm:$0xf0] }
  0x42   :  { %v1121_v16 = vor.u32 %v1344_v8, %v1118_v9 }
  0x43   :  { %781 = vmatmul.bf16.vlgmr.msrb.gmra.mxu3 %v1009_v10  ;;  %830 = vmatmul.bf16.vlgmr.msrb.gmra.mxu0 %v1013_v11  ;;  %v1124_v10 = vld [vmem:[%s1928_s0 + $0xf8] sm:$0xf]  ;;  %v1347_v11 = vld [vmem:[%s1928_s0 + $0x108] sm:$0xf0] }
  0x44   :  { %v1125_v17 = vor.u32 %v1347_v11, %v1124_v10 }
  0x51   :  { %688 = vmatmul.bf16.gmra.mxu1 %v1021_v20  ;;  %737 = vmatmul.bf16.gmra.mxu2 %v1025_v21  ;;  %v1133_v20 = vor.u32 %v1348_v15, %v1132_v14 }
  0x53   :  { %786 = vmatmul.bf16.gmra.mxu3 %v1029_v22  ;;  %835 = vmatmul.bf16.gmra.mxu0 %v1033_v23 }
  0x61   :  { %693 = vmatmul.bf16.gmra.mxu1 %v1041_v32  ;;  %742 = vmatmul.bf16.gmra.mxu2 %v1045_v33  ;;  %v1152_v32 = vld [vmem:[%s1928_s0 + $0x128] sm:$0xf]  ;;  %v1353_v33 = vld [vmem:[%s1928_s0 + $0x138] sm:$0xf0] }
  0x62   :  { %v1153_v40 = vor.u32 %v1353_v33, %v1152_v32 }
  0x63   :  { %791 = vmatmul.bf16.gmra.mxu3 %v1049_v34  ;;  %840 = vmatmul.bf16.gmra.mxu0 %v1053_v35 }
  0x71   :  { %698 = vmatmul.bf16.gmra.mxu1 %v1061_v44  ;;  %747 = vmatmul.bf16.gmra.mxu2 %v1065_v45 }
  0x73   :  { %796 = vmatmul.bf16.gmra.mxu3 %v1069_v46  ;;  %845 = vmatmul.bf16.gmra.mxu0 %v1073_v47 }
  0x81   :  { %703 = vmatmul.bf16.gmra.mxu1 %v1081_v56  ;;  %752 = vmatmul.bf16.gmra.mxu2 %v1085_v57 }
  0x83   :  { %801 = vmatmul.bf16.gmra.mxu3 %v1089_v58  ;;  %850 = vmatmul.bf16.gmra.mxu0 %v1093_v59 }
  0x91   :  { %708 = vmatmul.bf16.gmra.mxu1 %v1101_v4  ;;  %757 = vmatmul.bf16.gmra.mxu2 %v1105_v5 }
  0x93   :  { %806 = vmatmul.bf16.gmra.mxu3 %v1109_v6  ;;  %855 = vmatmul.bf16.gmra.mxu0 %v1113_v7 }
  0x9e   :  { %v1822_v18 = vpop.f32.mrf.mxu1 }
  0xa0   :  { %v635_v21 = vpop.f32.mrf.mxu0 }
  0xa1   :  { %713 = vmatmul.bf16.gmra.mxu1 %v1121_v16  ;;  %762 = vmatmul.bf16.gmra.mxu2 %v1125_v17 }
  0xa3   :  { %811 = vmatmul.bf16.gmra.mxu3 %v1129_v19  ;;  %860 = vmatmul.bf16.gmra.mxu0 %v1133_v20 }
  0xa4   :  { %v1824_v22 = vpop.f32.mrf.mxu2 }
  0xa6   :  { %v1826_v23 = vpop.f32.mrf.mxu3  ;;  %v1828_v24 = vpop.f32.mrf.mxu1 }
  0xa8   :  { %v637_v25 = vpop.f32.mrf.mxu0 }
  0xac   :  { %v1854_v34 = vpop.f32.mrf.mxu2 }
  0xae   :  { %v1856_v35 = vpop.f32.mrf.mxu3  ;;  %v1858_v38 = vpop.f32.mrf.mxu1 }
  0xb0   :  { %v640_v41 = vpop.f32.mrf.mxu0 }
  0xb1   :  { %718 = vmatmul.bf16.gmra.mxu1 %v1141_v36  ;;  %767 = vmatmul.bf16.gmra.mxu2 %v1145_v37 }
  0xb3   :  { %816 = vmatmul.bf16.gmra.mxu3 %v1149_v39  ;;  %865 = vmatmul.bf16.gmra.mxu0 %v1153_v40 }
  0xb4   :  { %v1860_v42 = vpop.f32.mrf.mxu2 }
  0xb6   :  { %v1862_v43 = vpop.f32.mrf.mxu3  ;;  %v1864_v44 = vpop.f32.mrf.mxu1 }
  0xb8   :  { %v642_v45 = vpop.f32.mrf.mxu0 }
  0xbc   :  { %v1866_v46 = vpop.f32.mrf.mxu2 }
  0xbe   :  { %v1868_v47 = vpop.f32.mrf.mxu3  ;;  %v684_v48 = vpop.f32.mrf.mxu1 }
  0xbf   :  { %v685_v50 = vadd.f32 %v684_v48, %v635_v21 }
  0xc0   :  { %v831_v49 = vpop.f32.mrf.mxu0 }
  0xc4   :  { %v733_v51 = vpop.f32.mrf.mxu2 }
  0xc5   :  { %v734_v52 = vadd.f32 %v733_v51, %v685_v50 }
  0xc6   :  { %v782_v53 = vpop.f32.mrf.mxu3  ;;  %v686_v54 = vpop.f32.mrf.mxu1 }
  0xc7   :  { %v783_v56 = vadd.f32 %v782_v53, %v734_v52  ;;  %v687_v57 = vadd.f32 %v686_v54, %v637_v25 }
  0xc8   :  { %v833_v55 = vpop.f32.mrf.mxu0 }
  0xc9   :  { %v832_v59 = vadd.f32 %v831_v49, %v783_v56 }
  0xcb   :  { %v926_v2 = vadd.f32 %v1873_v60, %v832_v59 }
  0xcc   :  { %v735_v58 = vpop.f32.mrf.mxu2 }
  0xcd   :  { %v736_v61 = vadd.f32 %v735_v58, %v687_v57  ;;  %v942_v7 = vmax.f32 %v926_v2, 0.0 }
  0xce   :  { %v784_v62 = vpop.f32.mrf.mxu3  ;;  %v689_v63 = vpop.f32.mrf.mxu1 }
  0xcf   :  { %v785_v0 = vadd.f32 %v784_v62, %v736_v61  ;;  %v690_v5 = vadd.f32 %v689_v63, %v640_v41 }
  0xd0   :  { %v836_v1 = vpop.f32.mrf.mxu0 }
  0xd1   :  { %v834_v3 = vadd.f32 %v833_v55, %v785_v0 }
  0xd3   :  { %v927_v4 = vadd.f32 %v1873_v60, %v834_v3 }
  0xd4   :  { %v738_v6 = vpop.f32.mrf.mxu2 }
  0xd5   :  { %v943_v8 = vmax.f32 %v927_v4, 0.0  ;;  %v739_v9 = vadd.f32 %v738_v6, %v690_v5 }
  0xd6   :  { %v787_v10 = vpop.f32.mrf.mxu3  ;;  %v691_v11 = vpop.f32.mrf.mxu1 }
  0xd7   :  { %v1397_v12 = vpack.c.bf16 %v943_v8, %v942_v7  ;;  %v788_v14 = vadd.f32 %v787_v10, %v739_v9  ;;  %v692_v15 = vadd.f32 %v691_v11, %v642_v45 }
  0xd8   :  { %v838_v13 = vpop.f32.mrf.mxu0 }
  0xd9   :  { %1398 = vst [vmem:[%s1930_s3] sm:$0xff] %v1397_v12   ;;  %v837_v17 = vadd.f32 %v836_v1, %v788_v14 }
  0xdb   :  { %v928_v27 = vadd.f32 %v1873_v60, %v837_v17 }
  0xdc   :  { %v740_v16 = vpop.f32.mrf.mxu2 }
  0xdd   :  { %v741_v19 = vadd.f32 %v740_v16, %v692_v15  ;;  %v944_v32 = vmax.f32 %v928_v27, 0.0 }
  0xde   :  { %v789_v20 = vpop.f32.mrf.mxu3  ;;  %v694_v21 = vpop.f32.mrf.mxu1 }
  0xdf   :  { %v790_v25 = vadd.f32 %v789_v20, %v741_v19  ;;  %v695_v30 = vadd.f32 %v694_v21, %v1822_v18 }
  0xe0   :  { %v841_v26 = vpop.f32.mrf.mxu0 }
  0xe1   :  { %v839_v28 = vadd.f32 %v838_v13, %v790_v25 }
  0xe3   :  { %v929_v29 = vadd.f32 %v1873_v60, %v839_v28 }
  0xe4   :  { %v743_v31 = vpop.f32.mrf.mxu2 }
  0xe5   :  { %v945_v33 = vmax.f32 %v929_v29, 0.0  ;;  %v744_v36 = vadd.f32 %v743_v31, %v695_v30 }
  0xe6   :  { %v792_v37 = vpop.f32.mrf.mxu3  ;;  %v696_v39 = vpop.f32.mrf.mxu1 }
  0xe7   :  { %v1402_v40 = vpack.c.bf16 %v945_v33, %v944_v32  ;;  %v793_v45 = vadd.f32 %v792_v37, %v744_v36  ;;  %v697_v48 = vadd.f32 %v696_v39, %v1828_v24 }
  0xe8   :  { %v843_v41 = vpop.f32.mrf.mxu0 }
  0xe9   :  { %1434 = vst [vmem:[%s1930_s3 + $0x8] sm:$0xff] %v1402_v40   ;;  %v842_v50 = vadd.f32 %v841_v26, %v793_v45 }
  0xeb   :  { %v930_v55 = vadd.f32 %v1873_v60, %v842_v50 }
  0xec   :  { %v745_v49 = vpop.f32.mrf.mxu2 }
  0xed   :  { %v746_v51 = vadd.f32 %v745_v49, %v697_v48  ;;  %v946_v61 = vmax.f32 %v930_v55, 0.0 }
  0xee   :  { %v794_v52 = vpop.f32.mrf.mxu3  ;;  %v699_v18 = vpop.f32.mrf.mxu1 }
  0xef   :  { %v795_v53 = vadd.f32 %v794_v52, %v746_v51  ;;  %v700_v58 = vadd.f32 %v699_v18, %v1858_v38 }
  0xf0   :  { %v846_v54 = vpop.f32.mrf.mxu0 }
  0xf1   :  { %v844_v56 = vadd.f32 %v843_v41, %v795_v53 }
  0xf3   :  { %v931_v57 = vadd.f32 %v1873_v60, %v844_v56 }
  0xf4   :  { %v748_v59 = vpop.f32.mrf.mxu2 }
  0xf5   :  { %v947_v62 = vmax.f32 %v931_v57, 0.0  ;;  %v749_v63 = vadd.f32 %v748_v59, %v700_v58 }
  0xf6   :  { %v797_v0 = vpop.f32.mrf.mxu3  ;;  %v701_v24 = vpop.f32.mrf.mxu1 }
  0xf7   :  { %v1407_v1 = vpack.c.bf16 %v947_v62, %v946_v61  ;;  %v798_v3 = vadd.f32 %v797_v0, %v749_v63  ;;  %v702_v4 = vadd.f32 %v701_v24, %v1864_v44 }
  0xf8   :  { %v848_v2 = vpop.f32.mrf.mxu0 }
  0xf9   :  { %1435 = vst [vmem:[%s1930_s3 + $0x10] sm:$0xff] %v1407_v1   ;;  %v847_v6 = vadd.f32 %v846_v54, %v798_v3 }
  0xfb   :  { %v932_v11 = vadd.f32 %v1873_v60, %v847_v6 }
  0xfc   :  { %v750_v5 = vpop.f32.mrf.mxu2 }
  0xfd   :  { %v751_v7 = vadd.f32 %v750_v5, %v702_v4  ;;  %v948_v16 = vmax.f32 %v932_v11, 0.0 }
  0xfe   :  { %v799_v8 = vpop.f32.mrf.mxu3  ;;  %v704_v38 = vpop.f32.mrf.mxu1 }
  0xff   :  { %v800_v9 = vadd.f32 %v799_v8, %v751_v7  ;;  %v705_v14 = vadd.f32 %v704_v38, %v1824_v22 }
 0x100   :  { %v851_v10 = vpop.f32.mrf.mxu0 }
 0x101   :  { %v849_v12 = vadd.f32 %v848_v2, %v800_v9 }
 0x103   :  { %v933_v13 = vadd.f32 %v1873_v60, %v849_v12 }
 0x104   :  { %v753_v15 = vpop.f32.mrf.mxu2 }
 0x105   :  { %v949_v17 = vmax.f32 %v933_v13, 0.0  ;;  %v754_v19 = vadd.f32 %v753_v15, %v705_v14 }
 0x106   :  { %v802_v20 = vpop.f32.mrf.mxu3  ;;  %v706_v44 = vpop.f32.mrf.mxu1 }
 0x107   :  { %v1412_v21 = vpack.c.bf16 %v949_v17, %v948_v16  ;;  %v803_v26 = vadd.f32 %v802_v20, %v754_v19  ;;  %v707_v27 = vadd.f32 %v706_v44, %v1854_v34 }
 0x108   :  { %v853_v25 = vpop.f32.mrf.mxu0 }
 0x109   :  { %1436 = vst [vmem:[%s1930_s3 + $0x18] sm:$0xff] %v1412_v21   ;;  %v852_v29 = vadd.f32 %v851_v10, %v803_v26 }
 0x10b   :  { %v934_v36 = vadd.f32 %v1873_v60, %v852_v29 }
 0x10c   :  { %v755_v28 = vpop.f32.mrf.mxu2 }
 0x10d   :  { %v756_v30 = vadd.f32 %v755_v28, %v707_v27  ;;  %v950_v45 = vmax.f32 %v934_v36, 0.0 }
 0x10e   :  { %v804_v31 = vpop.f32.mrf.mxu3  ;;  %v709_v22 = vpop.f32.mrf.mxu1 }
 0x10f   :  { %v805_v32 = vadd.f32 %v804_v31, %v756_v30  ;;  %v710_v40 = vadd.f32 %v709_v22, %v1860_v42 }
 0x110   :  { %v856_v33 = vpop.f32.mrf.mxu0 }
 0x111   :  { %v854_v37 = vadd.f32 %v853_v25, %v805_v32 }
 0x113   :  { %v935_v39 = vadd.f32 %v1873_v60, %v854_v37 }
 0x114   :  { %v758_v41 = vpop.f32.mrf.mxu2 }
 0x115   :  { %v951_v48 = vmax.f32 %v935_v39, 0.0  ;;  %v759_v49 = vadd.f32 %v758_v41, %v710_v40 }
 0x116   :  { %v807_v50 = vpop.f32.mrf.mxu3  ;;  %v711_v34 = vpop.f32.mrf.mxu1 }
 0x117   :  { %v1417_v51 = vpack.c.bf16 %v951_v48, %v950_v45  ;;  %v808_v18 = vadd.f32 %v807_v50, %v759_v49  ;;  %v712_v53 = vadd.f32 %v711_v34, %v1866_v46 }
 0x118   :  { %v858_v52 = vpop.f32.mrf.mxu0 }
 0x119   :  { %1437 = vst [vmem:[%s1930_s3 + $0x20] sm:$0xff] %v1417_v51   ;;  %v857_v55 = vadd.f32 %v856_v33, %v808_v18 }
 0x11b   :  { %v936_v59 = vadd.f32 %v1873_v60, %v857_v55 }
 0x11c   :  { %v760_v54 = vpop.f32.mrf.mxu2 }
 0x11d   :  { %v761_v56 = vadd.f32 %v760_v54, %v712_v53  ;;  %v952_v1 = vmax.f32 %v936_v59, 0.0 }
 0x11e   :  { %v809_v57 = vpop.f32.mrf.mxu3  ;;  %v714_v42 = vpop.f32.mrf.mxu1 }
 0x11f   :  { %v810_v58 = vadd.f32 %v809_v57, %v761_v56  ;;  %v715_v0 = vadd.f32 %v714_v42, %v1826_v23 }
 0x120   :  { %v861_v62 = vpop.f32.mrf.mxu0 }
 0x121   :  { %v859_v61 = vadd.f32 %v858_v52, %v810_v58 }
 0x123   :  { %v937_v63 = vadd.f32 %v1873_v60, %v859_v61 }
 0x124   :  { %v763_v24 = vpop.f32.mrf.mxu2 }
 0x125   :  { %v953_v2 = vmax.f32 %v937_v63, 0.0  ;;  %v764_v3 = vadd.f32 %v763_v24, %v715_v0 }
 0x126   :  { %v812_v4 = vpop.f32.mrf.mxu3  ;;  %v716_v46 = vpop.f32.mrf.mxu1 }
 0x127   :  { %v1422_v5 = vpack.c.bf16 %v953_v2, %v952_v1  ;;  %v813_v6 = vadd.f32 %v812_v4, %v764_v3  ;;  %v717_v7 = vadd.f32 %v716_v46, %v1856_v35 }
 0x128   :  { %v863_v8 = vpop.f32.mrf.mxu0 }
 0x129   :  { %1438 = vst [vmem:[%s1930_s3 + $0x28] sm:$0xff] %v1422_v5   ;;  %v862_v9 = vadd.f32 %v861_v62, %v813_v6 }
 0x12b   :  { %v938_v13 = vadd.f32 %v1873_v60, %v862_v9 }
 0x12c   :  { %v765_v38 = vpop.f32.mrf.mxu2 }
 0x12d   :  { %v766_v10 = vadd.f32 %v765_v38, %v717_v7  ;;  %v954_v19 = vmax.f32 %v938_v13, 0.0 }
 0x12e   :  { %v814_v11 = vpop.f32.mrf.mxu3  ;;  %v719_v23 = vpop.f32.mrf.mxu1 }
 0x12f   :  { %v815_v12 = vadd.f32 %v814_v11, %v766_v10  ;;  %v720_v16 = vadd.f32 %v719_v23, %v1862_v43 }
 0x130   :  { %v866_v35 = vpop.f32.mrf.mxu0 }
 0x131   :  { %v864_v14 = vadd.f32 %v863_v8, %v815_v12 }
 0x133   :  { %v939_v15 = vadd.f32 %v1873_v60, %v864_v14 }
 0x134   :  { %v768_v17 = vpop.f32.mrf.mxu2 }
 0x135   :  { %v955_v20 = vmax.f32 %v939_v15, 0.0  ;;  %v769_v44 = vadd.f32 %v768_v17, %v720_v16 }
 0x136   :  { %v817_v21 = vpop.f32.mrf.mxu3  ;;  %v721_v26 = vpop.f32.mrf.mxu1 }
 0x137   :  { %v1427_v25 = vpack.c.bf16 %v955_v20, %v954_v19  ;;  %v818_v27 = vadd.f32 %v817_v21, %v769_v44  ;;  %v722_v28 = vadd.f32 %v721_v26, %v1868_v47 }
 0x138   :  { %v868_v32 = vpop.f32.mrf.mxu0 }
 0x139   :  { %1439 = vst [vmem:[%s1930_s3 + $0x30] sm:$0xff] %v1427_v25   ;;  %v867_v30 = vadd.f32 %v866_v35, %v818_v27 }
 0x13b   :  { %v940_v33 = vadd.f32 %v1873_v60, %v867_v30 }
 0x13c   :  { %v770_v29 = vpop.f32.mrf.mxu2 }
 0x13d   :  { %v771_v31 = vadd.f32 %v770_v29, %v722_v28  ;;  %v956_v39 = vmax.f32 %v940_v33, 0.0 }
 0x13e   :  { %v819_v22 = vpop.f32.mrf.mxu3 }
 0x13f   :  { %v820_v43 = vadd.f32 %v819_v22, %v771_v31 }
 0x141   :  { %v869_v36 = vadd.f32 %v868_v32, %v820_v43 }
 0x143   :  { %v941_v37 = vadd.f32 %v1873_v60, %v869_v36 }
 0x145   :  { %v957_v40 = vmax.f32 %v941_v37, 0.0 }
 0x147   :  { %v1432_v41 = vpack.c.bf16 %v957_v40, %v956_v39 }
 0x149   :  { %1440 = vst [vmem:[%s1930_s3 + $0x38] sm:$0xff] %v1432_v41  }

// kernel: tile.8
= control target key start
LH: loop header
LB: loop body
LE: loop exit
PB: predicated region body
PF: predicated region fallthrough
CT: control target
= control target key end

     0   :  { %s22_s0 = inlined_call_operand.vmem [shape: f32[32], index: 0, kind: input, shape index: {}]   ;;  %s23_s1 = inlined_call_operand.vmem [shape: f32[4,32], index: 1, kind: output, shape index: {}]  }
   0x1   :  { %v4_v0 = vld [vmem:[%s22_s0] ss:$0 sm:$0xff] }
   0x2   :  { %5 = vst [vmem:[%s23_s1] sm:$0xf] %v4_v0 }

// kernel: tile.9
= control target key start
LH: loop header
LB: loop body
LE: loop exit
PB: predicated region body
PF: predicated region fallthrough
CT: control target
= control target key end

     0   :  { %s37_s8 = smov 32   ;;  %s38_s9 = smov 64   ;;  %vm7_vm0 = vcmask 261120   ;;  %vm13_vm1 = vcmask 1048320   ;;  %vm19_vm2 = vcmask 785920   ;;  %vm25_vm3 = vcmask 523520   ;;  %s55_s0 = inlined_call_operand.vmem [shape: f32[4,32], index: 0, kind: input, shape index: {}]   ;;  %s56_s1 = inlined_call_operand.vmem [shape: f32[1,128], index: 1, kind: output, shape index: {}]  }
   0x1   :  { %v4_v0 = vld [vmem:[%s55_s0] sm:$0xf]  ;;  %s36_s0 = smov 96  }
   0x2   :  { %5 = vst [vmem:[#allocation1] sm:$0xf] %v4_v0 }
   0x9   :  { %v10_v1 = vld [vmem:[#allocation1 + $0x3] sm:$0x1]   ;;  %v22_v2 = vld [vmem:[#allocation1 + $0x1] sm:$0x1]   ;;  %v16_v3 = vld [vmem:[#allocation1 + $0x2] sm:$0x1]  }
   0xa   :  { %11 = vrot.lane.b32.xlu0 %v10_v1, %s36_s0  ;;  %23 = vrot.lane.b32.xlu1 %v22_v2, %s37_s8  ;;  %v6_v4 = vld [vmem:[#allocation1] sm:$0x1]  }
   0xb   :  { %8 = vst.msk [vmem:[#allocation0] sm:$0x1] %vm7_vm0, %v6_v4  }
  0x12   :  { %17 = vrot.lane.b32.xlu0 %v16_v3, %s38_s9 }
  0x7c   :  { %v12_v5 = vpop.permute.xlu0 %11   ;;  %v24_v6 = vpop.permute.xlu1 %23  }
  0x7d   :  { %14 = vst.msk [vmem:[#allocation0] sm:$0x1] %vm13_vm1, %v12_v5  }
  0x84   :  { %v18_v7 = vpop.permute.xlu0 %17  }
  0x85   :  { %20 = vst.msk [vmem:[#allocation0] sm:$0x1] %vm19_vm2, %v18_v7  }
  0x86   :  { %26 = vst.msk [vmem:[#allocation0] sm:$0x1] %vm25_vm3, %v24_v6  }
  0x8d   :  { %v29_v8 = vld [vmem:[#allocation0] sm:$0x1] }
  0x8e   :  { %32 = vst [vmem:[%s56_s1] sm:$0x1] %v29_v8 }

// kernel: ds_hide_forward.13
= control target key start
LH: loop header
LB: loop body
LE: loop exit
PB: predicated region body
PF: predicated region fallthrough
CT: control target
= control target key end

     0   :  { %s1317_s1 = inlined_call_operand.vmem [shape: bf16[384,128], index: 1, kind: input, shape index: {}]   ;;  %s1318_s0 = inlined_call_operand.vmem [shape: bf16[128,384], index: 0, kind: input, shape index: {}]   ;;  %s1319_s2 = inlined_call_operand.vmem [shape: f32[1,128], index: 2, kind: input, shape index: {}]   ;;  %s1320_s3 = inlined_call_operand.vmem [shape: bf16[128,128], index: 3, kind: output, shape index: {}]  }
   0x1   :  { %v895_v0 = vld [vmem:[%s1317_s1 + $0x38] sm:$0xff]  ;;  %v894_v3 = vld [vmem:[%s1317_s1 + $0x30] sm:$0xff]  ;;  %v893_v6 = vld [vmem:[%s1317_s1 + $0x28] sm:$0xff] }
   0x2   :  { %v1010_v1 = vld [vmem:[%s1317_s1 + $0x78] sm:$0xff]  ;;  %402 = vmatpush.bf16.msra.mxu0 %v895_v0  ;;  %959 = vmatpush.bf16.msra.mxu3 %v895_v0  ;;  %v1025_v4 = vld [vmem:[%s1317_s1 + $0x70] sm:$0xff]  ;;  %v901_v7 = vld [vmem:[%s1317_s1 + $0x68] sm:$0xff] }
   0x3   :  { %v1015_v2 = vld [vmem:[%s1317_s1 + $0xb8] sm:$0xff]  ;;  %451 = vmatpush.bf16.msra.mxu1 %v1010_v1  ;;  %v1030_v5 = vld [vmem:[%s1317_s1 + $0xb0] sm:$0xff]  ;;  %v1043_v8 = vld [vmem:[%s1317_s1 + $0xa8] sm:$0xff] }
   0x4   :  { %500 = vmatpush.bf16.msra.mxu2 %v1015_v2  ;;  %v892_v9 = vld [vmem:[%s1317_s1 + $0x20] sm:$0xff]  ;;  %v891_v12 = vld [vmem:[%s1317_s1 + $0x18] sm:$0xff]  ;;  %v890_v15 = vld [vmem:[%s1317_s1 + $0x10] sm:$0xff] }
   0x5   :  { %v900_v10 = vld [vmem:[%s1317_s1 + $0x60] sm:$0xff]  ;;  %v899_v13 = vld [vmem:[%s1317_s1 + $0x58] sm:$0xff]  ;;  %v898_v16 = vld [vmem:[%s1317_s1 + $0x50] sm:$0xff] }
   0x6   :  { %403 = vmatpush.bf16.msra.mxu0 %v894_v3  ;;  %960 = vmatpush.bf16.msra.mxu3 %v894_v3  ;;  %v1055_v11 = vld [vmem:[%s1317_s1 + $0xa0] sm:$0xff]  ;;  %v1067_v14 = vld [vmem:[%s1317_s1 + $0x98] sm:$0xff]  ;;  %v1079_v17 = vld [vmem:[%s1317_s1 + $0x90] sm:$0xff] }
   0x7   :  { %452 = vmatpush.bf16.msra.mxu1 %v1025_v4  ;;  %v889_v18 = vld [vmem:[%s1317_s1 + $0x8] sm:$0xff]  ;;  %v888_v21 = vld [vmem:[%s1317_s1] sm:$0xff]  ;;  %v746_v26 = vld [vmem:[%s1318_s0 + $0x90] sm:$0xf] }
   0x8   :  { %501 = vmatpush.bf16.msra.mxu2 %v1030_v5  ;;  %v897_v19 = vld [vmem:[%s1317_s1 + $0x48] sm:$0xff]  ;;  %v896_v22 = vld [vmem:[%s1317_s1 + $0x40] sm:$0xff]  ;;  %v883_v27 = vld [vmem:[%s1318_s0 + $0x98] sm:$0xf0] }
   0x9   :  { %v1091_v20 = vld [vmem:[%s1317_s1 + $0x88] sm:$0xff]  ;;  %v1102_v23 = vld [vmem:[%s1317_s1 + $0x80] sm:$0xff]  ;;  %v676_v29 = vld [vmem:[%s1318_s0 + $0xc] sm:$0xf0]  ;;  %v747_v33 = vor.u32 %v883_v27, %v746_v26 }
   0xa   :  { %404 = vmatpush.bf16.msra.mxu0 %v893_v6  ;;  %961 = vmatpush.bf16.msra.mxu3 %v893_v6  ;;  %v674_v24 = vld [vmem:[%s1318_s0] sm:$0xf]  ;;  %v865_v25 = vld [vmem:[%s1318_s0 + $0x8] sm:$0xf0]  ;;  %v864_v28 = vld [vmem:[%s1318_s0 + $0x4] sm:$0xf] }
   0xb   :  { %453 = vmatpush.bf16.msra.mxu1 %v901_v7  ;;  %v682_v30 = vld [vmem:[%s1318_s0 + $0x8] sm:$0xf]  ;;  %v866_v31 = vld [vmem:[%s1318_s0 + $0x10] sm:$0xf0]  ;;  %v675_v32 = vor.u32 %v865_v25, %v674_v24  ;;  %v679_v34 = vor.u32 %v864_v28, %v676_v29  ;;  %v686_v36 = vld [vmem:[%s1318_s0 + $0x18] sm:$0xf] }
   0xc   :  { %502 = vmatpush.bf16.msra.mxu2 %v1043_v8  ;;  %v683_v35 = vor.u32 %v866_v31, %v682_v30  ;;  %v868_v37 = vld [vmem:[%s1318_s0 + $0x20] sm:$0xf0]  ;;  %v758_v38 = vld [vmem:[%s1318_s0 + $0xa8] sm:$0xf]  ;;  %v886_v39 = vld [vmem:[%s1318_s0 + $0xb0] sm:$0xf0] }
   0xd   :  { %v867_v40 = vld [vmem:[%s1318_s0 + $0x1c] sm:$0xf]  ;;  %v688_v41 = vld [vmem:[%s1318_s0 + $0x24] sm:$0xf0]  ;;  %v694_v42 = vld [vmem:[%s1318_s0 + $0x20] sm:$0xf]  ;;  %v687_v44 = vor.u32 %v868_v37, %v686_v36  ;;  %v759_v45 = vor.u32 %v886_v39, %v758_v38 }
   0xe   :  { %405 = vmatpush.bf16.msra.mxu0 %v892_v9  ;;  %962 = vmatpush.bf16.msra.mxu3 %v892_v9  ;;  %v869_v43 = vld [vmem:[%s1318_s0 + $0x28] sm:$0xf0]  ;;  %v691_v46 = vor.u32 %v867_v40, %v688_v41  ;;  %v698_v48 = vld [vmem:[%s1318_s0 + $0x30] sm:$0xf]  ;;  %v871_v49 = vld [vmem:[%s1318_s0 + $0x38] sm:$0xf0] }
   0xf   :  { %454 = vmatpush.bf16.msra.mxu1 %v900_v10  ;;  %v695_v47 = vor.u32 %v869_v43, %v694_v42  ;;  %v870_v50 = vld [vmem:[%s1318_s0 + $0x34] sm:$0xf]  ;;  %v748_v52 = vld [vmem:[%s1318_s0 + $0x9c] sm:$0xf0]  ;;  %v706_v54 = vld [vmem:[%s1318_s0 + $0x38] sm:$0xf]  ;;  %v699_v56 = vor.u32 %v871_v49, %v698_v48 }
  0x10   :  { %503 = vmatpush.bf16.msra.mxu2 %v1055_v11  ;;  %v882_v51 = vld [vmem:[%s1318_s0 + $0x94] sm:$0xf]  ;;  %v700_v53 = vld [vmem:[%s1318_s0 + $0x3c] sm:$0xf0]  ;;  %v872_v55 = vld [vmem:[%s1318_s0 + $0x40] sm:$0xf0] }
  0x11   :  { %v751_v57 = vor.u32 %v882_v51, %v748_v52  ;;  %v703_v58 = vor.u32 %v870_v50, %v700_v53  ;;  %v707_v59 = vor.u32 %v872_v55, %v706_v54  ;;  %v710_v60 = vld [vmem:[%s1318_s0 + $0x48] sm:$0xf]  ;;  %v874_v61 = vld [vmem:[%s1318_s0 + $0x50] sm:$0xf0]  ;;  %v873_v62 = vld [vmem:[%s1318_s0 + $0x4c] sm:$0xf] }
  0x12   :  { %406 = vmatpush.bf16.msra.mxu0 %v891_v12  ;;  %963 = vmatpush.bf16.msra.mxu3 %v891_v12  ;;  %v885_v63 = vld [vmem:[%s1318_s0 + $0xac] sm:$0xf]  ;;  %v760_v0 = vld [vmem:[%s1318_s0 + $0xb4] sm:$0xf0]  ;;  %v875_v3 = vld [vmem:[%s1318_s0 + $0x58] sm:$0xf0] }
  0x13   :  { %455 = vmatpush.bf16.msra.mxu1 %v899_v13  ;;  %v877_v9 = vld [vmem:[%s1318_s0 + $0x68] sm:$0xf0]  ;;  %v884_v12 = vld [vmem:[%s1318_s0 + $0xa0] sm:$0xf0]  ;;  %v887_v24 = vld [vmem:[%s1318_s0 + $0xb8] sm:$0xf0] }
  0x14   :  { %504 = vmatpush.bf16.msra.mxu2 %v1067_v14  ;;  %v736_v25 = vld [vmem:[%s1318_s0 + $0x84] sm:$0xf0]  ;;  %v742_v26 = vld [vmem:[%s1318_s0 + $0x80] sm:$0xf]  ;;  %v881_v27 = vld [vmem:[%s1318_s0 + $0x88] sm:$0xf0] }
  0x15   :  { %v743_v31 = vor.u32 %v881_v27, %v742_v26  ;;  %v1265_v40 = vld [vmem:[%s1319_s2] ss:$0 sm:$0xff] }
  0x16   :  { %407 = vmatpush.bf16.msra.mxu0 %v890_v15  ;;  %964 = vmatpush.bf16.msra.mxu3 %v890_v15  ;;  %v878_v15 = vld [vmem:[%s1318_s0 + $0x70] sm:$0xf0] }
  0x17   :  { %456 = vmatpush.bf16.msra.mxu1 %v898_v16 }
  0x18   :  { %505 = vmatpush.bf16.msra.mxu2 %v1079_v17 }
  0x1a   :  { %408 = vmatpush.bf16.msra.mxu0 %v889_v18  ;;  %965 = vmatpush.bf16.msra.mxu3 %v889_v18 }
  0x1b   :  { %457 = vmatpush.bf16.msra.mxu1 %v897_v19 }
  0x1c   :  { %506 = vmatpush.bf16.msra.mxu2 %v1091_v20 }
  0x1e   :  { %409 = vmatpush.bf16.msra.mxu0 %v888_v21  ;;  %966 = vmatpush.bf16.msra.mxu3 %v888_v21  ;;  %v880_v21 = vld [vmem:[%s1318_s0 + $0x80] sm:$0xf0] }
  0x1f   :  { %458 = vmatpush.bf16.msra.mxu1 %v896_v22 }
  0x20   :  { %507 = vmatpush.bf16.msra.mxu2 %v1102_v23 }
  0x21   :  { %410 = vmatmul.bf16.vlgmr.msra.gmra.mxu0 %v675_v32  ;;  %440 = vmatmul.bf16.vlgmr.msra.gmra.mxu3 %v747_v33 }
  0x22   :  { %967 = vmatpush.bf16.msrb.mxu3 %v1010_v1  ;;  %459 = vmatmul.bf16.vlgmr.msra.gmra.mxu1 %v679_v34  ;;  %v712_v1 = vld [vmem:[%s1318_s0 + $0x54] sm:$0xf0] }
  0x23   :  { %508 = vmatmul.bf16.vlgmr.msra.gmra.mxu2 %v683_v35  ;;  %v715_v6 = vor.u32 %v873_v62, %v712_v1 }
  0x26   :  { %968 = vmatpush.bf16.msrb.mxu3 %v1025_v4  ;;  %v711_v4 = vor.u32 %v874_v61, %v710_v60 }
  0x2a   :  { %969 = vmatpush.bf16.msrb.mxu3 %v901_v7 }
  0x2e   :  { %970 = vmatpush.bf16.msrb.mxu3 %v900_v10  ;;  %v876_v10 = vld [vmem:[%s1318_s0 + $0x64] sm:$0xf] }
  0x31   :  { %415 = vmatmul.bf16.gmra.mxu0 %v687_v44  ;;  %445 = vmatmul.bf16.gmra.mxu3 %v759_v45 }
  0x32   :  { %971 = vmatpush.bf16.msrb.mxu3 %v899_v13  ;;  %464 = vmatmul.bf16.gmra.mxu1 %v691_v46  ;;  %v724_v13 = vld [vmem:[%s1318_s0 + $0x6c] sm:$0xf0] }
  0x33   :  { %513 = vmatmul.bf16.gmra.mxu2 %v695_v47  ;;  %v727_v18 = vor.u32 %v876_v10, %v724_v13 }
  0x36   :  { %972 = vmatpush.bf16.msrb.mxu3 %v898_v16 }
  0x3a   :  { %973 = vmatpush.bf16.msrb.mxu3 %v897_v19 }
  0x3e   :  { %974 = vmatpush.bf16.msrb.mxu3 %v896_v22  ;;  %v879_v22 = vld [vmem:[%s1318_s0 + $0x7c] sm:$0xf] }
  0x3f   :  { %v739_v30 = vor.u32 %v879_v22, %v736_v25 }
  0x41   :  { %420 = vmatmul.bf16.gmra.mxu0 %v699_v56  ;;  %489 = vmatmul.bf16.vlgmr.msrb.gmra.mxu3 %v751_v57 }
  0x42   :  { %975 = vmatpush.bf16.msra.mxu3 %v1015_v2  ;;  %469 = vmatmul.bf16.gmra.mxu1 %v703_v58  ;;  %v718_v2 = vld [vmem:[%s1318_s0 + $0x50] sm:$0xf] }
  0x43   :  { %518 = vmatmul.bf16.gmra.mxu2 %v707_v59  ;;  %v719_v7 = vor.u32 %v875_v3, %v718_v2 }
  0x46   :  { %976 = vmatpush.bf16.msra.mxu3 %v1030_v5  ;;  %v763_v5 = vor.u32 %v885_v63, %v760_v0 }
  0x4a   :  { %977 = vmatpush.bf16.msra.mxu3 %v1043_v8  ;;  %v722_v8 = vld [vmem:[%s1318_s0 + $0x60] sm:$0xf] }
  0x4b   :  { %v723_v16 = vor.u32 %v877_v9, %v722_v8 }
  0x4e   :  { %978 = vmatpush.bf16.msra.mxu3 %v1055_v11  ;;  %v754_v11 = vld [vmem:[%s1318_s0 + $0x98] sm:$0xf] }
  0x51   :  { %425 = vmatmul.bf16.gmra.mxu0 %v711_v4  ;;  %494 = vmatmul.bf16.gmra.mxu3 %v763_v5 }
  0x52   :  { %979 = vmatpush.bf16.msra.mxu3 %v1067_v14  ;;  %474 = vmatmul.bf16.gmra.mxu1 %v715_v6  ;;  %v730_v14 = vld [vmem:[%s1318_s0 + $0x68] sm:$0xf] }
  0x53   :  { %523 = vmatmul.bf16.gmra.mxu2 %v719_v7  ;;  %v731_v19 = vor.u32 %v878_v15, %v730_v14 }
  0x56   :  { %980 = vmatpush.bf16.msra.mxu3 %v1079_v17  ;;  %v755_v17 = vor.u32 %v884_v12, %v754_v11 }
  0x5a   :  { %981 = vmatpush.bf16.msra.mxu3 %v1091_v20  ;;  %v734_v20 = vld [vmem:[%s1318_s0 + $0x78] sm:$0xf] }
  0x5b   :  { %v735_v28 = vor.u32 %v880_v21, %v734_v20 }
  0x5e   :  { %982 = vmatpush.bf16.msra.mxu3 %v1102_v23  ;;  %v766_v23 = vld [vmem:[%s1318_s0 + $0xb0] sm:$0xf] }
  0x5f   :  { %v767_v29 = vor.u32 %v887_v24, %v766_v23 }
  0x61   :  { %430 = vmatmul.bf16.gmra.mxu0 %v723_v16  ;;  %538 = vmatmul.bf16.vlgmr.msra.gmra.mxu3 %v755_v17 }
  0x62   :  { %479 = vmatmul.bf16.gmra.mxu1 %v727_v18 }
  0x63   :  { %528 = vmatmul.bf16.gmra.mxu2 %v731_v19 }
  0x71   :  { %435 = vmatmul.bf16.gmra.mxu0 %v735_v28  ;;  %543 = vmatmul.bf16.gmra.mxu3 %v767_v29 }
  0x72   :  { %484 = vmatmul.bf16.gmra.mxu1 %v739_v30 }
  0x73   :  { %533 = vmatmul.bf16.gmra.mxu2 %v743_v31 }
  0x9e   :  { %v411_v32 = vpop.f32.mrf.mxu0 }
  0x9f   :  { %v460_v33 = vpop.f32.mrf.mxu1 }
  0xa0   :  { %v461_v36 = vadd.f32 %v460_v33, %v411_v32 }
  0xa4   :  { %v1260_v34 = vpop.f32.mrf.mxu3 }
  0xa6   :  { %v509_v35 = vpop.f32.mrf.mxu2  ;;  %v413_v37 = vpop.f32.mrf.mxu0 }
  0xa7   :  { %v462_v38 = vpop.f32.mrf.mxu1  ;;  %v510_v39 = vadd.f32 %v509_v35, %v461_v36 }
  0xa8   :  { %v463_v41 = vadd.f32 %v462_v38, %v413_v37 }
  0xa9   :  { %v604_v44 = vadd.f32 %v1265_v40, %v510_v39 }
  0xab   :  { %v620_v49 = vmax.f32 %v604_v44, 0.0 }
  0xac   :  { %v1267_v42 = vpop.f32.mrf.mxu3 }
  0xae   :  { %v511_v43 = vpop.f32.mrf.mxu2  ;;  %v416_v46 = vpop.f32.mrf.mxu0 }
  0xaf   :  { %v512_v45 = vadd.f32 %v511_v43, %v463_v41  ;;  %v465_v47 = vpop.f32.mrf.mxu1 }
  0xb0   :  { %v466_v54 = vadd.f32 %v465_v47, %v416_v46 }
  0xb1   :  { %v605_v48 = vadd.f32 %v1265_v40, %v512_v45 }
  0xb3   :  { %v621_v50 = vmax.f32 %v605_v48, 0.0 }
  0xb4   :  { %v1271_v52 = vpop.f32.mrf.mxu3 }
  0xb5   :  { %v915_v51 = vpack.c.bf16 %v621_v50, %v620_v49 }
  0xb6   :  { %v514_v53 = vpop.f32.mrf.mxu2  ;;  %v418_v55 = vpop.f32.mrf.mxu0 }
  0xb7   :  { %916 = vst [vmem:[%s1320_s3] sm:$0xff] %v915_v51   ;;  %v467_v56 = vpop.f32.mrf.mxu1  ;;  %v515_v57 = vadd.f32 %v514_v53, %v466_v54 }
  0xb8   :  { %v468_v58 = vadd.f32 %v467_v56, %v418_v55 }
  0xb9   :  { %v606_v61 = vadd.f32 %v1265_v40, %v515_v57 }
  0xbb   :  { %v622_v2 = vmax.f32 %v606_v61, 0.0 }
  0xbc   :  { %v1276_v59 = vpop.f32.mrf.mxu3 }
  0xbe   :  { %v516_v60 = vpop.f32.mrf.mxu2  ;;  %v421_v63 = vpop.f32.mrf.mxu0 }
  0xbf   :  { %v517_v62 = vadd.f32 %v516_v60, %v468_v58  ;;  %v470_v0 = vpop.f32.mrf.mxu1 }
  0xc0   :  { %v471_v7 = vadd.f32 %v470_v0, %v421_v63 }
  0xc1   :  { %v607_v1 = vadd.f32 %v1265_v40, %v517_v62 }
  0xc3   :  { %v623_v3 = vmax.f32 %v607_v1, 0.0 }
  0xc4   :  { %v490_v5 = vpop.f32.mrf.mxu3 }
  0xc5   :  { %v920_v4 = vpack.c.bf16 %v623_v3, %v622_v2  ;;  %v491_v46 = vadd.f32 %v490_v5, %v1260_v34 }
  0xc6   :  { %v519_v6 = vpop.f32.mrf.mxu2  ;;  %v423_v8 = vpop.f32.mrf.mxu0 }
  0xc7   :  { %952 = vst [vmem:[%s1320_s3 + $0x8] sm:$0xff] %v920_v4   ;;  %v472_v9 = vpop.f32.mrf.mxu1  ;;  %v520_v10 = vadd.f32 %v519_v6, %v471_v7 }
  0xc8   :  { %v473_v11 = vadd.f32 %v472_v9, %v423_v8 }
  0xc9   :  { %v608_v14 = vadd.f32 %v1265_v40, %v520_v10 }
  0xcb   :  { %v624_v19 = vmax.f32 %v608_v14, 0.0 }
  0xcc   :  { %v492_v12 = vpop.f32.mrf.mxu3 }
  0xcd   :  { %v493_v50 = vadd.f32 %v492_v12, %v1267_v42 }
  0xce   :  { %v521_v13 = vpop.f32.mrf.mxu2  ;;  %v426_v16 = vpop.f32.mrf.mxu0 }
  0xcf   :  { %v522_v15 = vadd.f32 %v521_v13, %v473_v11  ;;  %v475_v17 = vpop.f32.mrf.mxu1 }
  0xd0   :  { %v476_v24 = vadd.f32 %v475_v17, %v426_v16 }
  0xd1   :  { %v609_v18 = vadd.f32 %v1265_v40, %v522_v15 }
  0xd3   :  { %v625_v20 = vmax.f32 %v609_v18, 0.0 }
  0xd4   :  { %v495_v22 = vpop.f32.mrf.mxu3 }
  0xd5   :  { %v925_v21 = vpack.c.bf16 %v625_v20, %v624_v19  ;;  %v496_v7 = vadd.f32 %v495_v22, %v1271_v52 }
  0xd6   :  { %v524_v23 = vpop.f32.mrf.mxu2  ;;  %v428_v25 = vpop.f32.mrf.mxu0 }
  0xd7   :  { %953 = vst [vmem:[%s1320_s3 + $0x10] sm:$0xff] %v925_v21   ;;  %v477_v26 = vpop.f32.mrf.mxu1  ;;  %v525_v27 = vadd.f32 %v524_v23, %v476_v24 }
  0xd8   :  { %v478_v28 = vadd.f32 %v477_v26, %v428_v25 }
  0xd9   :  { %v610_v31 = vadd.f32 %v1265_v40, %v525_v27 }
  0xdb   :  { %v626_v37 = vmax.f32 %v610_v31, 0.0 }
  0xdc   :  { %v497_v29 = vpop.f32.mrf.mxu3 }
  0xdd   :  { %v498_v12 = vadd.f32 %v497_v29, %v1276_v59 }
  0xde   :  { %v526_v30 = vpop.f32.mrf.mxu2  ;;  %v431_v33 = vpop.f32.mrf.mxu0 }
  0xdf   :  { %v527_v32 = vadd.f32 %v526_v30, %v478_v28  ;;  %v480_v35 = vpop.f32.mrf.mxu1 }
  0xe0   :  { %v481_v44 = vadd.f32 %v480_v35, %v431_v33 }
  0xe1   :  { %v611_v36 = vadd.f32 %v1265_v40, %v527_v32 }
  0xe3   :  { %v627_v38 = vmax.f32 %v611_v36, 0.0 }
  0xe4   :  { %v539_v41 = vpop.f32.mrf.mxu3 }
  0xe5   :  { %v930_v39 = vpack.c.bf16 %v627_v38, %v626_v37  ;;  %v540_v48 = vadd.f32 %v539_v41, %v491_v46 }
  0xe6   :  { %v529_v43 = vpop.f32.mrf.mxu2  ;;  %v433_v45 = vpop.f32.mrf.mxu0 }
  0xe7   :  { %954 = vst [vmem:[%s1320_s3 + $0x18] sm:$0xff] %v930_v39   ;;  %v482_v47 = vpop.f32.mrf.mxu1  ;;  %v530_v49 = vadd.f32 %v529_v43, %v481_v44  ;;  %v616_v54 = vadd.f32 %v1265_v40, %v540_v48 }
  0xe8   :  { %v483_v51 = vadd.f32 %v482_v47, %v433_v45 }
  0xe9   :  { %v612_v57 = vadd.f32 %v1265_v40, %v530_v49  ;;  %v632_v63 = vmax.f32 %v616_v54, 0.0 }
  0xeb   :  { %v628_v1 = vmax.f32 %v612_v57, 0.0 }
  0xec   :  { %v541_v53 = vpop.f32.mrf.mxu3 }
  0xed   :  { %v542_v56 = vadd.f32 %v541_v53, %v493_v50 }
  0xee   :  { %v531_v55 = vpop.f32.mrf.mxu2  ;;  %v436_v61 = vpop.f32.mrf.mxu0 }
  0xef   :  { %v532_v58 = vadd.f32 %v531_v55, %v483_v51  ;;  %v617_v60 = vadd.f32 %v1265_v40, %v542_v56  ;;  %v485_v62 = vpop.f32.mrf.mxu1 }
  0xf0   :  { %v486_v6 = vadd.f32 %v485_v62, %v436_v61 }
  0xf1   :  { %v613_v34 = vadd.f32 %v1265_v40, %v532_v58  ;;  %v633_v0 = vmax.f32 %v617_v60, 0.0 }
  0xf3   :  { %v629_v2 = vmax.f32 %v613_v34, 0.0  ;;  %v945_v42 = vpack.c.bf16 %v633_v0, %v632_v63 }
  0xf4   :  { %v544_v4 = vpop.f32.mrf.mxu3 }
  0xf5   :  { %v935_v3 = vpack.c.bf16 %v629_v2, %v628_v1  ;;  %957 = vst [vmem:[%s1320_s3 + $0x30] sm:$0xff] %v945_v42   ;;  %v545_v8 = vadd.f32 %v544_v4, %v496_v7 }
  0xf6   :  { %v534_v5 = vpop.f32.mrf.mxu2  ;;  %v438_v9 = vpop.f32.mrf.mxu0 }
  0xf7   :  { %955 = vst [vmem:[%s1320_s3 + $0x20] sm:$0xff] %v935_v3   ;;  %v487_v10 = vpop.f32.mrf.mxu1  ;;  %v535_v11 = vadd.f32 %v534_v5, %v486_v6  ;;  %v618_v15 = vadd.f32 %v1265_v40, %v545_v8 }
  0xf8   :  { %v488_v13 = vadd.f32 %v487_v10, %v438_v9 }
  0xf9   :  { %v614_v18 = vadd.f32 %v1265_v40, %v535_v11  ;;  %v634_v52 = vmax.f32 %v618_v15, 0.0 }
  0xfb   :  { %v630_v23 = vmax.f32 %v614_v18, 0.0 }
  0xfc   :  { %v546_v14 = vpop.f32.mrf.mxu3 }
  0xfd   :  { %v547_v17 = vadd.f32 %v546_v14, %v498_v12 }
  0xfe   :  { %v536_v16 = vpop.f32.mrf.mxu2 }
  0xff   :  { %v537_v19 = vadd.f32 %v536_v16, %v488_v13  ;;  %v619_v20 = vadd.f32 %v1265_v40, %v547_v17 }
 0x101   :  { %v615_v21 = vadd.f32 %v1265_v40, %v537_v19  ;;  %v635_v22 = vmax.f32 %v619_v20, 0.0 }
 0x103   :  { %v631_v24 = vmax.f32 %v615_v21, 0.0  ;;  %v950_v25 = vpack.c.bf16 %v635_v22, %v634_v52 }
 0x105   :  { %v940_v26 = vpack.c.bf16 %v631_v24, %v630_v23  ;;  %958 = vst [vmem:[%s1320_s3 + $0x38] sm:$0xff] %v950_v25  }
 0x107   :  { %956 = vst [vmem:[%s1320_s3 + $0x28] sm:$0xff] %v940_v26  }

// kernel: ds_hide_forward.14
= control target key start
LH: loop header
LB: loop body
LE: loop exit
PB: predicated region body
PF: predicated region fallthrough
CT: control target
= control target key end

     0   :  { %s1952_s12 = smov 0   ;;  %s1954_s13 = smov 0   ;;  %s2313_s0 = inlined_call_operand.vmem [shape: bf16[512,384], index: 0, kind: input, shape index: {}]   ;;  %s2314_s1 = inlined_call_operand.vmem [shape: bf16[384,128], index: 1, kind: input, shape index: {}]   ;;  %s2315_s2 = inlined_call_operand.vmem [shape: f32[1,128], index: 2, kind: input, shape index: {}]   ;;  %s2316_s3 = inlined_call_operand.vmem [shape: bf16[512,128], index: 3, kind: output, shape index: {}]  }
   0x1   :  { %s1956_s14 = smov 0  }
   0x2 LB: > { %s25_s15 = sadd.s32 1, %s1926_s13  ;;  %p1396_p0 = scmp.ge.s32.totalorder %s1930_s14, 1  ;;  %s1930_s14 = sphi %s1956_s14, %s13_s14   ;;  %s1926_s13 = sphi %s1954_s13, %s2318_s13   ;;  %s1922_s12 = sphi %s1952_s12, %s2317_s12  }
   0x3   : > { %p27_p1 = scmp.ge.s32.totalorder %s25_s15, 2  ;;  %p169_p2 = scmp.lt.s32.totalorder %s1930_s14, 3 }
   0x5   : > { %s2320_s15 = smov (%p27_p1, %s25_s15), 0  ;;  %p170_p3 = pnand %p1396_p0, %p169_p2 }
   0x6   : > { %s1397_s7 = sshll.u32 (!%p170_p3), %s1922_s12, 5 }
   0x7   : > { %173 = sbr.rel (%p170_p3) target bundleno = 371 (0x173), region = 32  ;;  %p205_p4 = scmp.lt.s32.totalorder (!%p170_p3), %s1397_s7, 63 }
   0xc   : > { %v1746_v0 = vld [vmem:[%s2314_s1 + $0x38] sm:$0xff]  ;;  %v1745_v3 = vld [vmem:[%s2314_s1 + $0x30] sm:$0xff]  ;;  %v1744_v6 = vld [vmem:[%s2314_s1 + $0x28] sm:$0xff]  ;;  %s2322_s7 = smov (!%p205_p4, %s1397_s7), 63 }
   0xd   : > { %v1978_v1 = vld [vmem:[%s2314_s1 + $0x78] sm:$0xff]  ;;  %807 = vmatpush.bf16.msra.mxu0 %v1746_v0  ;;  %1858 = vmatpush.bf16.msra.mxu3 %v1746_v0  ;;  %v1993_v4 = vld [vmem:[%s2314_s1 + $0x70] sm:$0xff]  ;;  %v2008_v7 = vld [vmem:[%s2314_s1 + $0x68] sm:$0xff]  ;;  %s1882_s25 = smul.u32 12, %s2322_s7  ;;  %s1400_s24 = sshll.u32 %s2322_s7, 2 }
   0xe   : > { %v1983_v2 = vld [vmem:[%s2314_s1 + $0xb8] sm:$0xff]  ;;  %896 = vmatpush.bf16.msra.mxu1 %v1978_v1  ;;  %v1998_v5 = vld [vmem:[%s2314_s1 + $0xb0] sm:$0xff]  ;;  %v2013_v8 = vld [vmem:[%s2314_s1 + $0xa8] sm:$0xff]  ;;  %s2196_s27 = scalar_lea.vmem %s2316_s3, %s1400_s24 }
   0xf   : > { %985 = vmatpush.bf16.msra.mxu2 %v1983_v2  ;;  %v1743_v9 = vld [vmem:[%s2314_s1 + $0x20] sm:$0xff]  ;;  %v1742_v12 = vld [vmem:[%s2314_s1 + $0x18] sm:$0xff]  ;;  %v1741_v15 = vld [vmem:[%s2314_s1 + $0x10] sm:$0xff]  ;;  %s2065_s8 = scalar_lea.vmem %s2313_s0, %s1882_s25 }
  0x10   : > { %v2024_v10 = vld [vmem:[%s2314_s1 + $0x60] sm:$0xff]  ;;  %v1750_v13 = vld [vmem:[%s2314_s1 + $0x58] sm:$0xff]  ;;  %v1749_v16 = vld [vmem:[%s2314_s1 + $0x50] sm:$0xff] }
  0x11   : > { %808 = vmatpush.bf16.msra.mxu0 %v1745_v3  ;;  %1859 = vmatpush.bf16.msra.mxu3 %v1745_v3  ;;  %v2029_v11 = vld [vmem:[%s2314_s1 + $0xa0] sm:$0xff]  ;;  %v2044_v14 = vld [vmem:[%s2314_s1 + $0x98] sm:$0xff]  ;;  %v2057_v17 = vld [vmem:[%s2314_s1 + $0x90] sm:$0xff] }
  0x12   : > { %897 = vmatpush.bf16.msra.mxu1 %v1993_v4  ;;  %v1740_v18 = vld [vmem:[%s2314_s1 + $0x8] sm:$0xff]  ;;  %v1739_v21 = vld [vmem:[%s2314_s1] sm:$0xff]  ;;  %v1405_v29 = vld [vmem:[%s2065_s8 + $0xc] sm:$0xf0] }
  0x13   : > { %986 = vmatpush.bf16.msra.mxu2 %v1998_v5  ;;  %v1748_v19 = vld [vmem:[%s2314_s1 + $0x48] sm:$0xff]  ;;  %v1747_v22 = vld [vmem:[%s2314_s1 + $0x40] sm:$0xff]  ;;  %v1693_v31 = vld [vmem:[%s2065_s8 + $0x10] sm:$0xf0] }
  0x14   : > { %v2074_v20 = vld [vmem:[%s2314_s1 + $0x88] sm:$0xff]  ;;  %v2085_v23 = vld [vmem:[%s2314_s1 + $0x80] sm:$0xff]  ;;  %v1415_v36 = vld [vmem:[%s2065_s8 + $0x18] sm:$0xf] }
  0x15   : > { %809 = vmatpush.bf16.msra.mxu0 %v1744_v6  ;;  %1860 = vmatpush.bf16.msra.mxu3 %v1744_v6  ;;  %v1403_v24 = vld [vmem:[%s2065_s8] sm:$0xf]  ;;  %v1692_v25 = vld [vmem:[%s2065_s8 + $0x8] sm:$0xf0]  ;;  %v1691_v28 = vld [vmem:[%s2065_s8 + $0x4] sm:$0xf] }
  0x16   : > { %898 = vmatpush.bf16.msra.mxu1 %v2008_v7  ;;  %v1547_v26 = vld [vmem:[%s2065_s8 + $0x120] sm:$0xf]  ;;  %v1728_v27 = vld [vmem:[%s2065_s8 + $0x128] sm:$0xf0]  ;;  %v1411_v30 = vld [vmem:[%s2065_s8 + $0x8] sm:$0xf]  ;;  %v1404_v32 = vor.u32 %v1692_v25, %v1403_v24  ;;  %v1408_v34 = vor.u32 %v1691_v28, %v1405_v29 }
  0x17   : > { %987 = vmatpush.bf16.msra.mxu2 %v2013_v8  ;;  %v1548_v33 = vor.u32 %v1728_v27, %v1547_v26  ;;  %v1412_v35 = vor.u32 %v1693_v31, %v1411_v30  ;;  %v1695_v37 = vld [vmem:[%s2065_s8 + $0x20] sm:$0xf0]  ;;  %v1559_v38 = vld [vmem:[%s2065_s8 + $0x138] sm:$0xf]  ;;  %v1694_v40 = vld [vmem:[%s2065_s8 + $0x1c] sm:$0xf] }
  0x18   : > { %v1731_v39 = vld [vmem:[%s2065_s8 + $0x140] sm:$0xf0]  ;;  %v1417_v41 = vld [vmem:[%s2065_s8 + $0x24] sm:$0xf0]  ;;  %v1423_v42 = vld [vmem:[%s2065_s8 + $0x20] sm:$0xf]  ;;  %v1416_v44 = vor.u32 %v1695_v37, %v1415_v36 }
  0x19   : > { %810 = vmatpush.bf16.msra.mxu0 %v1743_v9  ;;  %1861 = vmatpush.bf16.msra.mxu3 %v1743_v9  ;;  %v1696_v43 = vld [vmem:[%s2065_s8 + $0x28] sm:$0xf0]  ;;  %v1560_v45 = vor.u32 %v1731_v39, %v1559_v38  ;;  %v1420_v46 = vor.u32 %v1694_v40, %v1417_v41  ;;  %v1427_v48 = vld [vmem:[%s2065_s8 + $0x30] sm:$0xf]  ;;  %v1698_v49 = vld [vmem:[%s2065_s8 + $0x38] sm:$0xf0] }
  0x1a   : > { %899 = vmatpush.bf16.msra.mxu1 %v2024_v10  ;;  %v1424_v47 = vor.u32 %v1696_v43, %v1423_v42  ;;  %v1571_v50 = vld [vmem:[%s2065_s8 + $0x150] sm:$0xf]  ;;  %v1734_v51 = vld [vmem:[%s2065_s8 + $0x158] sm:$0xf0]  ;;  %v1697_v52 = vld [vmem:[%s2065_s8 + $0x34] sm:$0xf]  ;;  %v1428_v56 = vor.u32 %v1698_v49, %v1427_v48 }
  0x1b   : > { %988 = vmatpush.bf16.msra.mxu2 %v2029_v11  ;;  %v1429_v53 = vld [vmem:[%s2065_s8 + $0x3c] sm:$0xf0]  ;;  %v1435_v54 = vld [vmem:[%s2065_s8 + $0x38] sm:$0xf]  ;;  %v1699_v55 = vld [vmem:[%s2065_s8 + $0x40] sm:$0xf0]  ;;  %v1572_v57 = vor.u32 %v1734_v51, %v1571_v50 }
  0x1c   : > { %v1432_v58 = vor.u32 %v1697_v52, %v1429_v53  ;;  %v1436_v59 = vor.u32 %v1699_v55, %v1435_v54  ;;  %v1439_v60 = vld [vmem:[%s2065_s8 + $0x48] sm:$0xf]  ;;  %v1701_v61 = vld [vmem:[%s2065_s8 + $0x50] sm:$0xf0]  ;;  %v1700_v0 = vld [vmem:[%s2065_s8 + $0x4c] sm:$0xf] }
  0x1d   : > { %811 = vmatpush.bf16.msra.mxu0 %v1742_v12  ;;  %1862 = vmatpush.bf16.msra.mxu3 %v1742_v12  ;;  %v1583_v62 = vld [vmem:[%s2065_s8 + $0x168] sm:$0xf]  ;;  %v1737_v63 = vld [vmem:[%s2065_s8 + $0x170] sm:$0xf0]  ;;  %v1702_v3 = vld [vmem:[%s2065_s8 + $0x58] sm:$0xf0] }
  0x1e   : > { %900 = vmatpush.bf16.msra.mxu1 %v1750_v13  ;;  %v1704_v9 = vld [vmem:[%s2065_s8 + $0x68] sm:$0xf0]  ;;  %v1549_v12 = vld [vmem:[%s2065_s8 + $0x12c] sm:$0xf0]  ;;  %v1730_v24 = vld [vmem:[%s2065_s8 + $0x13c] sm:$0xf] }
  0x1f   : > { %989 = vmatpush.bf16.msra.mxu2 %v2044_v14  ;;  %v1561_v25 = vld [vmem:[%s2065_s8 + $0x144] sm:$0xf0]  ;;  %v1471_v26 = vld [vmem:[%s2065_s8 + $0x80] sm:$0xf]  ;;  %v1708_v27 = vld [vmem:[%s2065_s8 + $0x88] sm:$0xf0] }
  0x20   : > { %v1564_v29 = vor.u32 %v1730_v24, %v1561_v25  ;;  %v1472_v31 = vor.u32 %v1708_v27, %v1471_v26  ;;  %v1573_v36 = vld [vmem:[%s2065_s8 + $0x15c] sm:$0xf0]  ;;  %v1483_v38 = vld [vmem:[%s2065_s8 + $0x98] sm:$0xf]  ;;  %v1711_v39 = vld [vmem:[%s2065_s8 + $0xa0] sm:$0xf0] }
  0x21   : > { %812 = vmatpush.bf16.msra.mxu0 %v1741_v15  ;;  %1863 = vmatpush.bf16.msra.mxu3 %v1741_v15  ;;  %v1705_v15 = vld [vmem:[%s2065_s8 + $0x70] sm:$0xf0]  ;;  %v1477_v37 = vld [vmem:[%s2065_s8 + $0x9c] sm:$0xf0]  ;;  %v1484_v43 = vor.u32 %v1711_v39, %v1483_v38  ;;  %v1585_v48 = vld [vmem:[%s2065_s8 + $0x174] sm:$0xf0] }
  0x22   : > { %901 = vmatpush.bf16.msra.mxu1 %v1749_v16  ;;  %v1489_v49 = vld [vmem:[%s2065_s8 + $0xb4] sm:$0xf0]  ;;  %v1495_v50 = vld [vmem:[%s2065_s8 + $0xb0] sm:$0xf]  ;;  %v1714_v51 = vld [vmem:[%s2065_s8 + $0xb8] sm:$0xf0] }
  0x23   : > { %990 = vmatpush.bf16.msra.mxu2 %v2057_v17  ;;  %v1496_v55 = vor.u32 %v1714_v51, %v1495_v50 }
  0x25   : > { %813 = vmatpush.bf16.msra.mxu0 %v1740_v18  ;;  %1864 = vmatpush.bf16.msra.mxu3 %v1740_v18 }
  0x26   : > { %902 = vmatpush.bf16.msra.mxu1 %v1748_v19 }
  0x27   : > { %991 = vmatpush.bf16.msra.mxu2 %v2074_v20 }
  0x29   : > { %814 = vmatpush.bf16.msra.mxu0 %v1739_v21  ;;  %1865 = vmatpush.bf16.msra.mxu3 %v1739_v21  ;;  %v1707_v21 = vld [vmem:[%s2065_s8 + $0x80] sm:$0xf0] }
  0x2a   : > { %903 = vmatpush.bf16.msra.mxu1 %v1747_v22 }
  0x2b   : > { %992 = vmatpush.bf16.msra.mxu2 %v2085_v23 }
  0x2c   : > { %815 = vmatmul.bf16.vlgmr.msra.gmra.mxu0 %v1404_v32  ;;  %875 = vmatmul.bf16.vlgmr.msra.gmra.mxu3 %v1548_v33  ;;  %v1475_v32 = vld [vmem:[%s2065_s8 + $0x90] sm:$0xf]  ;;  %v1710_v33 = vld [vmem:[%s2065_s8 + $0x98] sm:$0xf0] }
  0x2d   : > { %1866 = vmatpush.bf16.msrb.mxu3 %v1978_v1  ;;  %904 = vmatmul.bf16.vlgmr.msra.gmra.mxu1 %v1408_v34  ;;  %v1441_v1 = vld [vmem:[%s2065_s8 + $0x54] sm:$0xf0]  ;;  %v1709_v34 = vld [vmem:[%s2065_s8 + $0x94] sm:$0xf]  ;;  %v1476_v40 = vor.u32 %v1710_v33, %v1475_v32 }
  0x2e   : > { %993 = vmatmul.bf16.vlgmr.msra.gmra.mxu2 %v1412_v35  ;;  %v1444_v6 = vor.u32 %v1700_v0, %v1441_v1  ;;  %v1733_v35 = vld [vmem:[%s2065_s8 + $0x154] sm:$0xf]  ;;  %v1480_v42 = vor.u32 %v1709_v34, %v1477_v37 }
  0x2f   : > { %v1576_v41 = vor.u32 %v1733_v35, %v1573_v36 }
  0x31   : > { %1867 = vmatpush.bf16.msrb.mxu3 %v1993_v4  ;;  %v1440_v4 = vor.u32 %v1701_v61, %v1439_v60  ;;  %v1729_v60 = vld [vmem:[%s2065_s8 + $0x130] sm:$0xf0]  ;;  %v1501_v61 = vld [vmem:[%s2065_s8 + $0xcc] sm:$0xf0] }
  0x35   : > { %1868 = vmatpush.bf16.msrb.mxu3 %v2008_v7 }
  0x39   : > { %1869 = vmatpush.bf16.msrb.mxu3 %v2024_v10  ;;  %v1703_v10 = vld [vmem:[%s2065_s8 + $0x64] sm:$0xf] }
  0x3c   : > { %820 = vmatmul.bf16.gmra.mxu0 %v1416_v44  ;;  %880 = vmatmul.bf16.gmra.mxu3 %v1560_v45  ;;  %v1487_v44 = vld [vmem:[%s2065_s8 + $0xa8] sm:$0xf]  ;;  %v1713_v45 = vld [vmem:[%s2065_s8 + $0xb0] sm:$0xf0] }
  0x3d   : > { %1870 = vmatpush.bf16.msrb.mxu3 %v1750_v13  ;;  %909 = vmatmul.bf16.gmra.mxu1 %v1420_v46  ;;  %v1453_v13 = vld [vmem:[%s2065_s8 + $0x6c] sm:$0xf0]  ;;  %v1712_v46 = vld [vmem:[%s2065_s8 + $0xac] sm:$0xf]  ;;  %v1488_v52 = vor.u32 %v1713_v45, %v1487_v44  ;;  %v1721_v44 = vld [vmem:[%s2065_s8 + $0xf4] sm:$0xf] }
  0x3e   : > { %998 = vmatmul.bf16.gmra.mxu2 %v1424_v47  ;;  %v1456_v18 = vor.u32 %v1703_v10, %v1453_v13  ;;  %v1736_v47 = vld [vmem:[%s2065_s8 + $0x16c] sm:$0xf]  ;;  %v1492_v54 = vor.u32 %v1712_v46, %v1489_v49  ;;  %v1719_v13 = vld [vmem:[%s2065_s8 + $0xe0] sm:$0xf0]  ;;  %v1579_v45 = vld [vmem:[%s2065_s8 + $0x158] sm:$0xf] }
  0x3f   : > { %v1588_v53 = vor.u32 %v1736_v47, %v1585_v48  ;;  %v1735_v46 = vld [vmem:[%s2065_s8 + $0x160] sm:$0xf0]  ;;  %v1525_v47 = vld [vmem:[%s2065_s8 + $0xfc] sm:$0xf0]  ;;  %v1531_v48 = vld [vmem:[%s2065_s8 + $0xf8] sm:$0xf] }
  0x40   : > { %v1723_v49 = vld [vmem:[%s2065_s8 + $0x100] sm:$0xf0] }
  0x41   : > { %1871 = vmatpush.bf16.msrb.mxu3 %v1749_v16 }
  0x45   : > { %1872 = vmatpush.bf16.msrb.mxu3 %v1748_v19 }
  0x49   : > { %1873 = vmatpush.bf16.msrb.mxu3 %v1747_v22  ;;  %v1706_v22 = vld [vmem:[%s2065_s8 + $0x7c] sm:$0xf] }
  0x4c   : > { %825 = vmatmul.bf16.gmra.mxu0 %v1428_v56  ;;  %885 = vmatmul.bf16.gmra.mxu3 %v1572_v57  ;;  %v1499_v56 = vld [vmem:[%s2065_s8 + $0xc0] sm:$0xf]  ;;  %v1716_v57 = vld [vmem:[%s2065_s8 + $0xc8] sm:$0xf0] }
  0x4d   : > { %1874 = vmatpush.bf16.msra.mxu3 %v1983_v2  ;;  %914 = vmatmul.bf16.gmra.mxu1 %v1432_v58  ;;  %v1447_v2 = vld [vmem:[%s2065_s8 + $0x50] sm:$0xf]  ;;  %v1715_v58 = vld [vmem:[%s2065_s8 + $0xc4] sm:$0xf]  ;;  %v1500_v0 = vor.u32 %v1716_v57, %v1499_v56 }
  0x4e   : > { %1003 = vmatmul.bf16.gmra.mxu2 %v1436_v59  ;;  %v1448_v7 = vor.u32 %v1702_v3, %v1447_v2  ;;  %v1555_v59 = vld [vmem:[%s2065_s8 + $0x128] sm:$0xf]  ;;  %v1504_v3 = vor.u32 %v1715_v58, %v1501_v61  ;;  %v1528_v58 = vor.u32 %v1721_v44, %v1525_v47 }
  0x4f   : > { %v1556_v1 = vor.u32 %v1729_v60, %v1555_v59  ;;  %v1532_v59 = vor.u32 %v1723_v49, %v1531_v48 }
  0x51   : > { %1875 = vmatpush.bf16.msra.mxu3 %v1998_v5  ;;  %v1584_v5 = vor.u32 %v1737_v63, %v1583_v62  ;;  %v1507_v62 = vld [vmem:[%s2065_s8 + $0xc8] sm:$0xf]  ;;  %v1717_v63 = vld [vmem:[%s2065_s8 + $0xd0] sm:$0xf0] }
  0x55   : > { %1876 = vmatpush.bf16.msra.mxu3 %v2013_v8  ;;  %v1451_v8 = vld [vmem:[%s2065_s8 + $0x60] sm:$0xf] }
  0x56   : > { %v1452_v16 = vor.u32 %v1704_v9, %v1451_v8 }
  0x59   : > { %1877 = vmatpush.bf16.msra.mxu3 %v2029_v11  ;;  %v1727_v11 = vld [vmem:[%s2065_s8 + $0x124] sm:$0xf] }
  0x5c   : > { %830 = vmatmul.bf16.gmra.mxu0 %v1440_v4  ;;  %890 = vmatmul.bf16.gmra.mxu3 %v1584_v5  ;;  %v1508_v4 = vor.u32 %v1717_v63, %v1507_v62 }
  0x5d   : > { %1878 = vmatpush.bf16.msra.mxu3 %v2044_v14  ;;  %919 = vmatmul.bf16.gmra.mxu1 %v1444_v6  ;;  %v1459_v14 = vld [vmem:[%s2065_s8 + $0x68] sm:$0xf] }
  0x5e   : > { %1008 = vmatmul.bf16.gmra.mxu2 %v1448_v7  ;;  %v1460_v19 = vor.u32 %v1705_v15, %v1459_v14  ;;  %v1718_v15 = vld [vmem:[%s2065_s8 + $0xdc] sm:$0xf] }
  0x61   : > { %1879 = vmatpush.bf16.msra.mxu3 %v2057_v17  ;;  %v1552_v17 = vor.u32 %v1727_v11, %v1549_v12  ;;  %v2178_v11 = vld [vmem:[%s2315_s2] ss:$0 sm:$0xff]  ;;  %v1511_v12 = vld [vmem:[%s2065_s8 + $0xd8] sm:$0xf] }
  0x62   : > { %v1512_v25 = vor.u32 %v1719_v13, %v1511_v12  ;;  %v1591_v12 = vld [vmem:[%s2065_s8 + $0x170] sm:$0xf]  ;;  %v1738_v13 = vld [vmem:[%s2065_s8 + $0x178] sm:$0xf0] }
  0x65   : > { %1880 = vmatpush.bf16.msra.mxu3 %v2074_v20  ;;  %v1463_v20 = vld [vmem:[%s2065_s8 + $0x78] sm:$0xf] }
  0x66   : > { %v1464_v28 = vor.u32 %v1707_v21, %v1463_v20  ;;  %v1720_v20 = vld [vmem:[%s2065_s8 + $0xe8] sm:$0xf0] }
  0x69   : > { %1881 = vmatpush.bf16.msra.mxu3 %v2085_v23  ;;  %v1465_v23 = vld [vmem:[%s2065_s8 + $0x84] sm:$0xf0] }
  0x6a   : > { %v1468_v30 = vor.u32 %v1706_v22, %v1465_v23 }
  0x6c   : > { %835 = vmatmul.bf16.gmra.mxu0 %v1452_v16  ;;  %964 = vmatmul.bf16.vlgmr.msrb.gmra.mxu3 %v1552_v17  ;;  %v1567_v16 = vld [vmem:[%s2065_s8 + $0x140] sm:$0xf]  ;;  %v1732_v17 = vld [vmem:[%s2065_s8 + $0x148] sm:$0xf0] }
  0x6d   : > { %924 = vmatmul.bf16.gmra.mxu1 %v1456_v18  ;;  %v1513_v18 = vld [vmem:[%s2065_s8 + $0xe4] sm:$0xf0]  ;;  %v1568_v23 = vor.u32 %v1732_v17, %v1567_v16  ;;  %v1726_v16 = vld [vmem:[%s2065_s8 + $0x118] sm:$0xf0] }
  0x6e   : > { %1013 = vmatmul.bf16.gmra.mxu2 %v1460_v19  ;;  %v1519_v19 = vld [vmem:[%s2065_s8 + $0xe0] sm:$0xf] }
  0x7c   : > { %840 = vmatmul.bf16.gmra.mxu0 %v1464_v28  ;;  %969 = vmatmul.bf16.gmra.mxu3 %v1564_v29  ;;  %v1516_v29 = vor.u32 %v1718_v15, %v1513_v18  ;;  %v1543_v15 = vld [vmem:[%s2065_s8 + $0x110] sm:$0xf] }
  0x7d   : > { %929 = vmatmul.bf16.gmra.mxu1 %v1468_v30  ;;  %v1520_v30 = vor.u32 %v1720_v20, %v1519_v19 }
  0x7e   : > { %1018 = vmatmul.bf16.gmra.mxu2 %v1472_v31 }
  0x8c   : > { %845 = vmatmul.bf16.gmra.mxu0 %v1476_v40  ;;  %974 = vmatmul.bf16.gmra.mxu3 %v1576_v41  ;;  %v1523_v41 = vld [vmem:[%s2065_s8 + $0xf0] sm:$0xf] }
  0x8d   : > { %934 = vmatmul.bf16.gmra.mxu1 %v1480_v42  ;;  %v1722_v42 = vld [vmem:[%s2065_s8 + $0xf8] sm:$0xf0] }
  0x8e   : > { %1023 = vmatmul.bf16.gmra.mxu2 %v1484_v43 }
  0x9c   : > { %850 = vmatmul.bf16.gmra.mxu0 %v1488_v52  ;;  %979 = vmatmul.bf16.gmra.mxu3 %v1588_v53  ;;  %v1524_v53 = vor.u32 %v1722_v42, %v1523_v41 }
  0x9d   : > { %939 = vmatmul.bf16.gmra.mxu1 %v1492_v54  ;;  %v1580_v54 = vor.u32 %v1735_v46, %v1579_v45 }
  0x9e   : > { %1028 = vmatmul.bf16.gmra.mxu2 %v1496_v55 }
  0xa9   : > { %v816_v2 = vpop.f32.mrf.mxu0 }
  0xaa   : > { %v905_v5 = vpop.f32.mrf.mxu1 }
  0xab   : > { %v906_v8 = vadd.f32 %v905_v5, %v816_v2 }
  0xac   : > { %855 = vmatmul.bf16.gmra.mxu0 %v1500_v0  ;;  %1053 = vmatmul.bf16.vlgmr.msra.gmra.mxu3 %v1556_v1 }
  0xad   : > { %944 = vmatmul.bf16.gmra.mxu1 %v1504_v3 }
  0xae   : > { %1033 = vmatmul.bf16.gmra.mxu2 %v1508_v4 }
  0xaf   : > { %v2173_v6 = vpop.f32.mrf.mxu3 }
  0xb1   : > { %v994_v7 = vpop.f32.mrf.mxu2  ;;  %v818_v9 = vpop.f32.mrf.mxu0 }
  0xb2   : > { %v907_v10 = vpop.f32.mrf.mxu1  ;;  %v995_v14 = vadd.f32 %v994_v7, %v906_v8  ;;  %v1535_v7 = vld [vmem:[%s2065_s8 + $0x108] sm:$0xf]  ;;  %v1725_v8 = vld [vmem:[%s2065_s8 + $0x110] sm:$0xf0] }
  0xb3   : > { %v908_v21 = vadd.f32 %v907_v10, %v818_v9  ;;  %v1724_v10 = vld [vmem:[%s2065_s8 + $0x10c] sm:$0xf]  ;;  %v1536_v20 = vor.u32 %v1725_v8, %v1535_v7 }
  0xb4   : > { %v1177_v26 = vadd.f32 %v2178_v11, %v995_v14  ;;  %v1537_v14 = vld [vmem:[%s2065_s8 + $0x114] sm:$0xf0] }
  0xb6   : > { %v1209_v33 = vmax.f32 %v1177_v26, 0.0  ;;  %v1540_v26 = vor.u32 %v1724_v10, %v1537_v14 }
  0xb7   : > { %v2188_v22 = vpop.f32.mrf.mxu3 }
  0xb9   : > { %v996_v24 = vpop.f32.mrf.mxu2  ;;  %v821_v28 = vpop.f32.mrf.mxu0 }
  0xba   : > { %v997_v27 = vadd.f32 %v996_v24, %v908_v21  ;;  %v910_v31 = vpop.f32.mrf.mxu1  ;;  %v1592_v21 = vor.u32 %v1738_v13, %v1591_v12 }
  0xbb   : > { %v911_v38 = vadd.f32 %v910_v31, %v821_v28 }
  0xbc   : > { %v1178_v32 = vadd.f32 %v2178_v11, %v997_v27  ;;  %860 = vmatmul.bf16.gmra.mxu0 %v1512_v25  ;;  %1058 = vmatmul.bf16.gmra.mxu3 %v1568_v23  ;;  %v1544_v27 = vor.u32 %v1726_v16, %v1543_v15 }
  0xbd   : > { %949 = vmatmul.bf16.gmra.mxu1 %v1516_v29 }
  0xbe   : > { %v1210_v34 = vmax.f32 %v1178_v32, 0.0  ;;  %1038 = vmatmul.bf16.gmra.mxu2 %v1520_v30 }
  0xbf   : > { %v2198_v36 = vpop.f32.mrf.mxu3 }
  0xc0   : > { %v1766_v35 = vpack.c.bf16 %v1210_v34, %v1209_v33 }
  0xc1   : > { %v999_v37 = vpop.f32.mrf.mxu2  ;;  %v823_v39 = vpop.f32.mrf.mxu0 }
  0xc2   : > { %1767 = vst [vmem:[%s2196_s27] sm:$0xff] %v1766_v35   ;;  %v912_v40 = vpop.f32.mrf.mxu1  ;;  %v1000_v43 = vadd.f32 %v999_v37, %v911_v38 }
  0xc3   : > { %v913_v50 = vadd.f32 %v912_v40, %v823_v39 }
  0xc4   : > { %v1179_v55 = vadd.f32 %v2178_v11, %v1000_v43 }
  0xc6   : > { %v1211_v62 = vmax.f32 %v1179_v55, 0.0 }
  0xc7   : > { %v2209_v51 = vpop.f32.mrf.mxu3 }
  0xc9   : > { %v1001_v52 = vpop.f32.mrf.mxu2  ;;  %v826_v57 = vpop.f32.mrf.mxu0 }
  0xca   : > { %v1002_v56 = vadd.f32 %v1001_v52, %v913_v50  ;;  %v915_v60 = vpop.f32.mrf.mxu1 }
  0xcb   : > { %v916_v3 = vadd.f32 %v915_v60, %v826_v57 }
  0xcc   : > { %v1180_v61 = vadd.f32 %v2178_v11, %v1002_v56  ;;  %865 = vmatmul.bf16.gmra.mxu0 %v1524_v53  ;;  %1063 = vmatmul.bf16.gmra.mxu3 %v1580_v54 }
  0xcd   : > { %954 = vmatmul.bf16.gmra.mxu1 %v1528_v58 }
  0xce   : > { %v1212_v63 = vmax.f32 %v1180_v61, 0.0  ;;  %1043 = vmatmul.bf16.gmra.mxu2 %v1532_v59 }
  0xcf   : > { %v2213_v1 = vpop.f32.mrf.mxu3 }
  0xd0   : > { %v1771_v0 = vpack.c.bf16 %v1212_v63, %v1211_v62 }
  0xd1   : > { %v1004_v2 = vpop.f32.mrf.mxu2  ;;  %v828_v4 = vpop.f32.mrf.mxu0 }
  0xd2   : > { %1843 = vst [vmem:[%s2196_s27 + $0x8] sm:$0xff] %v1771_v0   ;;  %v917_v5 = vpop.f32.mrf.mxu1  ;;  %v1005_v9 = vadd.f32 %v1004_v2, %v916_v3 }
  0xd3   : > { %v918_v17 = vadd.f32 %v917_v5, %v828_v4 }
  0xd4   : > { %v1181_v24 = vadd.f32 %v2178_v11, %v1005_v9 }
  0xd6   : > { %v1213_v30 = vmax.f32 %v1181_v24, 0.0 }
  0xd7   : > { %v2224_v18 = vpop.f32.mrf.mxu3 }
  0xd9   : > { %v1006_v19 = vpop.f32.mrf.mxu2  ;;  %v831_v23 = vpop.f32.mrf.mxu0 }
  0xda   : > { %v1007_v25 = vadd.f32 %v1006_v19, %v918_v17  ;;  %v920_v28 = vpop.f32.mrf.mxu1 }
  0xdb   : > { %v921_v35 = vadd.f32 %v920_v28, %v831_v23 }
  0xdc   : > { %v1182_v29 = vadd.f32 %v2178_v11, %v1007_v25  ;;  %870 = vmatmul.bf16.gmra.mxu0 %v1536_v20  ;;  %1068 = vmatmul.bf16.gmra.mxu3 %v1592_v21 }
  0xdd   : > { %959 = vmatmul.bf16.gmra.mxu1 %v1540_v26 }
  0xde   : > { %v1214_v31 = vmax.f32 %v1182_v29, 0.0  ;;  %1048 = vmatmul.bf16.gmra.mxu2 %v1544_v27 }
  0xdf   : > { %v2228_v33 = vpop.f32.mrf.mxu3 }
  0xe0   : > { %v1776_v32 = vpack.c.bf16 %v1214_v31, %v1213_v30 }
  0xe1   : > { %v1009_v34 = vpop.f32.mrf.mxu2  ;;  %v833_v37 = vpop.f32.mrf.mxu0 }
  0xe2   : > { %1844 = vst [vmem:[%s2196_s27 + $0x10] sm:$0xff] %v1776_v32   ;;  %v922_v38 = vpop.f32.mrf.mxu1  ;;  %v1010_v39 = vadd.f32 %v1009_v34, %v921_v35 }
  0xe3   : > { %v923_v40 = vadd.f32 %v922_v38, %v833_v37 }
  0xe4   : > { %v1183_v43 = vadd.f32 %v2178_v11, %v1010_v39 }
  0xe6   : > { %v1215_v48 = vmax.f32 %v1183_v43, 0.0 }
  0xe7   : > { %v2231_v41 = vpop.f32.mrf.mxu3 }
  0xe9   : > { %v1011_v42 = vpop.f32.mrf.mxu2  ;;  %v836_v45 = vpop.f32.mrf.mxu0 }
  0xea   : > { %v1012_v44 = vadd.f32 %v1011_v42, %v923_v40  ;;  %v925_v46 = vpop.f32.mrf.mxu1 }
  0xeb   : > { %v926_v55 = vadd.f32 %v925_v46, %v836_v45 }
  0xec   : > { %v1184_v47 = vadd.f32 %v2178_v11, %v1012_v44 }
  0xee   : > { %v1216_v49 = vmax.f32 %v1184_v47, 0.0 }
  0xef   : > { %v965_v52 = vpop.f32.mrf.mxu3 }
  0xf0   : > { %v1781_v50 = vpack.c.bf16 %v1216_v49, %v1215_v48  ;;  %v2236_v53 = vadd.f32 %v965_v52, %v2173_v6 }
  0xf1   : > { %v1014_v54 = vpop.f32.mrf.mxu2  ;;  %v838_v56 = vpop.f32.mrf.mxu0 }
  0xf2   : > { %1845 = vst [vmem:[%s2196_s27 + $0x18] sm:$0xff] %v1781_v50   ;;  %v927_v57 = vpop.f32.mrf.mxu1  ;;  %v1015_v58 = vadd.f32 %v1014_v54, %v926_v55 }
  0xf3   : > { %v928_v59 = vadd.f32 %v927_v57, %v838_v56 }
  0xf4   : > { %v1185_v62 = vadd.f32 %v2178_v11, %v1015_v58 }
  0xf6   : > { %v1217_v6 = vmax.f32 %v1185_v62, 0.0 }
  0xf7   : > { %v2239_v60 = vpop.f32.mrf.mxu3 }
  0xf9   : > { %v1016_v61 = vpop.f32.mrf.mxu2  ;;  %v841_v0 = vpop.f32.mrf.mxu0 }
  0xfa   : > { %v1017_v63 = vadd.f32 %v1016_v61, %v928_v59  ;;  %v930_v2 = vpop.f32.mrf.mxu1 }
  0xfb   : > { %v931_v10 = vadd.f32 %v930_v2, %v841_v0 }
  0xfc   : > { %v1186_v3 = vadd.f32 %v2178_v11, %v1017_v63 }
  0xfe   : > { %v1218_v4 = vmax.f32 %v1186_v3, 0.0 }
  0xff   : > { %v970_v7 = vpop.f32.mrf.mxu3 }
 0x100   : > { %v1786_v5 = vpack.c.bf16 %v1218_v4, %v1217_v6  ;;  %v2244_v8 = vadd.f32 %v970_v7, %v2198_v36 }
 0x101   : > { %v1019_v9 = vpop.f32.mrf.mxu2  ;;  %v843_v12 = vpop.f32.mrf.mxu0 }
 0x102   : > { %1846 = vst [vmem:[%s2196_s27 + $0x20] sm:$0xff] %v1786_v5   ;;  %v932_v13 = vpop.f32.mrf.mxu1  ;;  %v1020_v14 = vadd.f32 %v1019_v9, %v931_v10 }
 0x103   : > { %v933_v15 = vadd.f32 %v932_v13, %v843_v12  ;;  %v968_v13 = vadd.f32 %v2239_v60, %v2188_v22 }
 0x104   : > { %v1187_v19 = vadd.f32 %v2178_v11, %v1020_v14 }
 0x106   : > { %v1219_v36 = vmax.f32 %v1187_v19, 0.0 }
 0x107   : > { %v2247_v16 = vpop.f32.mrf.mxu3 }
 0x109   : > { %v1021_v17 = vpop.f32.mrf.mxu2  ;;  %v846_v21 = vpop.f32.mrf.mxu0 }
 0x10a   : > { %v1022_v20 = vadd.f32 %v1021_v17, %v933_v15  ;;  %v935_v24 = vpop.f32.mrf.mxu1 }
 0x10b   : > { %v936_v30 = vadd.f32 %v935_v24, %v846_v21 }
 0x10c   : > { %v1188_v25 = vadd.f32 %v2178_v11, %v1022_v20 }
 0x10e   : > { %v1220_v23 = vmax.f32 %v1188_v25, 0.0 }
 0x10f   : > { %v975_v27 = vpop.f32.mrf.mxu3 }
 0x110   : > { %v1791_v26 = vpack.c.bf16 %v1220_v23, %v1219_v36  ;;  %v2252_v28 = vadd.f32 %v975_v27, %v2213_v1 }
 0x111   : > { %v1024_v29 = vpop.f32.mrf.mxu2  ;;  %v848_v31 = vpop.f32.mrf.mxu0 }
 0x112   : > { %1847 = vst [vmem:[%s2196_s27 + $0x28] sm:$0xff] %v1791_v26   ;;  %v937_v32 = vpop.f32.mrf.mxu1  ;;  %v1025_v34 = vadd.f32 %v1024_v29, %v936_v30 }
 0x113   : > { %v938_v35 = vadd.f32 %v937_v32, %v848_v31 }
 0x114   : > { %v1189_v39 = vadd.f32 %v2178_v11, %v1025_v34 }
 0x116   : > { %v1221_v1 = vmax.f32 %v1189_v39, 0.0 }
 0x117   : > { %v2255_v37 = vpop.f32.mrf.mxu3 }
 0x119   : > { %v1026_v38 = vpop.f32.mrf.mxu2  ;;  %v851_v42 = vpop.f32.mrf.mxu0 }
 0x11a   : > { %v1027_v40 = vadd.f32 %v1026_v38, %v938_v35  ;;  %v940_v43 = vpop.f32.mrf.mxu1 }
 0x11b   : > { %v941_v50 = vadd.f32 %v940_v43, %v851_v42  ;;  %v973_v42 = vadd.f32 %v2247_v16, %v2209_v51 }
 0x11c   : > { %v1190_v44 = vadd.f32 %v2178_v11, %v1027_v40 }
 0x11e   : > { %v1222_v45 = vmax.f32 %v1190_v44, 0.0 }
 0x11f   : > { %v980_v47 = vpop.f32.mrf.mxu3 }
 0x120   : > { %v1796_v46 = vpack.c.bf16 %v1222_v45, %v1221_v1  ;;  %v2260_v48 = vadd.f32 %v980_v47, %v2228_v33 }
 0x121   : > { %v1029_v49 = vpop.f32.mrf.mxu2  ;;  %v853_v52 = vpop.f32.mrf.mxu0 }
 0x122   : > { %1848 = vst [vmem:[%s2196_s27 + $0x30] sm:$0xff] %v1796_v46   ;;  %v942_v54 = vpop.f32.mrf.mxu1  ;;  %v1030_v55 = vadd.f32 %v1029_v49, %v941_v50 }
 0x123   : > { %v943_v56 = vadd.f32 %v942_v54, %v853_v52 }
 0x124   : > { %v1191_v59 = vadd.f32 %v2178_v11, %v1030_v55 }
 0x126   : > { %v1223_v33 = vmax.f32 %v1191_v59, 0.0 }
 0x127   : > { %v2263_v57 = vpop.f32.mrf.mxu3 }
 0x129   : > { %v1031_v58 = vpop.f32.mrf.mxu2  ;;  %v856_v62 = vpop.f32.mrf.mxu0 }
 0x12a   : > { %v1032_v61 = vadd.f32 %v1031_v58, %v943_v56  ;;  %v945_v63 = vpop.f32.mrf.mxu1 }
 0x12b   : > { %v946_v5 = vadd.f32 %v945_v63, %v856_v62 }
 0x12c   : > { %v1192_v0 = vadd.f32 %v2178_v11, %v1032_v61 }
 0x12e   : > { %v1224_v2 = vmax.f32 %v1192_v0, 0.0 }
 0x12f   : > { %v1054_v6 = vpop.f32.mrf.mxu3 }
 0x130   : > { %v1801_v3 = vpack.c.bf16 %v1224_v2, %v1223_v33  ;;  %v1055_v10 = vadd.f32 %v1054_v6, %v2236_v53  ;;  %v978_v6 = vadd.f32 %v2255_v37, %v2224_v18 }
 0x131   : > { %v1034_v4 = vpop.f32.mrf.mxu2  ;;  %v858_v7 = vpop.f32.mrf.mxu0 }
 0x132   : > { %1849 = vst [vmem:[%s2196_s27 + $0x38] sm:$0xff] %v1801_v3   ;;  %v947_v9 = vpop.f32.mrf.mxu1  ;;  %v1035_v12 = vadd.f32 %v1034_v4, %v946_v5  ;;  %v1201_v17 = vadd.f32 %v2178_v11, %v1055_v10 }
 0x133   : > { %v948_v14 = vadd.f32 %v947_v9, %v858_v7 }
 0x134   : > { %v1193_v21 = vadd.f32 %v2178_v11, %v1035_v12  ;;  %v1233_v26 = vmax.f32 %v1201_v17, 0.0 }
 0x136   : > { %v1225_v22 = vmax.f32 %v1193_v21, 0.0 }
 0x137   : > { %v1056_v15 = vpop.f32.mrf.mxu3 }
 0x138   : > { %v1057_v20 = vadd.f32 %v1056_v15, %v968_v13 }
 0x139   : > { %v1036_v19 = vpop.f32.mrf.mxu2  ;;  %v861_v25 = vpop.f32.mrf.mxu0 }
 0x13a   : > { %v1037_v24 = vadd.f32 %v1036_v19, %v948_v14  ;;  %v1202_v36 = vadd.f32 %v2178_v11, %v1057_v20  ;;  %v950_v23 = vpop.f32.mrf.mxu1 }
 0x13b   : > { %v951_v34 = vadd.f32 %v950_v23, %v861_v25 }
 0x13c   : > { %v1194_v53 = vadd.f32 %v2178_v11, %v1037_v24  ;;  %v1234_v27 = vmax.f32 %v1202_v36, 0.0 }
 0x13e   : > { %v1226_v60 = vmax.f32 %v1194_v53, 0.0  ;;  %v1826_v29 = vpack.c.bf16 %v1234_v27, %v1233_v26 }
 0x13f   : > { %v1059_v31 = vpop.f32.mrf.mxu3 }
 0x140   : > { %v1806_v30 = vpack.c.bf16 %v1226_v60, %v1225_v22  ;;  %1854 = vst [vmem:[%s2196_s27 + $0x60] sm:$0xff] %v1826_v29   ;;  %v1060_v39 = vadd.f32 %v1059_v31, %v2244_v8  ;;  %v983_v60 = vadd.f32 %v2263_v57, %v2231_v41 }
 0x141   : > { %v1039_v32 = vpop.f32.mrf.mxu2  ;;  %v863_v35 = vpop.f32.mrf.mxu0 }
 0x142   : > { %1850 = vst [vmem:[%s2196_s27 + $0x40] sm:$0xff] %v1806_v30   ;;  %v952_v38 = vpop.f32.mrf.mxu1  ;;  %v1040_v40 = vadd.f32 %v1039_v32, %v951_v34  ;;  %v1203_v1 = vadd.f32 %v2178_v11, %v1060_v39 }
 0x143   : > { %v953_v43 = vadd.f32 %v952_v38, %v863_v35 }
 0x144   : > { %v1195_v47 = vadd.f32 %v2178_v11, %v1040_v40  ;;  %v1235_v55 = vmax.f32 %v1203_v1, 0.0 }
 0x146   : > { %v1227_v51 = vmax.f32 %v1195_v47, 0.0 }
 0x147   : > { %v1061_v44 = vpop.f32.mrf.mxu3 }
 0x148   : > { %v1062_v46 = vadd.f32 %v1061_v44, %v973_v42 }
 0x149   : > { %v1041_v45 = vpop.f32.mrf.mxu2  ;;  %v866_v50 = vpop.f32.mrf.mxu0 }
 0x14a   : > { %v1042_v49 = vadd.f32 %v1041_v45, %v953_v43  ;;  %v1204_v52 = vadd.f32 %v2178_v11, %v1062_v46  ;;  %v955_v54 = vpop.f32.mrf.mxu1 }
 0x14b   : > { %v956_v63 = vadd.f32 %v955_v54, %v866_v50 }
 0x14c   : > { %v1196_v8 = vadd.f32 %v2178_v11, %v1042_v49  ;;  %v1236_v56 = vmax.f32 %v1204_v52, 0.0 }
 0x14e   : > { %v1228_v16 = vmax.f32 %v1196_v8, 0.0  ;;  %v1831_v58 = vpack.c.bf16 %v1236_v56, %v1235_v55 }
 0x14f   : > { %v1064_v61 = vpop.f32.mrf.mxu3 }
 0x150   : > { %v1811_v59 = vpack.c.bf16 %v1228_v16, %v1227_v51  ;;  %1855 = vst [vmem:[%s2196_s27 + $0x68] sm:$0xff] %v1831_v58   ;;  %v1065_v2 = vadd.f32 %v1064_v61, %v2252_v28 }
 0x151   : > { %v1044_v62 = vpop.f32.mrf.mxu2  ;;  %v868_v0 = vpop.f32.mrf.mxu0 }
 0x152   : > { %1851 = vst [vmem:[%s2196_s27 + $0x48] sm:$0xff] %v1811_v59   ;;  %v957_v33 = vpop.f32.mrf.mxu1  ;;  %v1045_v3 = vadd.f32 %v1044_v62, %v956_v63  ;;  %v1205_v7 = vadd.f32 %v2178_v11, %v1065_v2 }
 0x153   : > { %v958_v4 = vadd.f32 %v957_v33, %v868_v0 }
 0x154   : > { %v1197_v12 = vadd.f32 %v2178_v11, %v1045_v3  ;;  %v1237_v19 = vmax.f32 %v1205_v7, 0.0 }
 0x156   : > { %v1229_v18 = vmax.f32 %v1197_v12, 0.0 }
 0x157   : > { %v1066_v5 = vpop.f32.mrf.mxu3 }
 0x158   : > { %v1067_v10 = vadd.f32 %v1066_v5, %v978_v6 }
 0x159   : > { %v1046_v9 = vpop.f32.mrf.mxu2  ;;  %v871_v15 = vpop.f32.mrf.mxu0 }
 0x15a   : > { %v1047_v13 = vadd.f32 %v1046_v9, %v958_v4  ;;  %v1206_v14 = vadd.f32 %v2178_v11, %v1067_v10  ;;  %v960_v17 = vpop.f32.mrf.mxu1 }
 0x15b   : > { %v961_v23 = vadd.f32 %v960_v17, %v871_v15 }
 0x15c   : > { %v1198_v28 = vadd.f32 %v2178_v11, %v1047_v13  ;;  %v1238_v20 = vmax.f32 %v1206_v14, 0.0 }
 0x15e   : > { %v1230_v37 = vmax.f32 %v1198_v28, 0.0  ;;  %v1836_v21 = vpack.c.bf16 %v1238_v20, %v1237_v19 }
 0x15f   : > { %v1069_v25 = vpop.f32.mrf.mxu3 }
 0x160   : > { %v1816_v24 = vpack.c.bf16 %v1230_v37, %v1229_v18  ;;  %1856 = vst [vmem:[%s2196_s27 + $0x70] sm:$0xff] %v1836_v21   ;;  %v1070_v53 = vadd.f32 %v1069_v25, %v2260_v48 }
 0x161   : > { %v1049_v36 = vpop.f32.mrf.mxu2  ;;  %v873_v26 = vpop.f32.mrf.mxu0 }
 0x162   : > { %1852 = vst [vmem:[%s2196_s27 + $0x50] sm:$0xff] %v1816_v24   ;;  %v962_v27 = vpop.f32.mrf.mxu1  ;;  %v1050_v22 = vadd.f32 %v1049_v36, %v961_v23  ;;  %v1207_v31 = vadd.f32 %v2178_v11, %v1070_v53 }
 0x163   : > { %v963_v29 = vadd.f32 %v962_v27, %v873_v26 }
 0x164   : > { %v1199_v35 = vadd.f32 %v2178_v11, %v1050_v22  ;;  %v1239_v40 = vmax.f32 %v1207_v31, 0.0 }
 0x166   : > { %v1231_v43 = vmax.f32 %v1199_v35, 0.0 }
 0x167   : > { %v1071_v30 = vpop.f32.mrf.mxu3 }
 0x168   : > { %v1072_v34 = vadd.f32 %v1071_v30, %v983_v60 }
 0x169   : > { %v1051_v32 = vpop.f32.mrf.mxu2 }
 0x16a   : > { %v1052_v38 = vadd.f32 %v1051_v32, %v963_v29  ;;  %v1208_v39 = vadd.f32 %v2178_v11, %v1072_v34 }
 0x16c   : > { %v1200_v48 = vadd.f32 %v2178_v11, %v1052_v38  ;;  %v1240_v42 = vmax.f32 %v1208_v39, 0.0 }
 0x16e   : > { %v1232_v44 = vmax.f32 %v1200_v48, 0.0  ;;  %v1841_v41 = vpack.c.bf16 %v1240_v42, %v1239_v40 }
 0x170   : > { %v1821_v57 = vpack.c.bf16 %v1232_v44, %v1231_v43  ;;  %1857 = vst [vmem:[%s2196_s27 + $0x78] sm:$0xff] %v1841_v41  }
 0x172   : > { %1853 = vst [vmem:[%s2196_s27 + $0x58] sm:$0xff] %v1821_v57  }
 0x173 PF: > { %s13_s14 = sadd.s32 1, %s1930_s14   ;;  %s2317_s12 = smov %s1926_s13 }
 0x174   : > { %p10_p5 = scmp.ge.s32.totalorder %s13_s14, 4   ;;  %s2318_s13 = smov %s2320_s15 }
 0x176   :  { %12 = sbr.rel (!%p10_p5) target bundleno = 2 (0x2), region = 73 }

// kernel: ds_hide_forward.15
= control target key start
LH: loop header
LB: loop body
LE: loop exit
PB: predicated region body
PF: predicated region fallthrough
CT: control target
= control target key end

     0   :  { %s1545_s12 = smov 0   ;;  %s1547_s13 = smov 0   ;;  %s1773_s0 = inlined_call_operand.vmem [shape: bf16[512,256], index: 0, kind: input, shape index: {}]   ;;  %s1774_s1 = inlined_call_operand.vmem [shape: bf16[256,128], index: 1, kind: input, shape index: {}]   ;;  %s1775_s2 = inlined_call_operand.vmem [shape: f32[1,128], index: 2, kind: input, shape index: {}]   ;;  %s1776_s3 = inlined_call_operand.vmem [shape: f32[512,128], index: 3, kind: output, shape index: {}]  }
   0x1   :  { %s1549_s14 = smov 0  }
   0x2 LB: > { %s25_s15 = sadd.s32 1, %s1519_s13  ;;  %p1147_p0 = scmp.ge.s32.totalorder %s1523_s14, 1  ;;  %s1523_s14 = sphi %s1549_s14, %s13_s14   ;;  %s1519_s13 = sphi %s1547_s13, %s1778_s13   ;;  %s1515_s12 = sphi %s1545_s12, %s1777_s12  }
   0x3   : > { %p27_p1 = scmp.ge.s32.totalorder %s25_s15, 2  ;;  %p169_p2 = scmp.lt.s32.totalorder %s1523_s14, 3 }
   0x5   : > { %s1780_s15 = smov (%p27_p1, %s25_s15), 0  ;;  %p170_p3 = pnand %p1147_p0, %p169_p2 }
   0x6   : > { %s1148_s28 = sshll.u32 (!%p170_p3), %s1515_s12, 5 }
   0x7   : > { %173 = sbr.rel (%p170_p3) target bundleno = 313 (0x139), region = 32  ;;  %p205_p4 = scmp.lt.s32.totalorder (!%p170_p3), %s1148_s28, 63 }
   0xc   : > { %v1387_v0 = vld [vmem:[%s1774_s1 + $0x38] sm:$0xff]  ;;  %v1386_v2 = vld [vmem:[%s1774_s1 + $0x30] sm:$0xff]  ;;  %v1385_v4 = vld [vmem:[%s1774_s1 + $0x28] sm:$0xff]  ;;  %s1782_s28 = smov (!%p205_p4, %s1148_s28), 63 }
   0xd   : > { %v1395_v1 = vld [vmem:[%s1774_s1 + $0x78] sm:$0xff]  ;;  %615 = vmatpush.bf16.msra.mxu0 %v1387_v0  ;;  %1396 = vmatpush.bf16.msra.mxu2 %v1387_v0  ;;  %v1394_v3 = vld [vmem:[%s1774_s1 + $0x70] sm:$0xff]  ;;  %v1393_v5 = vld [vmem:[%s1774_s1 + $0x68] sm:$0xff]  ;;  %s1347_s17 = sshll.u32 %s1782_s28, 3 }
   0xe   : > { %704 = vmatpush.bf16.msra.mxu1 %v1395_v1  ;;  %1404 = vmatpush.bf16.msra.mxu3 %v1395_v1  ;;  %v1384_v6 = vld [vmem:[%s1774_s1 + $0x20] sm:$0xff]  ;;  %v1383_v8 = vld [vmem:[%s1774_s1 + $0x18] sm:$0xff]  ;;  %v1382_v10 = vld [vmem:[%s1774_s1 + $0x10] sm:$0xff]  ;;  %s1613_s22 = scalar_lea.vmem %s1773_s0, %s1347_s17  ;;  %s1701_s7 = scalar_lea.vmem %s1776_s3, %s1347_s17 }
   0xf   : > { %v1392_v7 = vld [vmem:[%s1774_s1 + $0x60] sm:$0xff]  ;;  %v1391_v9 = vld [vmem:[%s1774_s1 + $0x58] sm:$0xff]  ;;  %v1390_v11 = vld [vmem:[%s1774_s1 + $0x50] sm:$0xff] }
  0x10   : > { %v1381_v12 = vld [vmem:[%s1774_s1 + $0x8] sm:$0xff]  ;;  %v1380_v14 = vld [vmem:[%s1774_s1] sm:$0xff]  ;;  %v1163_v28 = vld [vmem:[%s1613_s22 + $0x10] sm:$0xf] }
  0x11   : > { %616 = vmatpush.bf16.msra.mxu0 %v1386_v2  ;;  %1397 = vmatpush.bf16.msra.mxu2 %v1386_v2  ;;  %v1389_v13 = vld [vmem:[%s1774_s1 + $0x48] sm:$0xff]  ;;  %v1388_v15 = vld [vmem:[%s1774_s1 + $0x40] sm:$0xff]  ;;  %v1351_v29 = vld [vmem:[%s1613_s22 + $0x14] sm:$0xf0] }
  0x12   : > { %705 = vmatpush.bf16.msra.mxu1 %v1394_v3  ;;  %1405 = vmatpush.bf16.msra.mxu3 %v1394_v3  ;;  %v1155_v16 = vld [vmem:[%s1613_s22] sm:$0xf]  ;;  %v1349_v17 = vld [vmem:[%s1613_s22 + $0x4] sm:$0xf0]  ;;  %v1348_v20 = vld [vmem:[%s1613_s22 + $0x4] sm:$0xf]  ;;  %v1164_v36 = vor.u32 %v1351_v29, %v1163_v28 }
  0x13   : > { %v1219_v18 = vld [vmem:[%s1613_s22 + $0x80] sm:$0xf]  ;;  %v1365_v19 = vld [vmem:[%s1613_s22 + $0x84] sm:$0xf0]  ;;  %v1157_v21 = vld [vmem:[%s1613_s22 + $0x8] sm:$0xf0]  ;;  %v1156_v24 = vor.u32 %v1349_v17, %v1155_v16 }
  0x14   : > { %v1364_v22 = vld [vmem:[%s1613_s22 + $0x84] sm:$0xf]  ;;  %v1221_v23 = vld [vmem:[%s1613_s22 + $0x88] sm:$0xf0]  ;;  %v1220_v25 = vor.u32 %v1365_v19, %v1219_v18  ;;  %v1160_v26 = vor.u32 %v1348_v20, %v1157_v21  ;;  %v1227_v30 = vld [vmem:[%s1613_s22 + $0x90] sm:$0xf] }
  0x15   : > { %617 = vmatpush.bf16.msra.mxu0 %v1385_v4  ;;  %1398 = vmatpush.bf16.msra.mxu2 %v1385_v4  ;;  %v1224_v27 = vor.u32 %v1364_v22, %v1221_v23  ;;  %v1367_v31 = vld [vmem:[%s1613_s22 + $0x94] sm:$0xf0]  ;;  %v1350_v32 = vld [vmem:[%s1613_s22 + $0x14] sm:$0xf]  ;;  %v1165_v33 = vld [vmem:[%s1613_s22 + $0x18] sm:$0xf0] }
  0x16   : > { %706 = vmatpush.bf16.msra.mxu1 %v1393_v5  ;;  %1406 = vmatpush.bf16.msra.mxu3 %v1393_v5  ;;  %v1366_v34 = vld [vmem:[%s1613_s22 + $0x94] sm:$0xf]  ;;  %v1229_v35 = vld [vmem:[%s1613_s22 + $0x98] sm:$0xf0]  ;;  %v1228_v37 = vor.u32 %v1367_v31, %v1227_v30  ;;  %v1168_v38 = vor.u32 %v1350_v32, %v1165_v33  ;;  %v1171_v40 = vld [vmem:[%s1613_s22 + $0x20] sm:$0xf] }
  0x17   : > { %v1232_v39 = vor.u32 %v1366_v34, %v1229_v35  ;;  %v1353_v41 = vld [vmem:[%s1613_s22 + $0x24] sm:$0xf0]  ;;  %v1235_v42 = vld [vmem:[%s1613_s22 + $0xa0] sm:$0xf]  ;;  %v1352_v44 = vld [vmem:[%s1613_s22 + $0x24] sm:$0xf] }
  0x18   : > { %v1369_v43 = vld [vmem:[%s1613_s22 + $0xa4] sm:$0xf0]  ;;  %v1173_v45 = vld [vmem:[%s1613_s22 + $0x28] sm:$0xf0]  ;;  %v1368_v46 = vld [vmem:[%s1613_s22 + $0xa4] sm:$0xf]  ;;  %v1172_v48 = vor.u32 %v1353_v41, %v1171_v40 }
  0x19   : > { %618 = vmatpush.bf16.msra.mxu0 %v1384_v6  ;;  %1399 = vmatpush.bf16.msra.mxu2 %v1384_v6  ;;  %v1237_v47 = vld [vmem:[%s1613_s22 + $0xa8] sm:$0xf0]  ;;  %v1236_v49 = vor.u32 %v1369_v43, %v1235_v42  ;;  %v1176_v50 = vor.u32 %v1352_v44, %v1173_v45  ;;  %v1179_v52 = vld [vmem:[%s1613_s22 + $0x30] sm:$0xf]  ;;  %v1355_v53 = vld [vmem:[%s1613_s22 + $0x34] sm:$0xf0] }
  0x1a   : > { %707 = vmatpush.bf16.msra.mxu1 %v1392_v7  ;;  %1407 = vmatpush.bf16.msra.mxu3 %v1392_v7  ;;  %v1240_v51 = vor.u32 %v1368_v46, %v1237_v47  ;;  %v1243_v54 = vld [vmem:[%s1613_s22 + $0xb0] sm:$0xf]  ;;  %v1371_v55 = vld [vmem:[%s1613_s22 + $0xb4] sm:$0xf0]  ;;  %v1354_v56 = vld [vmem:[%s1613_s22 + $0x34] sm:$0xf]  ;;  %v1180_v60 = vor.u32 %v1355_v53, %v1179_v52 }
  0x1b   : > { %v1181_v57 = vld [vmem:[%s1613_s22 + $0x38] sm:$0xf0]  ;;  %v1370_v58 = vld [vmem:[%s1613_s22 + $0xb4] sm:$0xf]  ;;  %v1244_v61 = vor.u32 %v1371_v55, %v1243_v54  ;;  %v1187_v0 = vld [vmem:[%s1613_s22 + $0x40] sm:$0xf] }
  0x1c   : > { %v1245_v59 = vld [vmem:[%s1613_s22 + $0xb8] sm:$0xf0]  ;;  %v1184_v62 = vor.u32 %v1354_v56, %v1181_v57  ;;  %v1357_v1 = vld [vmem:[%s1613_s22 + $0x44] sm:$0xf0]  ;;  %v1251_v2 = vld [vmem:[%s1613_s22 + $0xc0] sm:$0xf] }
  0x1d   : > { %619 = vmatpush.bf16.msra.mxu0 %v1383_v8  ;;  %1400 = vmatpush.bf16.msra.mxu2 %v1383_v8  ;;  %v1248_v63 = vor.u32 %v1370_v58, %v1245_v59  ;;  %v1373_v3 = vld [vmem:[%s1613_s22 + $0xc4] sm:$0xf0]  ;;  %v1356_v4 = vld [vmem:[%s1613_s22 + $0x44] sm:$0xf]  ;;  %v1189_v5 = vld [vmem:[%s1613_s22 + $0x48] sm:$0xf0]  ;;  %v1188_v8 = vor.u32 %v1357_v1, %v1187_v0 }
  0x1e   : > { %708 = vmatpush.bf16.msra.mxu1 %v1391_v9  ;;  %1408 = vmatpush.bf16.msra.mxu3 %v1391_v9  ;;  %v1372_v6 = vld [vmem:[%s1613_s22 + $0xc4] sm:$0xf]  ;;  %v1253_v7 = vld [vmem:[%s1613_s22 + $0xc8] sm:$0xf0]  ;;  %v1252_v9 = vor.u32 %v1373_v3, %v1251_v2  ;;  %v1358_v16 = vld [vmem:[%s1613_s22 + $0x54] sm:$0xf] }
  0x1f   : > { %v1197_v17 = vld [vmem:[%s1613_s22 + $0x58] sm:$0xf0]  ;;  %v1374_v18 = vld [vmem:[%s1613_s22 + $0xd4] sm:$0xf]  ;;  %v1360_v28 = vld [vmem:[%s1613_s22 + $0x64] sm:$0xf] }
  0x20   : > { %v1261_v19 = vld [vmem:[%s1613_s22 + $0xd8] sm:$0xf0]  ;;  %v1200_v22 = vor.u32 %v1358_v16, %v1197_v17  ;;  %v1205_v29 = vld [vmem:[%s1613_s22 + $0x68] sm:$0xf0]  ;;  %v1376_v30 = vld [vmem:[%s1613_s22 + $0xe4] sm:$0xf] }
  0x21   : > { %620 = vmatpush.bf16.msra.mxu0 %v1382_v10  ;;  %1401 = vmatpush.bf16.msra.mxu2 %v1382_v10  ;;  %v1192_v10 = vor.u32 %v1356_v4, %v1189_v5  ;;  %v1264_v23 = vor.u32 %v1374_v18, %v1261_v19  ;;  %v1269_v31 = vld [vmem:[%s1613_s22 + $0xe8] sm:$0xf0]  ;;  %v1208_v34 = vor.u32 %v1360_v28, %v1205_v29  ;;  %v1362_v40 = vld [vmem:[%s1613_s22 + $0x74] sm:$0xf]  ;;  %v1213_v41 = vld [vmem:[%s1613_s22 + $0x78] sm:$0xf0] }
  0x22   : > { %709 = vmatpush.bf16.msra.mxu1 %v1390_v11  ;;  %1409 = vmatpush.bf16.msra.mxu3 %v1390_v11  ;;  %v1256_v11 = vor.u32 %v1372_v6, %v1253_v7  ;;  %v1272_v35 = vor.u32 %v1376_v30, %v1269_v31  ;;  %v1378_v42 = vld [vmem:[%s1613_s22 + $0xf4] sm:$0xf]  ;;  %v1277_v43 = vld [vmem:[%s1613_s22 + $0xf8] sm:$0xf0]  ;;  %v1216_v46 = vor.u32 %v1362_v40, %v1213_v41 }
  0x23   : > { %v1280_v47 = vor.u32 %v1378_v42, %v1277_v43 }
  0x25   : > { %621 = vmatpush.bf16.msra.mxu0 %v1381_v12  ;;  %1402 = vmatpush.bf16.msra.mxu2 %v1381_v12  ;;  %v1195_v12 = vld [vmem:[%s1613_s22 + $0x50] sm:$0xf] }
  0x26   : > { %710 = vmatpush.bf16.msra.mxu1 %v1389_v13  ;;  %1410 = vmatpush.bf16.msra.mxu3 %v1389_v13  ;;  %v1359_v13 = vld [vmem:[%s1613_s22 + $0x54] sm:$0xf0] }
  0x27   : > { %v1196_v20 = vor.u32 %v1359_v13, %v1195_v12 }
  0x29   : > { %622 = vmatpush.bf16.msra.mxu0 %v1380_v14  ;;  %1403 = vmatpush.bf16.msra.mxu2 %v1380_v14  ;;  %v1259_v14 = vld [vmem:[%s1613_s22 + $0xd0] sm:$0xf] }
  0x2a   : > { %711 = vmatpush.bf16.msra.mxu1 %v1388_v15  ;;  %1411 = vmatpush.bf16.msra.mxu3 %v1388_v15  ;;  %v1375_v15 = vld [vmem:[%s1613_s22 + $0xd4] sm:$0xf0] }
  0x2b   : > { %v1260_v21 = vor.u32 %v1375_v15, %v1259_v14 }
  0x2c   : > { %623 = vmatmul.bf16.vlgmr.msra.gmra.mxu0 %v1156_v24  ;;  %663 = vmatmul.bf16.vlgmr.msra.gmra.mxu2 %v1220_v25  ;;  %v1203_v24 = vld [vmem:[%s1613_s22 + $0x60] sm:$0xf]  ;;  %v1361_v25 = vld [vmem:[%s1613_s22 + $0x64] sm:$0xf0] }
  0x2d   : > { %712 = vmatmul.bf16.vlgmr.msra.gmra.mxu1 %v1160_v26  ;;  %752 = vmatmul.bf16.vlgmr.msra.gmra.mxu3 %v1224_v27  ;;  %v1267_v26 = vld [vmem:[%s1613_s22 + $0xe0] sm:$0xf]  ;;  %v1377_v27 = vld [vmem:[%s1613_s22 + $0xe4] sm:$0xf0]  ;;  %v1204_v32 = vor.u32 %v1361_v25, %v1203_v24 }
  0x2e   : > { %v1268_v33 = vor.u32 %v1377_v27, %v1267_v26 }
  0x3c   : > { %628 = vmatmul.bf16.gmra.mxu0 %v1164_v36  ;;  %668 = vmatmul.bf16.gmra.mxu2 %v1228_v37  ;;  %v1211_v36 = vld [vmem:[%s1613_s22 + $0x70] sm:$0xf]  ;;  %v1363_v37 = vld [vmem:[%s1613_s22 + $0x74] sm:$0xf0] }
  0x3d   : > { %717 = vmatmul.bf16.gmra.mxu1 %v1168_v38  ;;  %757 = vmatmul.bf16.gmra.mxu3 %v1232_v39  ;;  %v1275_v38 = vld [vmem:[%s1613_s22 + $0xf0] sm:$0xf]  ;;  %v1379_v39 = vld [vmem:[%s1613_s22 + $0xf4] sm:$0xf0]  ;;  %v1212_v44 = vor.u32 %v1363_v37, %v1211_v36 }
  0x3e   : > { %v1276_v45 = vor.u32 %v1379_v39, %v1275_v38 }
  0x4c   : > { %633 = vmatmul.bf16.gmra.mxu0 %v1172_v48  ;;  %673 = vmatmul.bf16.gmra.mxu2 %v1236_v49  ;;  %v1691_v49 = vld [vmem:[%s1775_s2] ss:$0 sm:$0xff] }
  0x4d   : > { %722 = vmatmul.bf16.gmra.mxu1 %v1176_v50  ;;  %762 = vmatmul.bf16.gmra.mxu3 %v1240_v51 }
  0x5c   : > { %638 = vmatmul.bf16.gmra.mxu0 %v1180_v60  ;;  %678 = vmatmul.bf16.gmra.mxu2 %v1244_v61 }
  0x5d   : > { %727 = vmatmul.bf16.gmra.mxu1 %v1184_v62  ;;  %767 = vmatmul.bf16.gmra.mxu3 %v1248_v63 }
  0x6c   : > { %643 = vmatmul.bf16.gmra.mxu0 %v1188_v8  ;;  %683 = vmatmul.bf16.gmra.mxu2 %v1252_v9 }
  0x6d   : > { %732 = vmatmul.bf16.gmra.mxu1 %v1192_v10  ;;  %772 = vmatmul.bf16.gmra.mxu3 %v1256_v11 }
  0x7c   : > { %648 = vmatmul.bf16.gmra.mxu0 %v1196_v20  ;;  %688 = vmatmul.bf16.gmra.mxu2 %v1260_v21 }
  0x7d   : > { %737 = vmatmul.bf16.gmra.mxu1 %v1200_v22  ;;  %777 = vmatmul.bf16.gmra.mxu3 %v1264_v23 }
  0x8c   : > { %653 = vmatmul.bf16.gmra.mxu0 %v1204_v32  ;;  %693 = vmatmul.bf16.gmra.mxu2 %v1268_v33 }
  0x8d   : > { %742 = vmatmul.bf16.gmra.mxu1 %v1208_v34  ;;  %782 = vmatmul.bf16.gmra.mxu3 %v1272_v35 }
  0x9c   : > { %658 = vmatmul.bf16.gmra.mxu0 %v1212_v44  ;;  %698 = vmatmul.bf16.gmra.mxu2 %v1276_v45 }
  0x9d   : > { %747 = vmatmul.bf16.gmra.mxu1 %v1216_v46  ;;  %787 = vmatmul.bf16.gmra.mxu3 %v1280_v47 }
  0xa9   : > { %v624_v48 = vpop.f32.mrf.mxu0 }
  0xaa   : > { %v713_v50 = vpop.f32.mrf.mxu1 }
  0xab   : > { %v714_v51 = vadd.f32 %v713_v50, %v624_v48 }
  0xad   : > { %v896_v52 = vadd.f32 %v1691_v49, %v714_v51 }
  0xaf   : > { %1437 = vtanh.f32 %v896_v52  ;;  %v664_v53 = vpop.f32.mrf.mxu2 }
  0xb0   : > { %v753_v54 = vpop.f32.mrf.mxu3 }
  0xb1   : > { %v754_v55 = vadd.f32 %v753_v54, %v664_v53  ;;  %v626_v56 = vpop.f32.mrf.mxu0 }
  0xb2   : > { %v715_v57 = vpop.f32.mrf.mxu1 }
  0xb3   : > { %v912_v58 = vadd.f32 %v1691_v49, %v754_v55  ;;  %v716_v59 = vadd.f32 %v715_v57, %v626_v56 }
  0xb5   : > { %v1438_v60 = vpop.eup %1437  ;;  %1439 = vtanh.f32 %v912_v58  ;;  %v897_v61 = vadd.f32 %v1691_v49, %v716_v59 }
  0xb6   : > { %v960_v62 = vmul.f32 0.5, %v1438_v60 }
  0xb7   : > { %1441 = vtanh.f32 %v897_v61  ;;  %v666_v63 = vpop.f32.mrf.mxu2 }
  0xb8   : > { %v992_v0 = vadd.f32 0.5, %v960_v62  ;;  %v755_v1 = vpop.f32.mrf.mxu3 }
  0xb9   : > { %v756_v2 = vadd.f32 %v755_v1, %v666_v63  ;;  %v629_v3 = vpop.f32.mrf.mxu0 }
  0xba   : > { %1024 = vst [vmem:[%s1701_s7] sm:$0xff] %v992_v0  ;;  %v718_v4 = vpop.f32.mrf.mxu1 }
  0xbb   : > { %v1440_v5 = vpop.eup %1439  ;;  %v913_v6 = vadd.f32 %v1691_v49, %v756_v2  ;;  %v719_v7 = vadd.f32 %v718_v4, %v629_v3 }
  0xbc   : > { %v976_v8 = vmul.f32 0.5, %v1440_v5 }
  0xbd   : > { %v1442_v9 = vpop.eup %1441  ;;  %1443 = vtanh.f32 %v913_v6  ;;  %v898_v10 = vadd.f32 %v1691_v49, %v719_v7 }
  0xbe   : > { %v1008_v11 = vadd.f32 0.5, %v976_v8  ;;  %v961_v12 = vmul.f32 0.5, %v1442_v9 }
  0xbf   : > { %1445 = vtanh.f32 %v898_v10  ;;  %v669_v13 = vpop.f32.mrf.mxu2 }
  0xc0   : > { %1040 = vst [vmem:[%s1701_s7 + $0x80] sm:$0xff] %v1008_v11  ;;  %v993_v14 = vadd.f32 0.5, %v961_v12  ;;  %v758_v15 = vpop.f32.mrf.mxu3 }
  0xc1   : > { %v759_v16 = vadd.f32 %v758_v15, %v669_v13  ;;  %v631_v17 = vpop.f32.mrf.mxu0 }
  0xc2   : > { %1025 = vst [vmem:[%s1701_s7 + $0x8] sm:$0xff] %v993_v14  ;;  %v720_v18 = vpop.f32.mrf.mxu1 }
  0xc3   : > { %v1444_v19 = vpop.eup %1443  ;;  %v914_v20 = vadd.f32 %v1691_v49, %v759_v16  ;;  %v721_v21 = vadd.f32 %v720_v18, %v631_v17 }
  0xc4   : > { %v977_v22 = vmul.f32 0.5, %v1444_v19 }
  0xc5   : > { %v1446_v23 = vpop.eup %1445  ;;  %1447 = vtanh.f32 %v914_v20  ;;  %v899_v24 = vadd.f32 %v1691_v49, %v721_v21 }
  0xc6   : > { %v1009_v25 = vadd.f32 0.5, %v977_v22  ;;  %v962_v26 = vmul.f32 0.5, %v1446_v23 }
  0xc7   : > { %1449 = vtanh.f32 %v899_v24  ;;  %v671_v27 = vpop.f32.mrf.mxu2 }
  0xc8   : > { %1041 = vst [vmem:[%s1701_s7 + $0x88] sm:$0xff] %v1009_v25  ;;  %v994_v28 = vadd.f32 0.5, %v962_v26  ;;  %v760_v29 = vpop.f32.mrf.mxu3 }
  0xc9   : > { %v761_v30 = vadd.f32 %v760_v29, %v671_v27  ;;  %v634_v31 = vpop.f32.mrf.mxu0 }
  0xca   : > { %1026 = vst [vmem:[%s1701_s7 + $0x10] sm:$0xff] %v994_v28  ;;  %v723_v32 = vpop.f32.mrf.mxu1 }
  0xcb   : > { %v1448_v33 = vpop.eup %1447  ;;  %v915_v34 = vadd.f32 %v1691_v49, %v761_v30  ;;  %v724_v35 = vadd.f32 %v723_v32, %v634_v31 }
  0xcc   : > { %v978_v36 = vmul.f32 0.5, %v1448_v33 }
  0xcd   : > { %v1450_v37 = vpop.eup %1449  ;;  %1451 = vtanh.f32 %v915_v34  ;;  %v900_v38 = vadd.f32 %v1691_v49, %v724_v35 }
  0xce   : > { %v1010_v39 = vadd.f32 0.5, %v978_v36  ;;  %v963_v40 = vmul.f32 0.5, %v1450_v37 }
  0xcf   : > { %1453 = vtanh.f32 %v900_v38  ;;  %v674_v41 = vpop.f32.mrf.mxu2 }
  0xd0   : > { %1042 = vst [vmem:[%s1701_s7 + $0x90] sm:$0xff] %v1010_v39  ;;  %v995_v42 = vadd.f32 0.5, %v963_v40  ;;  %v763_v43 = vpop.f32.mrf.mxu3 }
  0xd1   : > { %v764_v44 = vadd.f32 %v763_v43, %v674_v41  ;;  %v636_v45 = vpop.f32.mrf.mxu0 }
  0xd2   : > { %1027 = vst [vmem:[%s1701_s7 + $0x18] sm:$0xff] %v995_v42  ;;  %v725_v46 = vpop.f32.mrf.mxu1 }
  0xd3   : > { %v1452_v47 = vpop.eup %1451  ;;  %v916_v48 = vadd.f32 %v1691_v49, %v764_v44  ;;  %v726_v50 = vadd.f32 %v725_v46, %v636_v45 }
  0xd4   : > { %v979_v51 = vmul.f32 0.5, %v1452_v47 }
  0xd5   : > { %v1454_v52 = vpop.eup %1453  ;;  %1455 = vtanh.f32 %v916_v48  ;;  %v901_v53 = vadd.f32 %v1691_v49, %v726_v50 }
  0xd6   : > { %v1011_v54 = vadd.f32 0.5, %v979_v51  ;;  %v964_v55 = vmul.f32 0.5, %v1454_v52 }
  0xd7   : > { %1457 = vtanh.f32 %v901_v53  ;;  %v676_v56 = vpop.f32.mrf.mxu2 }
  0xd8   : > { %1043 = vst [vmem:[%s1701_s7 + $0x98] sm:$0xff] %v1011_v54  ;;  %v996_v57 = vadd.f32 0.5, %v964_v55  ;;  %v765_v58 = vpop.f32.mrf.mxu3 }
  0xd9   : > { %v766_v59 = vadd.f32 %v765_v58, %v676_v56  ;;  %v639_v60 = vpop.f32.mrf.mxu0 }
  0xda   : > { %1028 = vst [vmem:[%s1701_s7 + $0x20] sm:$0xff] %v996_v57  ;;  %v728_v61 = vpop.f32.mrf.mxu1 }
  0xdb   : > { %v1456_v62 = vpop.eup %1455  ;;  %v917_v63 = vadd.f32 %v1691_v49, %v766_v59  ;;  %v729_v0 = vadd.f32 %v728_v61, %v639_v60 }
  0xdc   : > { %v980_v1 = vmul.f32 0.5, %v1456_v62 }
  0xdd   : > { %v1458_v2 = vpop.eup %1457  ;;  %1459 = vtanh.f32 %v917_v63  ;;  %v902_v3 = vadd.f32 %v1691_v49, %v729_v0 }
  0xde   : > { %v1012_v4 = vadd.f32 0.5, %v980_v1  ;;  %v965_v5 = vmul.f32 0.5, %v1458_v2 }
  0xdf   : > { %1461 = vtanh.f32 %v902_v3  ;;  %v679_v6 = vpop.f32.mrf.mxu2 }
  0xe0   : > { %1044 = vst [vmem:[%s1701_s7 + $0xa0] sm:$0xff] %v1012_v4  ;;  %v997_v7 = vadd.f32 0.5, %v965_v5  ;;  %v768_v8 = vpop.f32.mrf.mxu3 }
  0xe1   : > { %v769_v9 = vadd.f32 %v768_v8, %v679_v6  ;;  %v641_v10 = vpop.f32.mrf.mxu0 }
  0xe2   : > { %1029 = vst [vmem:[%s1701_s7 + $0x28] sm:$0xff] %v997_v7  ;;  %v730_v11 = vpop.f32.mrf.mxu1 }
  0xe3   : > { %v1460_v12 = vpop.eup %1459  ;;  %v918_v13 = vadd.f32 %v1691_v49, %v769_v9  ;;  %v731_v14 = vadd.f32 %v730_v11, %v641_v10 }
  0xe4   : > { %v981_v15 = vmul.f32 0.5, %v1460_v12 }
  0xe5   : > { %v1462_v16 = vpop.eup %1461  ;;  %1463 = vtanh.f32 %v918_v13  ;;  %v903_v17 = vadd.f32 %v1691_v49, %v731_v14 }
  0xe6   : > { %v1013_v18 = vadd.f32 0.5, %v981_v15  ;;  %v966_v19 = vmul.f32 0.5, %v1462_v16 }
  0xe7   : > { %1465 = vtanh.f32 %v903_v17  ;;  %v681_v20 = vpop.f32.mrf.mxu2 }
  0xe8   : > { %1045 = vst [vmem:[%s1701_s7 + $0xa8] sm:$0xff] %v1013_v18  ;;  %v998_v21 = vadd.f32 0.5, %v966_v19  ;;  %v770_v22 = vpop.f32.mrf.mxu3 }
  0xe9   : > { %v771_v23 = vadd.f32 %v770_v22, %v681_v20  ;;  %v644_v24 = vpop.f32.mrf.mxu0 }
  0xea   : > { %1030 = vst [vmem:[%s1701_s7 + $0x30] sm:$0xff] %v998_v21  ;;  %v733_v25 = vpop.f32.mrf.mxu1 }
  0xeb   : > { %v1464_v26 = vpop.eup %1463  ;;  %v919_v27 = vadd.f32 %v1691_v49, %v771_v23  ;;  %v734_v28 = vadd.f32 %v733_v25, %v644_v24 }
  0xec   : > { %v982_v29 = vmul.f32 0.5, %v1464_v26 }
  0xed   : > { %v1466_v30 = vpop.eup %1465  ;;  %1467 = vtanh.f32 %v919_v27  ;;  %v904_v31 = vadd.f32 %v1691_v49, %v734_v28 }
  0xee   : > { %v1014_v32 = vadd.f32 0.5, %v982_v29  ;;  %v967_v33 = vmul.f32 0.5, %v1466_v30 }
  0xef   : > { %1469 = vtanh.f32 %v904_v31  ;;  %v684_v34 = vpop.f32.mrf.mxu2 }
  0xf0   : > { %1046 = vst [vmem:[%s1701_s7 + $0xb0] sm:$0xff] %v1014_v32  ;;  %v999_v35 = vadd.f32 0.5, %v967_v33  ;;  %v773_v36 = vpop.f32.mrf.mxu3 }
  0xf1   : > { %v774_v37 = vadd.f32 %v773_v36, %v684_v34  ;;  %v646_v38 = vpop.f32.mrf.mxu0 }
  0xf2   : > { %1031 = vst [vmem:[%s1701_s7 + $0x38] sm:$0xff] %v999_v35  ;;  %v735_v39 = vpop.f32.mrf.mxu1 }
  0xf3   : > { %v1468_v40 = vpop.eup %1467  ;;  %v920_v41 = vadd.f32 %v1691_v49, %v774_v37  ;;  %v736_v42 = vadd.f32 %v735_v39, %v646_v38 }
  0xf4   : > { %v983_v43 = vmul.f32 0.5, %v1468_v40 }
  0xf5   : > { %v1470_v44 = vpop.eup %1469  ;;  %1471 = vtanh.f32 %v920_v41  ;;  %v905_v45 = vadd.f32 %v1691_v49, %v736_v42 }
  0xf6   : > { %v1015_v46 = vadd.f32 0.5, %v983_v43  ;;  %v968_v47 = vmul.f32 0.5, %v1470_v44 }
  0xf7   : > { %1473 = vtanh.f32 %v905_v45  ;;  %v686_v48 = vpop.f32.mrf.mxu2 }
  0xf8   : > { %1047 = vst [vmem:[%s1701_s7 + $0xb8] sm:$0xff] %v1015_v46  ;;  %v1000_v50 = vadd.f32 0.5, %v968_v47  ;;  %v775_v51 = vpop.f32.mrf.mxu3 }
  0xf9   : > { %v776_v52 = vadd.f32 %v775_v51, %v686_v48  ;;  %v649_v53 = vpop.f32.mrf.mxu0 }
  0xfa   : > { %1032 = vst [vmem:[%s1701_s7 + $0x40] sm:$0xff] %v1000_v50  ;;  %v738_v54 = vpop.f32.mrf.mxu1 }
  0xfb   : > { %v1472_v55 = vpop.eup %1471  ;;  %v921_v56 = vadd.f32 %v1691_v49, %v776_v52  ;;  %v739_v57 = vadd.f32 %v738_v54, %v649_v53 }
  0xfc   : > { %v984_v58 = vmul.f32 0.5, %v1472_v55 }
  0xfd   : > { %v1474_v59 = vpop.eup %1473  ;;  %1475 = vtanh.f32 %v921_v56  ;;  %v906_v60 = vadd.f32 %v1691_v49, %v739_v57 }
  0xfe   : > { %v1016_v61 = vadd.f32 0.5, %v984_v58  ;;  %v969_v62 = vmul.f32 0.5, %v1474_v59 }
  0xff   : > { %1477 = vtanh.f32 %v906_v60  ;;  %v689_v63 = vpop.f32.mrf.mxu2 }
 0x100   : > { %1048 = vst [vmem:[%s1701_s7 + $0xc0] sm:$0xff] %v1016_v61  ;;  %v1001_v0 = vadd.f32 0.5, %v969_v62  ;;  %v778_v1 = vpop.f32.mrf.mxu3 }
 0x101   : > { %v779_v2 = vadd.f32 %v778_v1, %v689_v63  ;;  %v651_v3 = vpop.f32.mrf.mxu0 }
 0x102   : > { %1033 = vst [vmem:[%s1701_s7 + $0x48] sm:$0xff] %v1001_v0  ;;  %v740_v4 = vpop.f32.mrf.mxu1 }
 0x103   : > { %v1476_v5 = vpop.eup %1475  ;;  %v922_v6 = vadd.f32 %v1691_v49, %v779_v2  ;;  %v741_v7 = vadd.f32 %v740_v4, %v651_v3 }
 0x104   : > { %v985_v8 = vmul.f32 0.5, %v1476_v5 }
 0x105   : > { %v1478_v9 = vpop.eup %1477  ;;  %1479 = vtanh.f32 %v922_v6  ;;  %v907_v10 = vadd.f32 %v1691_v49, %v741_v7 }
 0x106   : > { %v1017_v11 = vadd.f32 0.5, %v985_v8  ;;  %v970_v12 = vmul.f32 0.5, %v1478_v9 }
 0x107   : > { %1481 = vtanh.f32 %v907_v10  ;;  %v691_v13 = vpop.f32.mrf.mxu2 }
 0x108   : > { %1049 = vst [vmem:[%s1701_s7 + $0xc8] sm:$0xff] %v1017_v11  ;;  %v1002_v14 = vadd.f32 0.5, %v970_v12  ;;  %v780_v15 = vpop.f32.mrf.mxu3 }
 0x109   : > { %v781_v16 = vadd.f32 %v780_v15, %v691_v13  ;;  %v654_v17 = vpop.f32.mrf.mxu0 }
 0x10a   : > { %1034 = vst [vmem:[%s1701_s7 + $0x50] sm:$0xff] %v1002_v14  ;;  %v743_v18 = vpop.f32.mrf.mxu1 }
 0x10b   : > { %v1480_v19 = vpop.eup %1479  ;;  %v923_v20 = vadd.f32 %v1691_v49, %v781_v16  ;;  %v744_v21 = vadd.f32 %v743_v18, %v654_v17 }
 0x10c   : > { %v986_v22 = vmul.f32 0.5, %v1480_v19 }
 0x10d   : > { %v1482_v23 = vpop.eup %1481  ;;  %1483 = vtanh.f32 %v923_v20  ;;  %v908_v24 = vadd.f32 %v1691_v49, %v744_v21 }
 0x10e   : > { %v1018_v25 = vadd.f32 0.5, %v986_v22  ;;  %v971_v26 = vmul.f32 0.5, %v1482_v23 }
 0x10f   : > { %1485 = vtanh.f32 %v908_v24  ;;  %v694_v27 = vpop.f32.mrf.mxu2 }
 0x110   : > { %1050 = vst [vmem:[%s1701_s7 + $0xd0] sm:$0xff] %v1018_v25  ;;  %v1003_v28 = vadd.f32 0.5, %v971_v26  ;;  %v783_v29 = vpop.f32.mrf.mxu3 }
 0x111   : > { %v784_v30 = vadd.f32 %v783_v29, %v694_v27  ;;  %v656_v31 = vpop.f32.mrf.mxu0 }
 0x112   : > { %1035 = vst [vmem:[%s1701_s7 + $0x58] sm:$0xff] %v1003_v28  ;;  %v745_v32 = vpop.f32.mrf.mxu1 }
 0x113   : > { %v1484_v33 = vpop.eup %1483  ;;  %v924_v34 = vadd.f32 %v1691_v49, %v784_v30  ;;  %v746_v35 = vadd.f32 %v745_v32, %v656_v31 }
 0x114   : > { %v987_v36 = vmul.f32 0.5, %v1484_v33 }
 0x115   : > { %v1486_v37 = vpop.eup %1485  ;;  %1487 = vtanh.f32 %v924_v34  ;;  %v909_v38 = vadd.f32 %v1691_v49, %v746_v35 }
 0x116   : > { %v1019_v39 = vadd.f32 0.5, %v987_v36  ;;  %v972_v40 = vmul.f32 0.5, %v1486_v37 }
 0x117   : > { %1489 = vtanh.f32 %v909_v38  ;;  %v696_v41 = vpop.f32.mrf.mxu2 }
 0x118   : > { %1051 = vst [vmem:[%s1701_s7 + $0xd8] sm:$0xff] %v1019_v39  ;;  %v1004_v42 = vadd.f32 0.5, %v972_v40  ;;  %v785_v43 = vpop.f32.mrf.mxu3 }
 0x119   : > { %v786_v44 = vadd.f32 %v785_v43, %v696_v41  ;;  %v659_v45 = vpop.f32.mrf.mxu0 }
 0x11a   : > { %1036 = vst [vmem:[%s1701_s7 + $0x60] sm:$0xff] %v1004_v42  ;;  %v748_v46 = vpop.f32.mrf.mxu1 }
 0x11b   : > { %v1488_v47 = vpop.eup %1487  ;;  %v925_v48 = vadd.f32 %v1691_v49, %v786_v44  ;;  %v749_v50 = vadd.f32 %v748_v46, %v659_v45 }
 0x11c   : > { %v988_v51 = vmul.f32 0.5, %v1488_v47 }
 0x11d   : > { %v1490_v52 = vpop.eup %1489  ;;  %1491 = vtanh.f32 %v925_v48  ;;  %v910_v53 = vadd.f32 %v1691_v49, %v749_v50 }
 0x11e   : > { %v1020_v54 = vadd.f32 0.5, %v988_v51  ;;  %v973_v55 = vmul.f32 0.5, %v1490_v52 }
 0x11f   : > { %1493 = vtanh.f32 %v910_v53  ;;  %v699_v56 = vpop.f32.mrf.mxu2 }
 0x120   : > { %1052 = vst [vmem:[%s1701_s7 + $0xe0] sm:$0xff] %v1020_v54  ;;  %v1005_v57 = vadd.f32 0.5, %v973_v55  ;;  %v788_v58 = vpop.f32.mrf.mxu3 }
 0x121   : > { %v789_v59 = vadd.f32 %v788_v58, %v699_v56  ;;  %v661_v60 = vpop.f32.mrf.mxu0 }
 0x122   : > { %1037 = vst [vmem:[%s1701_s7 + $0x68] sm:$0xff] %v1005_v57  ;;  %v750_v61 = vpop.f32.mrf.mxu1 }
 0x123   : > { %v1492_v62 = vpop.eup %1491  ;;  %v926_v63 = vadd.f32 %v1691_v49, %v789_v59  ;;  %v751_v0 = vadd.f32 %v750_v61, %v661_v60 }
 0x124   : > { %v989_v1 = vmul.f32 0.5, %v1492_v62 }
 0x125   : > { %v1494_v2 = vpop.eup %1493  ;;  %1495 = vtanh.f32 %v926_v63  ;;  %v911_v3 = vadd.f32 %v1691_v49, %v751_v0 }
 0x126   : > { %v1021_v4 = vadd.f32 0.5, %v989_v1  ;;  %v974_v5 = vmul.f32 0.5, %v1494_v2 }
 0x127   : > { %1497 = vtanh.f32 %v911_v3  ;;  %v701_v6 = vpop.f32.mrf.mxu2 }
 0x128   : > { %1053 = vst [vmem:[%s1701_s7 + $0xe8] sm:$0xff] %v1021_v4  ;;  %v1006_v7 = vadd.f32 0.5, %v974_v5  ;;  %v790_v8 = vpop.f32.mrf.mxu3 }
 0x129   : > { %v791_v9 = vadd.f32 %v790_v8, %v701_v6 }
 0x12a   : > { %1038 = vst [vmem:[%s1701_s7 + $0x70] sm:$0xff] %v1006_v7 }
 0x12b   : > { %v1496_v10 = vpop.eup %1495  ;;  %v927_v11 = vadd.f32 %v1691_v49, %v791_v9 }
 0x12c   : > { %v990_v12 = vmul.f32 0.5, %v1496_v10 }
 0x12d   : > { %v1498_v13 = vpop.eup %1497  ;;  %1499 = vtanh.f32 %v927_v11 }
 0x12e   : > { %v1022_v14 = vadd.f32 0.5, %v990_v12  ;;  %v975_v15 = vmul.f32 0.5, %v1498_v13 }
 0x130   : > { %1054 = vst [vmem:[%s1701_s7 + $0xf0] sm:$0xff] %v1022_v14  ;;  %v1007_v16 = vadd.f32 0.5, %v975_v15 }
 0x132   : > { %1039 = vst [vmem:[%s1701_s7 + $0x78] sm:$0xff] %v1007_v16 }
 0x133   : > { %v1500_v17 = vpop.eup %1499 }
 0x134   : > { %v991_v18 = vmul.f32 0.5, %v1500_v17 }
 0x136   : > { %v1023_v19 = vadd.f32 0.5, %v991_v18 }
 0x138   : > { %1055 = vst [vmem:[%s1701_s7 + $0xf8] sm:$0xff] %v1023_v19 }
 0x139 PF: > { %s13_s14 = sadd.s32 1, %s1523_s14   ;;  %s1777_s12 = smov %s1519_s13 }
 0x13a   : > { %p10_p5 = scmp.ge.s32.totalorder %s13_s14, 4   ;;  %s1778_s13 = smov %s1780_s15 }
 0x13c   :  { %12 = sbr.rel (!%p10_p5) target bundleno = 2 (0x2), region = 73 }

</bundles_post_ra>
